<compile_context>
chip_gen: v7x
topology: tpu7x:2x2x1
jax: 0.10.0
libtpu: 0.0.40
codegen_flags: <defaults>
</compile_context>

<pallas_src>
import functools

import jax
import jax.numpy as jnp
from jax import lax
from jax.experimental import pallas as pl
from jax.experimental.pallas import tpu as pltpu

EPS = 1e-5


def _zero_border(a, TB, H, W, C):
    """Add a zero 1-pixel spatial border: (TB,H,W,C) -> (TB,H+2,W+2,C)."""
    zc = jnp.zeros((TB, H, 1, C), jnp.float32)
    aw = jnp.concatenate([zc, a, zc], axis=2)              # (TB, H, W+2, C)
    zr = jnp.zeros((TB, 1, W + 2, C), jnp.float32)
    return jnp.concatenate([zr, aw, zr], axis=1)           # (TB, H+2, W+2, C)


def _im2col_conv(ap, w, TB, H, W, C):
    """3x3 'SAME' conv of a zero-bordered tile as a single MXU dot.

    ap: (TB, H+2, W+2, C) f32 with a zero border.
    w : (9*C, C) f32, rows ordered (ky, kx, cin).
    returns (TB*H*W, C) f32.
    """
    cols = [ap[:, :, kx:kx + W, :] for kx in range(3)]     # (TB, H+2, W, C)
    patches = [cols[kx][:, ky:ky + H].reshape(TB * H * W, C)
               for ky in range(3) for kx in range(3)]
    im2col = jnp.concatenate(patches, axis=-1)              # (M, 9C)
    return jnp.dot(im2col, w, preferred_element_type=jnp.float32)


def _stats(h):
    # one-pass per-channel sum and sum-of-squares of (M, C) -> (2, C)
    return jnp.concatenate([jnp.sum(h, axis=0, keepdims=True),
                            jnp.sum(h * h, axis=0, keepdims=True)], axis=0)


def _conv1_kernel(xt_ref, w_ref, h1t_ref, stats_ref, *, TB, H, W, C):
    xt = xt_ref[...].astype(jnp.float32)                    # (C, M) lane-dense
    a = xt.T.reshape(TB, H, W, C)                            # XLU transpose
    h = _im2col_conv(_zero_border(a, TB, H, W, C), w_ref[...], TB, H, W, C)
    h1t_ref[...] = h.T.astype(h1t_ref.dtype)                 # (C, M) lane-dense
    stats_ref[...] = _stats(h)[None].astype(stats_ref.dtype)


def _bn_relu_conv2_kernel(h1t_ref, scale_ref, shift_ref, w_ref,
                          h2t_ref, stats_ref, *, TB, H, W, C):
    ht = h1t_ref[...].astype(jnp.float32)                    # (C, M)
    at = jnp.maximum(ht * scale_ref[...] + shift_ref[...], 0.0)   # fused BN1+ReLU
    a = at.T.reshape(TB, H, W, C)
    h = _im2col_conv(_zero_border(a, TB, H, W, C), w_ref[...], TB, H, W, C)
    h2t_ref[...] = h.T.astype(h2t_ref.dtype)
    stats_ref[...] = _stats(h)[None].astype(stats_ref.dtype)


def _bn_residual_relu_kernel(xt_ref, h2t_ref, scale_ref, shift_ref, ot_ref):
    # pure elementwise, every stream lane-dense (C, tb*H*W)
    y = (xt_ref[...].astype(jnp.float32)
         + h2t_ref[...].astype(jnp.float32) * scale_ref[...] + shift_ref[...])
    ot_ref[...] = jnp.maximum(y, 0.0).astype(ot_ref.dtype)


def _vmem_estimate(tb, H, W, C, interm_bytes):
    """Rough per-grid-step VMEM working set (worst pass = pass 2)."""
    f32, M = 4, tb * H * W
    blocks = 2 * 2 * C * M * max(interm_bytes, f32)   # double-buffered in/out acts
    weights = 2 * 9 * C * C * f32
    temps = f32 * (2 * C * M                           # loaded act + BN'ed copy
                   + tb * (H + 2) * (W + 2) * C        # zero-bordered tile
                   + 3 * tb * (H + 2) * W * C          # kx column bands
                   + 2 * 9 * C * M                     # im2col (+ copy)
                   + 3 * C * M)                        # matmul result / transpose
    return blocks + weights + temps + (1 << 20)


def _vmem_limit_bytes(est):
    # Never clamp the limit below the real estimate (perf review); the batch
    # tile picker keeps `est` within ~40 MiB so this stays inside v7x's
    # 64 MiB VMEM.  On v5e/v6e (128 MiB physical) the budget could be raised
    # towards ~96 MiB for even larger tiles.
    return max(16 << 20, int(est * 1.25) + (2 << 20))


def _pick_batch_tile(N, H, W, C, interm_bytes, budget=40 << 20):
    ok = []
    for tb in range(1, N + 1):
        if N % tb:
            continue
        if tb != N and (tb * H * W) % 128:     # keep activation blocks lane-aligned
            continue
        if _vmem_estimate(tb, H, W, C, interm_bytes) <= budget:
            ok.append(tb)
    if not ok:
        # TODO(synk): add a spatial (H) tile grid axis for shapes where even
        # tb=1 exceeds the v7x VMEM budget (large C x large H*W).
        return 1
    # keep >= 2 grid steps when the batch allows it, so v7x megacore and the
    # double-buffered pipeline both have work; otherwise take the largest tile.
    big = [tb for tb in ok if N // tb >= 2]
    return max(big) if (N >= 4 and big) else max(ok)


def _bn_scale_shift(stats, count, gamma, beta):
    s = jnp.sum(stats, axis=0)                               # (2, C)
    mean = s[0] / count
    var = jnp.maximum(s[1] / count - mean * mean, 0.0)       # biased batch variance
    scale = gamma * lax.rsqrt(var + EPS)
    shift = beta - mean * scale
    return scale.reshape(-1, 1), shift.reshape(-1, 1)        # (C, 1) each


def residual_block(x_nchw, w1, b1, g1, be1, w2, b2, g2, be2, *,
                   batch_tile=None, interm_dtype=jnp.bfloat16):
    N, C, H, W = x_nchw.shape
    del b1, b2        # conv bias is exactly cancelled by training-mode BatchNorm
    HW = H * W
    ib = jnp.dtype(interm_dtype).itemsize
    tb = batch_tile if batch_tile is not None else _pick_batch_tile(N, H, W, C, ib)
    assert N % tb == 0, "batch_tile must divide N"
    nb, M = N // tb, tb * HW

    # channel-major lane-dense activation layout: act[c, n*H*W + h*W + w]
    x_cm = (jnp.transpose(x_nchw.reshape(N, C, HW), (1, 0, 2))
            .reshape(C, N * HW).astype(jnp.float32))
    # (Cout, Cin, 3, 3) -> (ky, kx, Cin, Cout) -> (9*Cin, Cout) im2col weights
    w1m = jnp.transpose(w1, (2, 3, 1, 0)).reshape(9 * C, C).astype(jnp.float32)
    w2m = jnp.transpose(w2, (2, 3, 1, 0)).reshape(9 * C, C).astype(jnp.float32)

    act_spec = pl.BlockSpec((C, M), lambda n: (0, n))        # minor dim = tb*H*W
    vec_spec = pl.BlockSpec((C, 1), lambda n: (0, 0))
    w_spec = pl.BlockSpec((9 * C, C), lambda n: (0, 0))
    stats_spec = pl.BlockSpec((1, 2, C), lambda n: (n, 0, 0))
    cparams = pltpu.CompilerParams(
        dimension_semantics=("parallel",),
        vmem_limit_bytes=_vmem_limit_bytes(_vmem_estimate(tb, H, W, C, ib)))

    # --- pass 1: conv1 + per-tile batch stats -------------------------------
    h1t, stats1 = pl.pallas_call(
        functools.partial(_conv1_kernel, TB=tb, H=H, W=W, C=C),
        grid=(nb,),
        in_specs=[act_spec, w_spec],
        out_specs=(act_spec, stats_spec),
        out_shape=(jax.ShapeDtypeStruct((C, N * HW), interm_dtype),
                   jax.ShapeDtypeStruct((nb, 2, C), jnp.float32)),
        compiler_params=cparams,
    )(x_cm, w1m)
    scale1, shift1 = _bn_scale_shift(stats1, N * HW, g1, be1)

    # --- pass 2: fused BN1 + ReLU + conv2 + per-tile batch stats ------------
    h2t, stats2 = pl.pallas_call(
        functools.partial(_bn_relu_conv2_kernel, TB=tb, H=H, W=W, C=C),
        grid=(nb,),
        in_specs=[act_spec, vec_spec, vec_spec, w_spec],
        out_specs=(act_spec, stats_spec),
        out_shape=(jax.ShapeDtypeStruct((C, N * HW), interm_dtype),
                   jax.ShapeDtypeStruct((nb, 2, C), jnp.float32)),
        compiler_params=cparams,
    )(h1t, scale1, shift1, w2m)
    scale2, shift2 = _bn_scale_shift(stats2, N * HW, g2, be2)

    # --- pass 3: fused BN2 + residual add + ReLU (fully lane-dense) ---------
    out_t = pl.pallas_call(
        _bn_residual_relu_kernel,
        grid=(nb,),
        in_specs=[act_spec, act_spec, vec_spec, vec_spec],
        out_specs=act_spec,
        out_shape=jax.ShapeDtypeStruct((C, N * HW), x_nchw.dtype),
        compiler_params=cparams,
    )(x_cm, h2t, scale2, shift2)

    # TODO(synk): BatchNorm running_mean/running_var momentum updates are not
    # emitted (forward output matches PyTorch training-mode forward).
    return jnp.transpose(out_t.reshape(C, N, H, W), (1, 0, 2, 3))   # back to NCHW


def reference(x, w1, b1, g1, be1, w2, b2, g2, be2):
    def conv(h, w, b):
        y = lax.conv_general_dilated(h, w, (1, 1), "SAME",
                                     dimension_numbers=("NCHW", "OIHW", "NCHW"))
        return y + b[None, :, None, None]

    def bn(h, g, be):
        mean = jnp.mean(h, axis=(0, 2, 3), keepdims=True)
        var = jnp.mean((h - mean) ** 2, axis=(0, 2, 3), keepdims=True)
        return ((h - mean) * lax.rsqrt(var + EPS) * g[None, :, None, None]
                + be[None, :, None, None])

    h = jnp.maximum(bn(conv(x, w1, b1), g1, be1), 0.0)
    h = bn(conv(h, w2, b2), g2, be2)
    return jnp.maximum(x + h, 0.0)


if __name__ == "__main__":
    N, C, H, W = 2, 4, 16, 16
    key = jax.random.PRNGKey(0)
    kx, kw1, kb1, kw2, kb2 = jax.random.split(key, 5)

    x = jax.random.normal(kx, (N, C, H, W), jnp.float32)
    # Conv2d weights: (C_out, C_in, 3, 3); biases: (C,)
    w1 = jax.random.normal(kw1, (C, C, 3, 3), jnp.float32) * 0.1
    b1 = jax.random.normal(kb1, (C,), jnp.float32) * 0.1
    w2 = jax.random.normal(kw2, (C, C, 3, 3), jnp.float32) * 0.1
    b2 = jax.random.normal(kb2, (C,), jnp.float32) * 0.1
    # BatchNorm2d default init: weight=1, bias=0
    g1 = jnp.ones((C,), jnp.float32)
    be1 = jnp.zeros((C,), jnp.float32)
    g2 = jnp.ones((C,), jnp.float32)
    be2 = jnp.zeros((C,), jnp.float32)

    ref = reference(x, w1, b1, g1, be1, w2, b2, g2, be2)

    # f32 intermediates: tight check
    out = jax.block_until_ready(residual_block(
        x, w1, b1, g1, be1, w2, b2, g2, be2, interm_dtype=jnp.float32))
    assert out.shape == (N, C, H, W)
    assert jnp.allclose(out, ref, atol=2e-4, rtol=2e-4), (
        float(jnp.max(jnp.abs(out - ref))))

    # default bf16 inter-pass intermediates: looser check (bf16 rounding of
    # h1/h2 is amplified by BN's 1/sigma; compute and stats stay f32)
    out_bf = jax.block_until_ready(residual_block(
        x, w1, b1, g1, be1, w2, b2, g2, be2))
    assert jnp.allclose(out_bf, ref, atol=1e-1, rtol=5e-2), (
        float(jnp.max(jnp.abs(out_bf - ref))))

    print("KERNEL_OK")
</pallas_src>

<mosaic_0001>
module attributes {stable_mosaic.version = 11 : i64} {
  func.func @_conv1_kernel(%arg0: i32, %arg1: memref<4x512xf32, #tpu.memory_space<vmem>>, %arg2: memref<36x4xf32, #tpu.memory_space<vmem>>, %arg3: memref<4x512xf32, #tpu.memory_space<vmem>>, %arg4: memref<1x2x4xf32, #tpu.memory_space<vmem>>) attributes {dimension_semantics = [#tpu.dimension_semantics<parallel>], iteration_bounds = array<i64: 1>, scalar_prefetch = 0 : i64, scratch_operands = 0 : i64, tpu.core_type = #tpu.core_type<tc>, window_params = [{transform_indices = @transform_0, window_bounds = array<i64: 4, 512>}, {pipeline_mode = #tpu.pipeline_mode<synchronous>, transform_indices = @transform_1, window_bounds = array<i64: 36, 4>}, {transform_indices = @transform_2, window_bounds = array<i64: 4, 512>}, {transform_indices = @transform_3, window_bounds = array<i64: 1, 2, 4>}]} {
    %c0 = arith.constant 0 : index
    %c0_0 = arith.constant 0 : index
    %0 = vector.load %arg1[%c0, %c0_0] : memref<4x512xf32, #tpu.memory_space<vmem>>, vector<4x512xf32>
    %1 = tpu.transpose %0, [1, 0] : vector<4x512xf32> -> vector<512x4xf32>
    %2 = vector.shape_cast %1 : vector<512x4xf32> to vector<2x16x16x4xf32>
    %cst = arith.constant 0.000000e+00 : f32
    %3 = vector.broadcast %cst : f32 to vector<2x16x1x4xf32>
    %4 = tpu.concatenate %3, %2, %3 in 2 : vector<2x16x1x4xf32>, vector<2x16x16x4xf32>, vector<2x16x1x4xf32> -> vector<2x16x18x4xf32>
    %cst_1 = arith.constant 0.000000e+00 : f32
    %5 = vector.broadcast %cst_1 : f32 to vector<2x1x18x4xf32>
    %6 = tpu.concatenate %5, %4, %5 in 1 : vector<2x1x18x4xf32>, vector<2x16x18x4xf32>, vector<2x1x18x4xf32> -> vector<2x18x18x4xf32>
    %c0_2 = arith.constant 0 : index
    %c0_3 = arith.constant 0 : index
    %7 = vector.load %arg2[%c0_2, %c0_3] : memref<36x4xf32, #tpu.memory_space<vmem>>, vector<36x4xf32>
    %8 = vector.extract_strided_slice %6 {offsets = [0, 0, 0, 0], sizes = [2, 18, 16, 4], strides = [1, 1, 1, 1]} : vector<2x18x18x4xf32> to vector<2x18x16x4xf32>
    %9 = vector.extract_strided_slice %6 {offsets = [0, 0, 1, 0], sizes = [2, 18, 16, 4], strides = [1, 1, 1, 1]} : vector<2x18x18x4xf32> to vector<2x18x16x4xf32>
    %10 = vector.extract_strided_slice %6 {offsets = [0, 0, 2, 0], sizes = [2, 18, 16, 4], strides = [1, 1, 1, 1]} : vector<2x18x18x4xf32> to vector<2x18x16x4xf32>
    %11 = vector.extract_strided_slice %8 {offsets = [0, 0, 0, 0], sizes = [2, 16, 16, 4], strides = [1, 1, 1, 1]} : vector<2x18x16x4xf32> to vector<2x16x16x4xf32>
    %12 = vector.shape_cast %11 : vector<2x16x16x4xf32> to vector<512x4xf32>
    %13 = vector.extract_strided_slice %9 {offsets = [0, 0, 0, 0], sizes = [2, 16, 16, 4], strides = [1, 1, 1, 1]} : vector<2x18x16x4xf32> to vector<2x16x16x4xf32>
    %14 = vector.shape_cast %13 : vector<2x16x16x4xf32> to vector<512x4xf32>
    %15 = vector.extract_strided_slice %10 {offsets = [0, 0, 0, 0], sizes = [2, 16, 16, 4], strides = [1, 1, 1, 1]} : vector<2x18x16x4xf32> to vector<2x16x16x4xf32>
    %16 = vector.shape_cast %15 : vector<2x16x16x4xf32> to vector<512x4xf32>
    %17 = vector.extract_strided_slice %8 {offsets = [0, 1, 0, 0], sizes = [2, 16, 16, 4], strides = [1, 1, 1, 1]} : vector<2x18x16x4xf32> to vector<2x16x16x4xf32>
    %18 = vector.shape_cast %17 : vector<2x16x16x4xf32> to vector<512x4xf32>
    %19 = vector.extract_strided_slice %9 {offsets = [0, 1, 0, 0], sizes = [2, 16, 16, 4], strides = [1, 1, 1, 1]} : vector<2x18x16x4xf32> to vector<2x16x16x4xf32>
    %20 = vector.shape_cast %19 : vector<2x16x16x4xf32> to vector<512x4xf32>
    %21 = vector.extract_strided_slice %10 {offsets = [0, 1, 0, 0], sizes = [2, 16, 16, 4], strides = [1, 1, 1, 1]} : vector<2x18x16x4xf32> to vector<2x16x16x4xf32>
    %22 = vector.shape_cast %21 : vector<2x16x16x4xf32> to vector<512x4xf32>
    %23 = vector.extract_strided_slice %8 {offsets = [0, 2, 0, 0], sizes = [2, 16, 16, 4], strides = [1, 1, 1, 1]} : vector<2x18x16x4xf32> to vector<2x16x16x4xf32>
    %24 = vector.shape_cast %23 : vector<2x16x16x4xf32> to vector<512x4xf32>
    %25 = vector.extract_strided_slice %9 {offsets = [0, 2, 0, 0], sizes = [2, 16, 16, 4], strides = [1, 1, 1, 1]} : vector<2x18x16x4xf32> to vector<2x16x16x4xf32>
    %26 = vector.shape_cast %25 : vector<2x16x16x4xf32> to vector<512x4xf32>
    %27 = vector.extract_strided_slice %10 {offsets = [0, 2, 0, 0], sizes = [2, 16, 16, 4], strides = [1, 1, 1, 1]} : vector<2x18x16x4xf32> to vector<2x16x16x4xf32>
    %28 = vector.shape_cast %27 : vector<2x16x16x4xf32> to vector<512x4xf32>
    %29 = tpu.concatenate %12, %14, %16, %18, %20, %22, %24, %26, %28 in 1 : vector<512x4xf32>, vector<512x4xf32>, vector<512x4xf32>, vector<512x4xf32>, vector<512x4xf32>, vector<512x4xf32>, vector<512x4xf32>, vector<512x4xf32>, vector<512x4xf32> -> vector<512x36xf32>
    %cst_4 = arith.constant dense<0.000000e+00> : vector<512x4xf32>
    %30 = tpu.matmul %29, %7, %cst_4 {dimension_numbers = #tpu.dot_dimension_numbers<[1], [0], [0], [1], [0, 0, 1, 1], [], []>} : vector<512x36xf32>, vector<36x4xf32>, vector<512x4xf32> -> vector<512x4xf32>
    %31 = tpu.transpose %30, [1, 0] : vector<512x4xf32> -> vector<4x512xf32>
    %c0_5 = arith.constant 0 : index
    %c0_6 = arith.constant 0 : index
    %32 = vector.load %arg3[%c0_5, %c0_6] : memref<4x512xf32, #tpu.memory_space<vmem>>, vector<4x512xf32>
    tpu.vector_store %arg3[%c0_5, %c0_6], %31 {strides = array<i32>} : memref<4x512xf32, #tpu.memory_space<vmem>>, vector<4x512xf32>,
    %cst_7 = arith.constant dense<0.000000e+00> : vector<4xf32>
    %33 = vector.multi_reduction <add>, %30, %cst_7 [0] : vector<512x4xf32> to vector<4xf32>
    %34 = vector.shape_cast %33 : vector<4xf32> to vector<1x4xf32>
    %35 = arith.mulf %30, %30 : vector<512x4xf32>
    %cst_8 = arith.constant dense<0.000000e+00> : vector<4xf32>
    %36 = vector.multi_reduction <add>, %35, %cst_8 [0] : vector<512x4xf32> to vector<4xf32>
    %37 = vector.shape_cast %36 : vector<4xf32> to vector<1x4xf32>
    %38 = tpu.concatenate %34, %37 in 0 : vector<1x4xf32>, vector<1x4xf32> -> vector<2x4xf32>
    %39 = vector.shape_cast %38 : vector<2x4xf32> to vector<1x2x4xf32>
    %c0_9 = arith.constant 0 : index
    %c0_10 = arith.constant 0 : index
    %c0_11 = arith.constant 0 : index
    %40 = vector.load %arg4[%c0_9, %c0_10, %c0_11] : memref<1x2x4xf32, #tpu.memory_space<vmem>>, vector<1x2x4xf32>
    tpu.vector_store %arg4[%c0_9, %c0_10, %c0_11], %39 {strides = array<i32>} : memref<1x2x4xf32, #tpu.memory_space<vmem>>, vector<1x2x4xf32>,
    return
  }
  func.func @transform_0(%arg0: i32) -> (i32, i32) {
    %c0_i32 = arith.constant 0 : i32
    %c0_i32_0 = arith.constant 0 : i32
    return %c0_i32, %arg0 : i32, i32
  }
  func.func @transform_1(%arg0: i32) -> (i32, i32) {
    %c0_i32 = arith.constant 0 : i32
    %c0_i32_0 = arith.constant 0 : i32
    %c0_i32_1 = arith.constant 0 : i32
    return %c0_i32, %c0_i32_0 : i32, i32
  }
  func.func @transform_2(%arg0: i32) -> (i32, i32) {
    %c0_i32 = arith.constant 0 : i32
    %c0_i32_0 = arith.constant 0 : i32
    return %c0_i32, %arg0 : i32, i32
  }
  func.func @transform_3(%arg0: i32) -> (i32, i32, i32) {
    %c0_i32 = arith.constant 0 : i32
    %c0_i32_0 = arith.constant 0 : i32
    %c0_i32_1 = arith.constant 0 : i32
    return %arg0, %c0_i32, %c0_i32_0 : i32, i32, i32
  }
}

</mosaic_0001>

<bundles_post_ra>
// kernel: tpu_custom_call.1
= control target key start
LH: loop header
LB: loop body
LE: loop exit
PB: predicated region body
PF: predicated region fallthrough
CT: control target
= control target key end

     0   :  { %9 = vsyncpa [#allocation3], 0  ;;  %s8207_s0 = inlined_call_operand.vmem [shape: f32[4,512], index: 0, kind: input, shape index: {}]   ;;  %s8208_s1 = inlined_call_operand.vmem [shape: f32[36,4], index: 1, kind: input, shape index: {}]   ;;  %s8209_s2 = inlined_call_operand.hbm [shape: f32[4,512], index: 2, kind: output, shape index: {0}]   ;;  %s8210_s3 = inlined_call_operand.hbm [shape: f32[1,2,4], index: 3, kind: output, shape index: {1}]  }
   0x1   :  { %v16_v0 = vld [vmem:[%s8207_s0 + $0x8] sm:$0xff]  ;;  %v15_v1 = vld [vmem:[%s8207_s0] sm:$0xff] }
   0x2   :  { %10 = vsyncpa [#allocation5], 0  ;;  %87 = vxpose.xlu1.b32.start.end [1/1] (short) %v16_v0, 128  ;;  %23 = vxpose.xlu0.b32.start.end [1/1] (short) %v15_v1, 128  ;;  %v20_v2 = vcombine.high %v16_v0, %v16_v0  ;;  %v19_v3 = vcombine.high %v15_v1, %v15_v1  ;;  %vm215_vm0 = vcmask 1040384   ;;  %vm536_vm1 = vcmask 1046528   ;;  %s4267_s0 = smov 4   ;;  %s4269_s16 = smov 8  }
   0x3   :  { %v8211_v39 = vmov 0.0   ;;  %vm689_vm2 = vcmask 1045504   ;;  %s4270_s17 = smov 12   ;;  %s4271_s18 = smov 16   ;;  %vm3064_vm3 = vcmask 1043456   ;;  %vm2419_vm4 = vcmask 64512  }
   0x4   :  { %v4354_v40 = vrot.slane %v8211_v39, 1  ;;  %s4272_s19 = smov 20   ;;  %s4273_s20 = smov 24   ;;  %vm2357_vm5 = vcmask 31744   ;;  %vm2481_vm6 = vcmask 97280   ;;  %vm2546_vm7 = vcmask 130048  }
   0x5   :  { %s4275_s4 = smov 32   ;;  %vm2611_vm8 = vcmask 162816   ;;  %vm2676_vm9 = vcmask 195584   ;;  %vm2741_vm10 = vcmask 228352   ;;  %vm2806_vm11 = vcmask 261120   ;;  %s4276_s5 = smov [#allocation4]  }
   0x6   :  { %8574 = vst [vmem:[#allocation12_spill] sm:$0xff] %v4354_v40  ;;  %vm2871_vm12 = vcmask 293888   ;;  %s3940_s6 = sshll.u32 %s4276_s5, 4  ;;  %vm3922_vm13 = vcmask 25600   ;;  %s3941_s6 = int_to_ptr.vmem [resolvable:$true] %s3940_s6 }
   0x7   :  { %s4219_s7 = scalar_lea.vmem %s3941_s6, 32  ;;  %p4224_p1 = scmp.lt.s32.totalorder %s3941_s6, %s3941_s6 }
   0x8   :  { %p4220_p0 = scmp.ne.s32.totalorder %s3941_s6, %s4219_s7  ;;  %p4225_p2 = scmp.lt.s32.totalorder %s4219_s7, %s4219_s7 }
   0xa   :  { %p4226_p3 = por %p4225_p2, %p4224_p1 }
   0xc   :  { %p4227_p4 = pnand %p4226_p3, %p4220_p0 }
  0x3f   :  { %119 = vxpose.xlu1.b32.start.end [1/1] (short) %v20_v2, 128  ;;  %55 = vxpose.xlu0.b32.start.end [1/1] (short) %v19_v3, 128 }
  0x82   :  { %v39_v4 = vpop.trf.xlu0  ;;  %v4304_v5 = vpop.trf.xlu1 }
  0x83   :  { %v216_v13 = vrot.slane %v39_v4, 7 }
  0x85   :  { %v4318_v17 = vsel %vm215_vm0, 0.0, %v216_v13 }
  0x86   :  { %v40_v6 = vpop.trf.xlu0  ;;  %v4306_v7 = vpop.trf.xlu1  ;;  %8571 = vst [vmem:[#allocation9_spill] sm:$0xff] %v4318_v17  ;;  %v539_v22 = vrot.slane %v4318_v17, 1 }
  0x87   :  { %v217_v10 = vrot.slane %v40_v6, 7 }
  0x89   :  { %v4313_v14 = vsel %vm215_vm0, %v216_v13, %v217_v10  ;;  %v4322_v19 = vsel %vm215_vm0, %v217_v10, 0.0 }
  0x8a   :  { %v41_v8 = vpop.trf.xlu0  ;;  %v4308_v9 = vpop.trf.xlu1  ;;  %8570 = vst [vmem:[#allocation8_spill] sm:$0xff] %v4313_v14  ;;  %v540_v18 = vrot.slane %v4313_v14, 1  ;;  %v542_v25 = vrot.slane %v4322_v19, 1 }
  0x8b   :  { %v219_v24 = vrot.slane %v41_v8, 7 }
  0x8c   :  { %v4329_v26 = vsel %vm536_vm1, %v539_v22, %v540_v18  ;;  %v4342_v32 = vsel %vm536_vm1, %v540_v18, %v542_v25 }
  0x8d   :  { %8572 = vst [vmem:[#allocation10_spill] sm:$0xff] %v4329_v26  ;;  %v4339_v30 = vsel %vm215_vm0, 0.0, %v219_v24  ;;  %8573 = vst [vmem:[#allocation11_spill] sm:$0xff] %v4342_v32 }
  0x8e   :  { %v42_v11 = vpop.trf.xlu0  ;;  %v4310_v12 = vpop.trf.xlu1  ;;  %v544_v37 = vrot.slane %v4339_v30, 1 }
  0x8f   :  { %v220_v20 = vrot.slane %v42_v11, 7 }
  0x91   :  { %v4332_v27 = vsel %vm215_vm0, %v219_v24, %v220_v20  ;;  %v4346_v34 = vsel %vm215_vm0, %v220_v20, 0.0 }
  0x92   :  { %v43_v15 = vpop.trf.xlu0  ;;  %v4315_v16 = vpop.trf.xlu1  ;;  %v545_v33 = vrot.slane %v4332_v27, 1  ;;  %v547_v41 = vrot.slane %v4346_v34, 1 }
  0x93   :  { %v222_v35 = vrot.slane %v43_v15, 7 }
  0x94   :  { %v4361_v44 = vsel %vm536_vm1, %v544_v37, %v545_v33  ;;  %v4381_v53 = vsel %vm536_vm1, %v545_v33, %v547_v41 }
  0x95   :  { %8575 = vst [vmem:[#allocation13_spill] sm:$0xff] %v4361_v44  ;;  %v4369_v46 = vsel %vm215_vm0, 0.0, %v222_v35  ;;  %8576 = vst [vmem:[#allocation14_spill] sm:$0xff] %v4381_v53 }
  0x96   :  { %v44_v21 = vpop.trf.xlu0  ;;  %v4325_v23 = vpop.trf.xlu1  ;;  %v549_v55 = vrot.slane %v4369_v46, 1 }
  0x97   :  { %v223_v31 = vrot.slane %v44_v21, 7 }
  0x99   :  { %868 = vrot.lane.b32.xlu1 %v4329_v26, %s4267_s0  ;;  %v4358_v42 = vsel %vm215_vm0, %v222_v35, %v223_v31  ;;  %v4364_v45 = vsel %vm215_vm0, %v223_v31, 0.0 }
  0x9a   :  { %v45_v28 = vpop.trf.xlu0  ;;  %v4336_v29 = vpop.trf.xlu1  ;;  %v550_v50 = vrot.slane %v4358_v42, 1  ;;  %v552_v51 = vrot.slane %v4364_v45, 1 }
  0x9b   :  { %v225_v47 = vrot.slane %v45_v28, 7 }
  0x9c   :  { %v4395_v61 = vsel %vm536_vm1, %v549_v55, %v550_v50  ;;  %v4402_v0 = vsel %vm536_vm1, %v550_v50, %v552_v51 }
  0x9d   :  { %870 = vrot.lane.b32.xlu1 %v4342_v32, %s4267_s0  ;;  %v4390_v56 = vsel %vm215_vm0, 0.0, %v225_v47  ;;  %8577 = vst [vmem:[#allocation15_spill] sm:$0xff] %v4395_v61  ;;  %8578 = vst [vmem:[#allocation16_spill] sm:$0xff] %v4402_v0 }
  0x9e   :  { %v46_v36 = vpop.trf.xlu0  ;;  %v4351_v38 = vpop.trf.xlu1  ;;  %v554_v3 = vrot.slane %v4390_v56, 1 }
  0x9f   :  { %v226_v43 = vrot.slane %v46_v36, 7 }
  0xa1   :  { %872 = vrot.lane.b32.xlu1 %v4361_v44, %s4267_s0  ;;  %v4376_v52 = vsel %vm215_vm0, %v225_v47, %v226_v43  ;;  %v4384_v54 = vsel %vm215_vm0, %v226_v43, 0.0 }
  0xa2   :  { %v47_v48 = vpop.trf.xlu0  ;;  %v4371_v49 = vpop.trf.xlu1  ;;  %v555_v62 = vrot.slane %v4376_v52, 1  ;;  %v557_v63 = vrot.slane %v4384_v54, 1 }
  0xa3   :  { %v228_v57 = vrot.slane %v47_v48, 7 }
  0xa4   :  { %866 = vrot.lane.b32.xlu0 %v4354_v40, %s4267_s0  ;;  %v4419_v11 = vsel %vm536_vm1, %v554_v3, %v555_v62  ;;  %v4426_v18 = vsel %vm536_vm1, %v555_v62, %v557_v63 }
  0xa5   :  { %874 = vrot.lane.b32.xlu1 %v4381_v53, %s4267_s0  ;;  %v4414_v4 = vsel %vm215_vm0, 0.0, %v228_v57  ;;  %8579 = vst [vmem:[#allocation17_spill] sm:$0xff] %v4419_v11  ;;  %8580 = vst [vmem:[#allocation18_spill] sm:$0xff] %v4426_v18 }
  0xa6   :  { %v48_v58 = vpop.trf.xlu0  ;;  %v4392_v59 = vpop.trf.xlu1  ;;  %v559_v20 = vrot.slane %v4414_v4, 1 }
  0xa7   :  { %v229_v60 = vrot.slane %v48_v58, 7 }
  0xa8   :  { %876 = vrot.lane.b32.xlu0 %v4395_v61, %s4267_s0 }
  0xa9   :  { %v4405_v1 = vsel %vm215_vm0, %v228_v57, %v229_v60  ;;  %v4408_v2 = vsel %vm215_vm0, %v229_v60, 0.0  ;;  %878 = vrot.lane.b32.xlu1 %v4402_v0, %s4267_s0 }
  0xaa   :  { %v49_v6 = vpop.trf.xlu0  ;;  %v4416_v8 = vpop.trf.xlu1  ;;  %v560_v13 = vrot.slane %v4405_v1, 1  ;;  %v562_v15 = vrot.slane %v4408_v2, 1 }
  0xab   :  { %v231_v10 = vrot.slane %v49_v6, 7 }
  0xac   :  { %880 = vrot.lane.b32.xlu0 %v4419_v11, %s4267_s0  ;;  %v4437_v28 = vsel %vm536_vm1, %v559_v20, %v560_v13  ;;  %v4442_v31 = vsel %vm536_vm1, %v560_v13, %v562_v15 }
  0xad   :  { %882 = vrot.lane.b32.xlu1 %v4426_v18, %s4267_s0  ;;  %v4434_v24 = vsel %vm215_vm0, 0.0, %v231_v10  ;;  %8581 = vst [vmem:[#allocation19_spill] sm:$0xff] %v4437_v28  ;;  %8582 = vst [vmem:[#allocation20_spill] sm:$0xff] %v4442_v31 }
  0xae   :  { %v50_v21 = vpop.trf.xlu0  ;;  %v4431_v22 = vpop.trf.xlu1  ;;  %v564_v43 = vrot.slane %v4434_v24, 1 }
  0xaf   :  { %v232_v25 = vrot.slane %v50_v21, 7 }
  0xb0   :  { %884 = vrot.lane.b32.xlu0 %v4437_v28, %s4267_s0 }
  0xb1   :  { %v4445_v33 = vsel %vm215_vm0, %v231_v10, %v232_v25  ;;  %v4448_v35 = vsel %vm215_vm0, %v232_v25, 0.0  ;;  %886 = vrot.lane.b32.xlu1 %v4442_v31, %s4267_s0 }
  0xb2   :  { %v567_v36 = vrot.slane %v4448_v35, 1  ;;  %v51_v37 = vpop.trf.xlu0  ;;  %v565_v41 = vrot.slane %v4445_v33, 1  ;;  %v4455_v47 = vpop.trf.xlu1 }
  0xb3   :  { %v234_v48 = vrot.slane %v51_v37, 7 }
  0xb4   :  { %v4458_v50 = vsel %vm536_vm1, %v565_v41, %v567_v36  ;;  %v4461_v51 = vsel %vm536_vm1, %v564_v43, %v565_v41 }
  0xb5   :  { %8583 = vst [vmem:[#allocation21_spill] sm:$0xff] %v4458_v50  ;;  %8584 = vst [vmem:[#allocation22_spill] sm:$0xff] %v4461_v51  ;;  %890 = vrot.lane.b32.xlu1 %v4458_v50, %s4267_s0  ;;  %888 = vrot.lane.b32.xlu0 %v4461_v51, %s4267_s0  ;;  %v4470_v58 = vsel %vm215_vm0, 0.0, %v234_v48 }
  0xb6   :  { %v52_v55 = vpop.trf.xlu0  ;;  %v4467_v57 = vpop.trf.xlu1  ;;  %v569_v13 = vrot.slane %v4470_v58, 1 }
  0xb7   :  { %v235_v60 = vrot.slane %v52_v55, 7 }
  0xb9   :  { %v4473_v62 = vsel %vm215_vm0, %v234_v48, %v235_v60  ;;  %v4476_v63 = vsel %vm215_vm0, %v235_v60, 0.0 }
  0xba   :  { %v572_v3 = vrot.slane %v4476_v63, 1  ;;  %v53_v6 = vpop.trf.xlu0  ;;  %v570_v10 = vrot.slane %v4473_v62, 1  ;;  %v4481_v15 = vpop.trf.xlu1 }
  0xbb   :  { %v237_v20 = vrot.slane %v53_v6, 7 }
  0xbc   :  { %v4484_v21 = vsel %vm536_vm1, %v570_v10, %v572_v3  ;;  %v4487_v25 = vsel %vm536_vm1, %v569_v13, %v570_v10 }
  0xbd   :  { %8585 = vst [vmem:[#allocation23_spill] sm:$0xff] %v4484_v21  ;;  %8586 = vst [vmem:[#allocation24_spill] sm:$0xff] %v4487_v25  ;;  %894 = vrot.lane.b32.xlu1 %v4484_v21, %s4267_s0  ;;  %892 = vrot.lane.b32.xlu0 %v4487_v25, %s4267_s0  ;;  %v4496_v41 = vsel %vm215_vm0, 0.0, %v237_v20 }
  0xbe   :  { %v54_v36 = vpop.trf.xlu0  ;;  %v4493_v37 = vpop.trf.xlu1  ;;  %v574_v10 = vrot.slane %v4496_v41, 1 }
  0xbf   :  { %v238_v43 = vrot.slane %v54_v36, 7 }
  0xc1   :  { %v4499_v48 = vsel %vm215_vm0, %v237_v20, %v238_v43  ;;  %v4502_v55 = vsel %vm215_vm0, %v238_v43, 0.0 }
  0xc2   :  { %v577_v60 = vrot.slane %v4502_v55, 1  ;;  %v71_v3 = vpop.trf.xlu0  ;;  %v575_v6 = vrot.slane %v4499_v48, 1  ;;  %v4507_v13 = vpop.trf.xlu1 }
  0xc3   :  { %v240_v39 = vrot.slane %v71_v3, 7 }
  0xc4   :  { %v4510_v40 = vsel %vm536_vm1, %v575_v6, %v577_v60  ;;  %v4513_v36 = vsel %vm536_vm1, %v574_v10, %v575_v6 }
  0xc5   :  { %8587 = vst [vmem:[#allocation25_spill] sm:$0xff] %v4510_v40  ;;  %8588 = vst [vmem:[#allocation26_spill] sm:$0xff] %v4513_v36  ;;  %898 = vrot.lane.b32.xlu1 %v4510_v40, %s4267_s0  ;;  %896 = vrot.lane.b32.xlu0 %v4513_v36, %s4267_s0  ;;  %v4520_v43 = vsel %vm215_vm0, 0.0, %v240_v39 }
  0xc6   :  { %v72_v20 = vpop.trf.xlu0  ;;  %8589 = vst [vmem:[#allocation27_spill] sm:$0xff] %v4520_v43  ;;  %v4522_v50 = vpop.trf.xlu1  ;;  %v579_v36 = vrot.slane %v4520_v43, 1 }
  0xc7   :  { %v241_v21 = vrot.slane %v72_v20, 7 }
  0xc9   :  { %v4525_v3 = vsel %vm215_vm0, %v240_v39, %v241_v21  ;;  %v4528_v60 = vsel %vm215_vm0, %v241_v21, 0.0 }
  0xca   :  { %8590 = vst [vmem:[#allocation28_spill] sm:$0xff] %v4528_v60  ;;  %v582_v6 = vrot.slane %v4528_v60, 1  ;;  %v73_v10 = vpop.trf.xlu0  ;;  %v580_v40 = vrot.slane %v4525_v3, 1  ;;  %v4543_v39 = vpop.trf.xlu1 }
  0xcb   :  { %v243_v25 = vrot.slane %v73_v10, 7 }
  0xcc   :  { %v4534_v31 = vsel %vm536_vm1, %v580_v40, %v582_v6  ;;  %v4537_v20 = vsel %vm536_vm1, %v579_v36, %v580_v40 }
  0xcd   :  { %8591 = vst [vmem:[#allocation29_spill] sm:$0xff] %v4534_v31  ;;  %8592 = vst [vmem:[#allocation30_spill] sm:$0xff] %v4537_v20  ;;  %902 = vrot.lane.b32.xlu1 %v4534_v31, %s4267_s0  ;;  %900 = vrot.lane.b32.xlu0 %v4537_v20, %s4267_s0  ;;  %v4546_v51 = vsel %vm215_vm0, 0.0, %v243_v25 }
  0xce   :  { %v74_v21 = vpop.trf.xlu0  ;;  %8593 = vst [vmem:[#allocation31_spill] sm:$0xff] %v4546_v51  ;;  %v584_v20 = vrot.slane %v4546_v51, 1  ;;  %v4557_v0 = vpop.trf.xlu1 }
  0xcf   :  { %v244_v18 = vrot.slane %v74_v21, 7 }
  0xd1   :  { %v4549_v10 = vsel %vm215_vm0, %v243_v25, %v244_v18  ;;  %v4552_v6 = vsel %vm215_vm0, %v244_v18, 0.0 }
  0xd2   :  { %8594 = vst [vmem:[#allocation32_spill] sm:$0xff] %v4549_v10  ;;  %8595 = vst [vmem:[#allocation33_spill] sm:$0xff] %v4552_v6  ;;  %v587_v40 = vrot.slane %v4552_v6, 1  ;;  %v75_v36 = vpop.trf.xlu0  ;;  %v585_v31 = vrot.slane %v4549_v10, 1  ;;  %v4578_v61 = vpop.trf.xlu1 }
  0xd3   :  { %v246_v28 = vrot.slane %v75_v36, 7 }
  0xd4   :  { %v4560_v11 = vsel %vm536_vm1, %v585_v31, %v587_v40  ;;  %v4563_v21 = vsel %vm536_vm1, %v584_v20, %v585_v31 }
  0xd5   :  { %8596 = vst [vmem:[#allocation34_spill] sm:$0xff] %v4560_v11  ;;  %8597 = vst [vmem:[#allocation35_spill] sm:$0xff] %v4563_v21  ;;  %906 = vrot.lane.b32.xlu1 %v4560_v11, %s4267_s0  ;;  %904 = vrot.lane.b32.xlu0 %v4563_v21, %s4267_s0  ;;  %v4570_v25 = vsel %vm215_vm0, 0.0, %v246_v28 }
  0xd6   :  { %v76_v18 = vpop.trf.xlu0  ;;  %8598 = vst [vmem:[#allocation36_spill] sm:$0xff] %v4570_v25  ;;  %v589_v21 = vrot.slane %v4570_v25, 1 }
  0xd7   :  { %v247_v53 = vrot.slane %v76_v18, 7 }
  0xd9   :  { %v4573_v36 = vsel %vm215_vm0, %v246_v28, %v247_v53  ;;  %v4576_v40 = vsel %vm215_vm0, %v247_v53, 0.0 }
  0xda   :  { %8599 = vst [vmem:[#allocation37_spill] sm:$0xff] %v4573_v36  ;;  %8600 = vst [vmem:[#allocation38_spill] sm:$0xff] %v4576_v40  ;;  %v592_v31 = vrot.slane %v4576_v40, 1  ;;  %v77_v20 = vpop.trf.xlu0  ;;  %v590_v11 = vrot.slane %v4573_v36, 1  ;;  %v4596_v40 = vpop.trf.xlu1 }
  0xdb   :  { %v249_v32 = vrot.slane %v77_v20, 7 }
  0xdc   :  { %v4584_v44 = vsel %vm536_vm1, %v590_v11, %v592_v31  ;;  %v4587_v18 = vsel %vm536_vm1, %v589_v21, %v590_v11 }
  0xdd   :  { %8601 = vst [vmem:[#allocation39_spill] sm:$0xff] %v4584_v44  ;;  %8602 = vst [vmem:[#allocation40_spill] sm:$0xff] %v4587_v18  ;;  %910 = vrot.lane.b32.xlu1 %v4584_v44, %s4267_s0  ;;  %908 = vrot.lane.b32.xlu0 %v4587_v18, %s4267_s0  ;;  %v4594_v28 = vsel %vm215_vm0, 0.0, %v249_v32 }
  0xde   :  { %v78_v53 = vpop.trf.xlu0  ;;  %8603 = vst [vmem:[#allocation41_spill] sm:$0xff] %v4594_v28  ;;  %v594_v18 = vrot.slane %v4594_v28, 1  ;;  %v4613_v6 = vpop.trf.xlu1 }
  0xdf   :  { %v250_v26 = vrot.slane %v78_v53, 7 }
  0xe1   :  { %v4599_v20 = vsel %vm215_vm0, %v249_v32, %v250_v26  ;;  %v4602_v31 = vsel %vm215_vm0, %v250_v26, 0.0 }
  0xe2   :  { %8604 = vst [vmem:[#allocation42_spill] sm:$0xff] %v4599_v20  ;;  %8605 = vst [vmem:[#allocation43_spill] sm:$0xff] %v4602_v31  ;;  %v597_v11 = vrot.slane %v4602_v31, 1  ;;  %v79_v21 = vpop.trf.xlu0  ;;  %v595_v44 = vrot.slane %v4599_v20, 1  ;;  %v4631_v20 = vpop.trf.xlu1 }
  0xe3   :  { %v252_v25 = vrot.slane %v79_v21, 7 }
  0xe4   :  { %v4608_v36 = vsel %vm536_vm1, %v595_v44, %v597_v11  ;;  %v4611_v53 = vsel %vm536_vm1, %v594_v18, %v595_v44 }
  0xe5   :  { %8606 = vst [vmem:[#allocation44_spill] sm:$0xff] %v4608_v36  ;;  %8607 = vst [vmem:[#allocation45_spill] sm:$0xff] %v4611_v53  ;;  %914 = vrot.lane.b32.xlu1 %v4608_v36, %s4267_s0  ;;  %912 = vrot.lane.b32.xlu0 %v4611_v53, %s4267_s0  ;;  %v4620_v32 = vsel %vm215_vm0, 0.0, %v252_v25 }
  0xe6   :  { %v80_v26 = vpop.trf.xlu0  ;;  %8608 = vst [vmem:[#allocation46_spill] sm:$0xff] %v4620_v32  ;;  %v599_v36 = vrot.slane %v4620_v32, 1  ;;  %v264_v32 = vrot.slane %v4304_v5, 7 }
  0xe7   :  { %v253_v31 = vrot.slane %v80_v26, 7 }
  0xe9   :  { %v4623_v21 = vsel %vm215_vm0, %v252_v25, %v253_v31  ;;  %v4626_v11 = vsel %vm215_vm0, %v253_v31, 0.0 }
  0xea   :  { %8609 = vst [vmem:[#allocation47_spill] sm:$0xff] %v4623_v21  ;;  %8610 = vst [vmem:[#allocation48_spill] sm:$0xff] %v4626_v11  ;;  %v602_v44 = vrot.slane %v4626_v11, 1  ;;  %v81_v18 = vpop.trf.xlu0  ;;  %v600_v28 = vrot.slane %v4623_v21, 1 }
  0xeb   :  { %v255_v53 = vrot.slane %v81_v18, 7  ;;  %v4647_v18 = vpop.trf.xlu1 }
  0xec   :  { %v4634_v51 = vsel %vm536_vm1, %v600_v28, %v602_v44  ;;  %v4637_v26 = vsel %vm536_vm1, %v599_v36, %v600_v28  ;;  %v265_v28 = vrot.slane %v4306_v7, 7 }
  0xed   :  { %8611 = vst [vmem:[#allocation49_spill] sm:$0xff] %v4634_v51  ;;  %8612 = vst [vmem:[#allocation50_spill] sm:$0xff] %v4637_v26  ;;  %918 = vrot.lane.b32.xlu1 %v4634_v51, %s4267_s0  ;;  %916 = vrot.lane.b32.xlu0 %v4637_v26, %s4267_s0  ;;  %v4644_v31 = vsel %vm215_vm0, 0.0, %v255_v53 }
  0xee   :  { %v82_v25 = vpop.trf.xlu0  ;;  %8613 = vst [vmem:[#allocation51_spill] sm:$0xff] %v4644_v31  ;;  %v604_v10 = vrot.slane %v4644_v31, 1  ;;  %v4670_v7 = vsel %vm215_vm0, %v264_v32, %v265_v28 }
  0xef   :  { %v256_v11 = vrot.slane %v82_v25, 7  ;;  %8618 = vst [vmem:[#allocation56_spill] sm:$0xff] %v4670_v7  ;;  %v615_v43 = vrot.slane %v4670_v7, 1 }
  0xf1   :  { %v4650_v44 = vsel %vm215_vm0, %v255_v53, %v256_v11  ;;  %v4653_v36 = vsel %vm215_vm0, %v256_v11, 0.0  ;;  %v4673_v53 = vsel %vm215_vm0, %v265_v28, 0.0 }
  0xf2   :  { %8614 = vst [vmem:[#allocation52_spill] sm:$0xff] %v4650_v44  ;;  %8615 = vst [vmem:[#allocation53_spill] sm:$0xff] %v4653_v36  ;;  %v607_v51 = vrot.slane %v4653_v36, 1  ;;  %v83_v26 = vpop.trf.xlu0  ;;  %v605_v21 = vrot.slane %v4650_v44, 1  ;;  %v4677_v36 = vpop.trf.xlu1 }
  0xf3   :  { %v258_v25 = vrot.slane %v83_v26, 7  ;;  %8619 = vst [vmem:[#allocation57_spill] sm:$0xff] %v4673_v53  ;;  %v267_v26 = vrot.slane %v4308_v9, 7 }
  0xf4   :  { %v4660_v5 = vsel %vm536_vm1, %v605_v21, %v607_v51  ;;  %v4663_v60 = vsel %vm536_vm1, %v604_v10, %v605_v21  ;;  %v268_v51 = vrot.slane %v4310_v12, 7 }
  0xf5   :  { %8616 = vst [vmem:[#allocation54_spill] sm:$0xff] %v4660_v5  ;;  %8617 = vst [vmem:[#allocation55_spill] sm:$0xff] %v4663_v60  ;;  %922 = vrot.lane.b32.xlu1 %v4660_v5, %s4267_s0  ;;  %920 = vrot.lane.b32.xlu0 %v4663_v60, %s4267_s0  ;;  %v4680_v10 = vsel %vm215_vm0, 0.0, %v258_v25  ;;  %v4683_v5 = vsel %vm215_vm0, 0.0, %v264_v32  ;;  %v617_v60 = vrot.slane %v4673_v53, 1  ;;  %v270_v53 = vrot.slane %v4315_v16, 7 }
  0xf6   :  { %v84_v11 = vpop.trf.xlu0  ;;  %8620 = vst [vmem:[#allocation58_spill] sm:$0xff] %v4680_v10  ;;  %8621 = vst [vmem:[#allocation59_spill] sm:$0xff] %v4683_v5  ;;  %v609_v44 = vrot.slane %v4680_v10, 1  ;;  %v4700_v32 = vsel %vm215_vm0, %v267_v26, %v268_v51  ;;  %v4714_v10 = vpop.trf.xlu1 }
  0xf7   :  { %v259_v21 = vrot.slane %v84_v11, 7  ;;  %v4697_v11 = vsel %vm215_vm0, 0.0, %v267_v26  ;;  %8625 = vst [vmem:[#allocation63_spill] sm:$0xff] %v4700_v32  ;;  %v4721_v26 = vsel %vm536_vm1, %v615_v43, %v617_v60  ;;  %v273_v60 = vrot.slane %v4336_v29, 7 }
  0xf8   :  { %8624 = vst [vmem:[#allocation62_spill] sm:$0xff] %v4697_v11  ;;  %8629 = vst [vmem:[#allocation67_spill] sm:$0xff] %v4721_v26 }
  0xf9   :  { %v4687_v31 = vsel %vm215_vm0, %v258_v25, %v259_v21  ;;  %v4690_v28 = vsel %vm215_vm0, %v259_v21, 0.0  ;;  %v4703_v25 = vsel %vm215_vm0, %v268_v51, 0.0  ;;  %v614_v21 = vrot.slane %v4683_v5, 1 }
  0xfa   :  { %8622 = vst [vmem:[#allocation60_spill] sm:$0xff] %v4687_v31  ;;  %8623 = vst [vmem:[#allocation61_spill] sm:$0xff] %v4690_v28  ;;  %v612_v9 = vrot.slane %v4690_v28, 1  ;;  %v610_v12 = vrot.slane %v4687_v31, 1  ;;  %v271_v28 = vrot.slane %v4325_v23, 7  ;;  %v622_v16 = vrot.slane %v4703_v25, 1 }
  0xfb   :  { %8626 = vst [vmem:[#allocation64_spill] sm:$0xff] %v4703_v25  ;;  %v4725_v23 = vsel %vm536_vm1, %v614_v21, %v615_v43  ;;  %v620_v51 = vrot.slane %v4700_v32, 1  ;;  %v4745_v21 = vpop.trf.xlu1  ;;  %v4753_v29 = vsel %vm215_vm0, 0.0, %v273_v60 }
  0xfc   :  { %v4709_v31 = vsel %vm536_vm1, %v610_v12, %v612_v9  ;;  %v4712_v7 = vsel %vm536_vm1, %v609_v44, %v610_v12  ;;  %8630 = vst [vmem:[#allocation68_spill] sm:$0xff] %v4725_v23  ;;  %v619_v44 = vrot.slane %v4697_v11, 1  ;;  %v4730_v9 = vsel %vm215_vm0, 0.0, %v270_v53  ;;  %8635 = vst [vmem:[#allocation73_spill] sm:$0xff] %v4753_v29 }
  0xfd   :  { %8627 = vst [vmem:[#allocation65_spill] sm:$0xff] %v4709_v31  ;;  %8628 = vst [vmem:[#allocation66_spill] sm:$0xff] %v4712_v7  ;;  %926 = vrot.lane.b32.xlu1 %v4709_v31, %s4267_s0  ;;  %924 = vrot.lane.b32.xlu0 %v4712_v7, %s4267_s0  ;;  %v4733_v12 = vsel %vm215_vm0, %v270_v53, %v271_v28  ;;  %v4736_v31 = vsel %vm215_vm0, %v271_v28, 0.0  ;;  %v274_v7 = vrot.slane %v4351_v38, 7  ;;  %v624_v25 = vrot.slane %v4730_v9, 1 }
  0xfe   :  { %8631 = vst [vmem:[#allocation69_spill] sm:$0xff] %v4730_v9  ;;  %8632 = vst [vmem:[#allocation70_spill] sm:$0xff] %v4733_v12  ;;  %v627_v43 = vrot.slane %v4736_v31, 1  ;;  %v4748_v53 = vsel %vm536_vm1, %v620_v51, %v622_v16  ;;  %v625_v28 = vrot.slane %v4733_v12, 1  ;;  %v276_v38 = vrot.slane %v4371_v49, 7 }
  0xff   :  { %8633 = vst [vmem:[#allocation71_spill] sm:$0xff] %v4736_v31  ;;  %8634 = vst [vmem:[#allocation72_spill] sm:$0xff] %v4748_v53  ;;  %v4761_v31 = vsel %vm215_vm0, %v273_v60, %v274_v7  ;;  %v4764_v16 = vsel %vm215_vm0, %v274_v7, 0.0 }
 0x100   :  { %8637 = vst [vmem:[#allocation75_spill] sm:$0xff] %v4761_v31  ;;  %8638 = vst [vmem:[#allocation76_spill] sm:$0xff] %v4764_v16  ;;  %v4771_v12 = vsel %vm536_vm1, %v625_v28, %v627_v43  ;;  %v4774_v49 = vsel %vm536_vm1, %v624_v25, %v625_v28  ;;  %v630_v60 = vrot.slane %v4761_v31, 1  ;;  %v279_v43 = vrot.slane %v4416_v8, 7  ;;  %v4790_v28 = vpop.trf.xlu1 }
 0x101   :  { %930 = vrot.lane.b32.xlu1 %v4721_v26, %s4267_s0  ;;  %928 = vrot.lane.b32.xlu0 %v4725_v23, %s4267_s0  ;;  %v277_v26 = vrot.slane %v4392_v59, 7  ;;  %v4758_v23 = vsel %vm536_vm1, %v619_v44, %v620_v51  ;;  %8639 = vst [vmem:[#allocation77_spill] sm:$0xff] %v4771_v12  ;;  %8640 = vst [vmem:[#allocation78_spill] sm:$0xff] %v4774_v49  ;;  %v629_v59 = vrot.slane %v4753_v29, 1  ;;  %v632_v51 = vrot.slane %v4764_v16, 1 }
 0x102   :  { %8636 = vst [vmem:[#allocation74_spill] sm:$0xff] %v4758_v23  ;;  %v280_v25 = vrot.slane %v4431_v22, 7  ;;  %v283_v16 = vrot.slane %v4467_v57, 7 }
 0x103   :  { %v4779_v44 = vsel %vm215_vm0, %v276_v38, %v277_v26  ;;  %v4782_v7 = vsel %vm215_vm0, %v277_v26, 0.0  ;;  %v4801_v8 = vsel %vm536_vm1, %v630_v60, %v632_v51  ;;  %v4804_v22 = vsel %vm536_vm1, %v629_v59, %v630_v60 }
 0x104   :  { %8641 = vst [vmem:[#allocation79_spill] sm:$0xff] %v4779_v44  ;;  %8642 = vst [vmem:[#allocation80_spill] sm:$0xff] %v4782_v7  ;;  %v637_v26 = vrot.slane %v4782_v7, 1  ;;  %v4827_v51 = vsel %vm215_vm0, %v283_v16, 0.0  ;;  %v4829_v60 = vpop.trf.xlu1 }
 0x105   :  { %934 = vrot.lane.b32.xlu1 %v4748_v53, %s4267_s0  ;;  %932 = vrot.lane.b32.xlu0 %v4758_v23, %s4267_s0  ;;  %v4786_v53 = vsel %vm215_vm0, 0.0, %v276_v38  ;;  %v282_v23 = vrot.slane %v4455_v47, 7  ;;  %v635_v38 = vrot.slane %v4779_v44, 1  ;;  %8644 = vst [vmem:[#allocation82_spill] sm:$0xff] %v4801_v8  ;;  %8645 = vst [vmem:[#allocation83_spill] sm:$0xff] %v4804_v22  ;;  %v4814_v47 = vsel %vm215_vm0, %v280_v25, 0.0 }
 0x106   :  { %8643 = vst [vmem:[#allocation81_spill] sm:$0xff] %v4786_v53  ;;  %v634_v31 = vrot.slane %v4786_v53, 1  ;;  %8648 = vst [vmem:[#allocation86_spill] sm:$0xff] %v4814_v47  ;;  %v286_v44 = vrot.slane %v4493_v37, 7 }
 0x107   :  { %v4821_v57 = vsel %vm215_vm0, 0.0, %v282_v23  ;;  %v4824_v59 = vsel %vm215_vm0, %v282_v23, %v283_v16  ;;  %8651 = vst [vmem:[#allocation89_spill] sm:$0xff] %v4827_v51  ;;  %v285_v23 = vrot.slane %v4481_v15, 7  ;;  %v647_v16 = vrot.slane %v4827_v51, 1 }
 0x108   :  { %8649 = vst [vmem:[#allocation87_spill] sm:$0xff] %v4821_v57  ;;  %8650 = vst [vmem:[#allocation88_spill] sm:$0xff] %v4824_v59  ;;  %v4864_v51 = vsel %vm215_vm0, %v286_v44, 0.0 }
 0x109   :  { %938 = vrot.lane.b32.xlu1 %v4771_v12, %s4267_s0  ;;  %936 = vrot.lane.b32.xlu0 %v4774_v49, %s4267_s0  ;;  %v4808_v12 = vsel %vm215_vm0, 0.0, %v279_v43  ;;  %v4811_v49 = vsel %vm215_vm0, %v279_v43, %v280_v25  ;;  %v4832_v43 = vsel %vm536_vm1, %v635_v38, %v637_v26  ;;  %v642_v25 = vrot.slane %v4814_v47, 1 }
 0x10a   :  { %8646 = vst [vmem:[#allocation84_spill] sm:$0xff] %v4808_v12  ;;  %8647 = vst [vmem:[#allocation85_spill] sm:$0xff] %v4811_v49  ;;  %v639_v7 = vrot.slane %v4808_v12, 1  ;;  %v645_v26 = vrot.slane %v4824_v59, 1  ;;  %v289_v47 = vrot.slane %v4522_v50, 7  ;;  %v4866_v59 = vpop.trf.xlu1 }
 0x10b   :  { %8652 = vst [vmem:[#allocation90_spill] sm:$0xff] %v4832_v43  ;;  %8658 = vst [vmem:[#allocation96_spill] sm:$0xff] %v4866_v59 }
 0x10c   :  { %v4873_v50 = vsel %vm536_vm1, %v645_v26, %v647_v16 }
 0x10d   :  { %942 = vrot.lane.b32.xlu1 %v4801_v8, %s4267_s0  ;;  %940 = vrot.lane.b32.xlu0 %v4804_v22, %s4267_s0  ;;  %v4836_v8 = vsel %vm536_vm1, %v634_v31, %v635_v38  ;;  %v640_v22 = vrot.slane %v4811_v49, 1  ;;  %v644_v31 = vrot.slane %v4821_v57, 1  ;;  %v288_v38 = vrot.slane %v4507_v13, 7  ;;  %8659 = vst [vmem:[#allocation97_spill] sm:$0xff] %v4873_v50 }
 0x10e   :  { %8653 = vst [vmem:[#allocation91_spill] sm:$0xff] %v4836_v8 }
 0x10f   :  { %v4852_v15 = vsel %vm536_vm1, %v640_v22, %v642_v25  ;;  %v4855_v37 = vsel %vm536_vm1, %v639_v7, %v640_v22  ;;  %v4876_v13 = vsel %vm536_vm1, %v644_v31, %v645_v26  ;;  %v4879_v7 = vsel %vm215_vm0, 0.0, %v288_v38 }
 0x110   :  { %8654 = vst [vmem:[#allocation92_spill] sm:$0xff] %v4852_v15  ;;  %8655 = vst [vmem:[#allocation93_spill] sm:$0xff] %v4855_v37  ;;  %v291_v22 = vrot.slane %v4543_v39, 7  ;;  %v292_v25 = vrot.slane %v4557_v0, 7  ;;  %v654_v39 = vrot.slane %v4879_v7, 1 }
 0x111   :  { %946 = vrot.lane.b32.xlu1 %v4832_v43, %s4267_s0  ;;  %944 = vrot.lane.b32.xlu0 %v4836_v8, %s4267_s0  ;;  %v4858_v43 = vsel %vm215_vm0, 0.0, %v285_v23  ;;  %v4861_v8 = vsel %vm215_vm0, %v285_v23, %v286_v44  ;;  %8660 = vst [vmem:[#allocation98_spill] sm:$0xff] %v4876_v13  ;;  %8661 = vst [vmem:[#allocation99_spill] sm:$0xff] %v4879_v7  ;;  %v4882_v44 = vsel %vm215_vm0, %v289_v47, 0.0  ;;  %v652_v23 = vrot.slane %v4864_v51, 1 }
 0x112   :  { %8656 = vst [vmem:[#allocation94_spill] sm:$0xff] %v4858_v43  ;;  %8657 = vst [vmem:[#allocation95_spill] sm:$0xff] %v4861_v8  ;;  %v650_v16 = vrot.slane %v4861_v8, 1  ;;  %v649_v26 = vrot.slane %v4858_v43, 1  ;;  %v657_v31 = vrot.slane %v4882_v44, 1  ;;  %v4899_v0 = vsel %vm215_vm0, %v291_v22, %v292_v25 }
 0x113   :  { %8662 = vst [vmem:[#allocation100_spill] sm:$0xff] %v4882_v44  ;;  %8664 = vst [vmem:[#allocation102_spill] sm:$0xff] %v4899_v0 }
 0x114   :  { %v4913_v44 = vsel %vm536_vm1, %v650_v16, %v652_v23  ;;  %v4916_v7 = vsel %vm536_vm1, %v649_v26, %v650_v16 }
 0x115   :  { %950 = vrot.lane.b32.xlu1 %v4852_v15, %s4267_s0  ;;  %948 = vrot.lane.b32.xlu0 %v4855_v37, %s4267_s0  ;;  %v4888_v15 = vsel %vm215_vm0, %v288_v38, %v289_v47  ;;  %v4902_v47 = vsel %vm215_vm0, %v292_v25, 0.0  ;;  %v294_v38 = vrot.slane %v4578_v61, 7  ;;  %v4905_v37 = vpop.trf.xlu1  ;;  %8668 = vst [vmem:[#allocation106_spill] sm:$0xff] %v4913_v44  ;;  %8669 = vst [vmem:[#allocation107_spill] sm:$0xff] %v4916_v7  ;;  %v660_v25 = vrot.slane %v4899_v0, 1 }
 0x116   :  { %8663 = vst [vmem:[#allocation101_spill] sm:$0xff] %v4888_v15  ;;  %8665 = vst [vmem:[#allocation103_spill] sm:$0xff] %v4902_v47  ;;  %v655_v59 = vrot.slane %v4888_v15, 1  ;;  %v662_v61 = vrot.slane %v4902_v47, 1 }
 0x117   :  { %8666 = vst [vmem:[#allocation104_spill] sm:$0xff] %v4905_v37  ;;  %v298_v37 = vrot.slane %v4631_v20, 7 }
 0x118   :  { %v4931_v23 = vsel %vm536_vm1, %v654_v39, %v655_v59 }
 0x119   :  { %954 = vrot.lane.b32.xlu1 %v4873_v50, %s4267_s0  ;;  %952 = vrot.lane.b32.xlu0 %v4876_v13, %s4267_s0  ;;  %v4909_v50 = vsel %vm215_vm0, 0.0, %v291_v22  ;;  %v295_v13 = vrot.slane %v4596_v40, 7  ;;  %v4925_v22 = vsel %vm215_vm0, 0.0, %v294_v38  ;;  %v4928_v40 = vsel %vm536_vm1, %v655_v59, %v657_v31  ;;  %8672 = vst [vmem:[#allocation110_spill] sm:$0xff] %v4931_v23  ;;  %v4942_v47 = vpop.permute.xlu1 %868 }
 0x11a   :  { %8667 = vst [vmem:[#allocation105_spill] sm:$0xff] %v4909_v50  ;;  %8670 = vst [vmem:[#allocation108_spill] sm:$0xff] %v4925_v22  ;;  %v659_v16 = vrot.slane %v4909_v50, 1  ;;  %v4949_v59 = vsel %vm536_vm1, %v660_v25, %v662_v61  ;;  %v664_v20 = vrot.slane %v4925_v22, 1  ;;  %v300_v61 = vrot.slane %v4647_v18, 7 }
 0x11b   :  { %8671 = vst [vmem:[#allocation109_spill] sm:$0xff] %v4928_v40  ;;  %v4935_v26 = vsel %vm215_vm0, %v294_v38, %v295_v13  ;;  %8674 = vst [vmem:[#allocation112_spill] sm:$0xff] %v4942_v47  ;;  %v4964_v47 = vsel %vm215_vm0, %v298_v37, 0.0 }
 0x11c   :  { %8673 = vst [vmem:[#allocation111_spill] sm:$0xff] %v4935_v26  ;;  %8675 = vst [vmem:[#allocation113_spill] sm:$0xff] %v4949_v59 }
 0x11d   :  { %958 = vrot.lane.b32.xlu1 %v4913_v44, %s4267_s0  ;;  %956 = vrot.lane.b32.xlu0 %v4916_v7, %s4267_s0  ;;  %v4938_v44 = vsel %vm215_vm0, %v295_v13, 0.0  ;;  %v297_v7 = vrot.slane %v4613_v6, 7  ;;  %v4953_v13 = vsel %vm536_vm1, %v659_v16, %v660_v25  ;;  %v665_v6 = vrot.slane %v4935_v26, 1  ;;  %8679 = vst [vmem:[#allocation117_spill] sm:$0xff] %v4964_v47  ;;  %v4973_v16 = vpop.trf.xlu0 }
 0x11e   :  { %v667_v31 = vrot.slane %v4938_v44, 1  ;;  %8676 = vst [vmem:[#allocation114_spill] sm:$0xff] %v4953_v13  ;;  %v672_v25 = vrot.slane %v4964_v47, 1  ;;  %8680 = vst [vmem:[#allocation118_spill] sm:$0xff] %v4973_v16 }
 0x11f   :  { %v4958_v39 = vsel %vm215_vm0, 0.0, %v297_v7  ;;  %v4961_v38 = vsel %vm215_vm0, %v297_v7, %v298_v37  ;;  %v4988_v47 = vsel %vm536_vm1, %v664_v20, %v665_v6 }
 0x120   :  { %8677 = vst [vmem:[#allocation115_spill] sm:$0xff] %v4958_v39  ;;  %8678 = vst [vmem:[#allocation116_spill] sm:$0xff] %v4961_v38  ;;  %v4978_v7 = vsel %vm536_vm1, %v665_v6, %v667_v31  ;;  %v670_v37 = vrot.slane %v4961_v38, 1  ;;  %v669_v18 = vrot.slane %v4958_v39, 1 }
 0x121   :  { %962 = vrot.lane.b32.xlu1 %v4928_v40, %s4267_s0  ;;  %960 = vrot.lane.b32.xlu0 %v4931_v23, %s4267_s0  ;;  %v301_v40 = vrot.slane %v4677_v36, 7  ;;  %v4975_v23 = vpop.permute.xlu1 %870  ;;  %8682 = vst [vmem:[#allocation120_spill] sm:$0xff] %v4978_v7  ;;  %v4983_v36 = vsel %vm215_vm0, 0.0, %v300_v61  ;;  %8684 = vst [vmem:[#allocation122_spill] sm:$0xff] %v4988_v47 }
 0x122   :  { %8681 = vst [vmem:[#allocation119_spill] sm:$0xff] %v4975_v23  ;;  %8683 = vst [vmem:[#allocation121_spill] sm:$0xff] %v4983_v36  ;;  %v5001_v23 = vsel %vm536_vm1, %v670_v37, %v672_v25  ;;  %v306_v25 = vrot.slane %v4790_v28, 7 }
 0x123   :  { %v4991_v16 = vsel %vm215_vm0, %v300_v61, %v301_v40  ;;  %v4994_v31 = vsel %vm215_vm0, %v301_v40, 0.0  ;;  %8687 = vst [vmem:[#allocation125_spill] sm:$0xff] %v5001_v23 }
 0x124   :  { %8685 = vst [vmem:[#allocation123_spill] sm:$0xff] %v4991_v16  ;;  %8686 = vst [vmem:[#allocation124_spill] sm:$0xff] %v4994_v31  ;;  %v677_v6 = vrot.slane %v4994_v31, 1  ;;  %v675_v61 = vrot.slane %v4991_v16, 1 }
 0x125   :  { %966 = vrot.lane.b32.xlu1 %v4949_v59, %s4267_s0  ;;  %964 = vrot.lane.b32.xlu0 %v4953_v13, %s4267_s0  ;;  %v303_v59 = vrot.slane %v4714_v10, 7  ;;  %v304_v13 = vrot.slane %v4745_v21, 7  ;;  %v5004_v10 = vsel %vm536_vm1, %v669_v18, %v670_v37  ;;  %v674_v21 = vrot.slane %v4983_v36, 1  ;;  %v5020_v18 = vpop.trf.xlu0 }
 0x126   :  { %8688 = vst [vmem:[#allocation126_spill] sm:$0xff] %v5004_v10  ;;  %v307_v37 = vrot.slane %v4829_v60, 7  ;;  %8692 = vst [vmem:[#allocation130_spill] sm:$0xff] %v5020_v18 }
 0x127   :  { %v5009_v20 = vsel %vm215_vm0, %v303_v59, %v304_v13  ;;  %v5012_v40 = vsel %vm215_vm0, %v304_v13, 0.0  ;;  %v5034_v28 = vsel %vm536_vm1, %v674_v21, %v675_v61 }
 0x128   :  { %8689 = vst [vmem:[#allocation127_spill] sm:$0xff] %v5009_v20  ;;  %8690 = vst [vmem:[#allocation128_spill] sm:$0xff] %v5012_v40  ;;  %v682_v13 = vrot.slane %v5012_v40, 1  ;;  %v680_v31 = vrot.slane %v5009_v20, 1 }
 0x129   :  { %970 = vrot.lane.b32.xlu1 %v4978_v7, %s4267_s0  ;;  %968 = vrot.lane.b32.xlu0 %v4988_v47, %s4267_s0  ;;  %v5016_v7 = vsel %vm215_vm0, 0.0, %v303_v59  ;;  %v5022_v47 = vpop.permute.xlu1 %872  ;;  %v5031_v59 = vsel %vm536_vm1, %v675_v61, %v677_v6  ;;  %8695 = vst [vmem:[#allocation133_spill] sm:$0xff] %v5034_v28  ;;  %v5050_v6 = vpop.permute.xlu0 %866 }
 0x12a   :  { %8691 = vst [vmem:[#allocation129_spill] sm:$0xff] %v5016_v7  ;;  %8693 = vst [vmem:[#allocation131_spill] sm:$0xff] %v5022_v47  ;;  %v679_v60 = vrot.slane %v5016_v7, 1  ;;  %v5038_v47 = vsel %vm215_vm0, 0.0, %v306_v25  ;;  %v5055_v61 = vsel %vm536_vm1, %v680_v31, %v682_v13 }
 0x12b   :  { %8694 = vst [vmem:[#allocation132_spill] sm:$0xff] %v5031_v59  ;;  %8696 = vst [vmem:[#allocation134_spill] sm:$0xff] %v5038_v47  ;;  %v684_v40 = vrot.slane %v5038_v47, 1 }
 0x12c   :  { %8698 = vst [vmem:[#allocation136_spill] sm:$0xff] %v5050_v6  ;;  %8700 = vst [vmem:[#allocation138_spill] sm:$0xff] %v5055_v61  ;;  %v693_v6 = vrot.slane %v4313_v14, 2 }
 0x12d   :  { %974 = vrot.lane.b32.xlu1 %v5001_v23, %s4267_s0  ;;  %972 = vrot.lane.b32.xlu0 %v5004_v10, %s4267_s0  ;;  %v5041_v23 = vsel %vm215_vm0, %v306_v25, %v307_v37  ;;  %v5044_v10 = vsel %vm215_vm0, %v307_v37, 0.0  ;;  %v5052_v21 = vpop.permute.xlu1 %874  ;;  %v5059_v25 = vsel %vm536_vm1, %v679_v60, %v680_v31  ;;  %v5074_v31 = vpop.permute.xlu0 %876 }
 0x12e   :  { %8697 = vst [vmem:[#allocation135_spill] sm:$0xff] %v5041_v23  ;;  %8699 = vst [vmem:[#allocation137_spill] sm:$0xff] %v5052_v21  ;;  %v687_v18 = vrot.slane %v5044_v10, 1  ;;  %v685_v37 = vrot.slane %v5041_v23, 1 }
 0x12f   :  { %8701 = vst [vmem:[#allocation139_spill] sm:$0xff] %v5059_v25  ;;  %8704 = vst [vmem:[#allocation142_spill] sm:$0xff] %v5074_v31  ;;  %v698_v31 = vrot.slane %v4332_v27, 2 }
 0x130   :  { %v5068_v21 = vsel %vm536_vm1, %v685_v37, %v687_v18  ;;  %v5071_v13 = vsel %vm536_vm1, %v684_v40, %v685_v37  ;;  %v692_v18 = vrot.slane %v4318_v17, 2  ;;  %v695_v40 = vrot.slane %v4322_v19, 2 }
 0x131   :  { %978 = vrot.lane.b32.xlu1 %v5031_v59, %s4267_s0  ;;  %976 = vrot.lane.b32.xlu0 %v5034_v28, %s4267_s0  ;;  %8702 = vst [vmem:[#allocation140_spill] sm:$0xff] %v5068_v21  ;;  %8703 = vst [vmem:[#allocation141_spill] sm:$0xff] %v5071_v13  ;;  %v5076_v60 = vpop.permute.xlu1 %878  ;;  %v700_v19 = vrot.slane %v4346_v34, 2 }
 0x132   :  { %8705 = vst [vmem:[#allocation143_spill] sm:$0xff] %v5076_v60  ;;  %v5088_v37 = vsel %vm689_vm2, %v692_v18, %v693_v6  ;;  %v697_v60 = vrot.slane %v4339_v30, 2 }
 0x133   :  { %8708 = vst [vmem:[#allocation145_spill] sm:$0xff] %v5088_v37 }
 0x134   :  { %v5102_v18 = vsel %vm689_vm2, %v697_v60, %v698_v31  ;;  %v5118_v60 = vsel %vm689_vm2, %v698_v31, %v700_v19  ;;  %v713_v19 = vrot.slane %v4405_v1, 2 }
 0x135   :  { %982 = vrot.lane.b32.xlu1 %v5055_v61, %s4267_s0  ;;  %980 = vrot.lane.b32.xlu0 %v5059_v25, %s4267_s0  ;;  %v8706_v61 = vmov 0.0   ;;  %8711 = vst [vmem:[#allocation148_spill] sm:$0xff] %v5102_v18  ;;  %v703_v25 = vrot.slane %v4358_v42, 2  ;;  %8714 = vst [vmem:[#allocation151_spill] sm:$0xff] %v5118_v60 }
 0x136   :  { %v5083_v59 = vrot.slane %v8706_v61, 2  ;;  %v5096_v61 = vpop.permute.xlu0 %880 }
 0x137   :  { %8709 = vst [vmem:[#allocation146_spill] sm:$0xff] %v5096_v61 }
 0x138   :  { %8707 = vst [vmem:[#allocation144_spill] sm:$0xff] %v5083_v59 }
 0x139   :  { %986 = vrot.lane.b32.xlu1 %v5068_v21, %s4267_s0  ;;  %984 = vrot.lane.b32.xlu0 %v5071_v13, %s4267_s0  ;;  %v5098_v21 = vpop.permute.xlu1 %882  ;;  %v5105_v13 = vsel %vm689_vm2, %v693_v6, %v695_v40  ;;  %v708_v6 = vrot.slane %v4376_v52, 2 }
 0x13a   :  { %8710 = vst [vmem:[#allocation147_spill] sm:$0xff] %v5098_v21  ;;  %8712 = vst [vmem:[#allocation149_spill] sm:$0xff] %v5105_v13  ;;  %v705_v21 = vrot.slane %v4364_v45, 2  ;;  %v5121_v40 = vpop.permute.xlu0 %884  ;;  %v707_v45 = vrot.slane %v4390_v56, 2 }
 0x13b   :  { %8715 = vst [vmem:[#allocation152_spill] sm:$0xff] %v5121_v40 }
 0x13c   :  { %v5135_v31 = vsel %vm689_vm2, %v703_v25, %v705_v21 }
 0x13d   :  { %1051 = vrot.lane.b32.xlu1 %v5088_v37, %s4269_s16  ;;  %1049 = vrot.lane.b32.xlu0 %v5083_v59, %s4269_s16  ;;  %v702_v59 = vrot.slane %v4369_v46, 2  ;;  %v5123_v61 = vpop.permute.xlu1 %886  ;;  %8718 = vst [vmem:[#allocation155_spill] sm:$0xff] %v5135_v31 }
 0x13e   :  { %8716 = vst [vmem:[#allocation153_spill] sm:$0xff] %v5123_v61  ;;  %v712_v61 = vrot.slane %v4414_v4, 2 }
 0x13f   :  { %v5115_v34 = vsel %vm689_vm2, %v702_v59, %v703_v25  ;;  %v710_v59 = vrot.slane %v4384_v54, 2  ;;  %v715_v54 = vrot.slane %v4408_v2, 2  ;;  %v718_v25 = vrot.slane %v4445_v33, 2 }
 0x140   :  { %8713 = vst [vmem:[#allocation150_spill] sm:$0xff] %v5115_v34  ;;  %v720_v2 = vrot.slane %v4448_v35, 2  ;;  %v725_v35 = vrot.slane %v4476_v63, 2  ;;  %v730_v63 = vrot.slane %v4502_v55, 2  ;;  %v8738_v55 = vld [vmem:[#allocation28_spill] sm:$0xff] }
 0x141   :  { %1055 = vrot.lane.b32.xlu1 %v5102_v18, %s4269_s16  ;;  %1053 = vrot.lane.b32.xlu0 %v5105_v13, %s4269_s16  ;;  %v5132_v13 = vsel %vm689_vm2, %v707_v45, %v708_v6  ;;  %v5143_v40 = vpop.permute.xlu1 %890  ;;  %v5149_v45 = vsel %vm689_vm2, %v712_v61, %v713_v19  ;;  %v5152_v21 = vsel %vm689_vm2, %v708_v6, %v710_v59  ;;  %v723_v59 = vrot.slane %v4473_v62, 2 }
 0x142   :  { %8717 = vst [vmem:[#allocation154_spill] sm:$0xff] %v5132_v13  ;;  %8719 = vst [vmem:[#allocation156_spill] sm:$0xff] %v5143_v40  ;;  %v717_v40 = vrot.slane %v4434_v24, 2  ;;  %v5169_v6 = vsel %vm689_vm2, %v713_v19, %v715_v54  ;;  %v5186_v19 = vsel %vm689_vm2, %v718_v25, %v720_v2  ;;  %v728_v54 = vrot.slane %v4499_v48, 2 }
 0x143   :  { %8721 = vst [vmem:[#allocation158_spill] sm:$0xff] %v5149_v45  ;;  %8722 = vst [vmem:[#allocation159_spill] sm:$0xff] %v5152_v21  ;;  %v733_v2 = vrot.slane %v4525_v3, 2 }
 0x144   :  { %v5166_v61 = vsel %vm689_vm2, %v717_v40, %v718_v25  ;;  %8726 = vst [vmem:[#allocation163_spill] sm:$0xff] %v5169_v6  ;;  %8730 = vst [vmem:[#allocation167_spill] sm:$0xff] %v5186_v19  ;;  %v5203_v25 = vsel %vm689_vm2, %v723_v59, %v725_v35  ;;  %v8741_v35 = vld [vmem:[#allocation32_spill] sm:$0xff] }
 0x145   :  { %1059 = vrot.lane.b32.xlu1 %v5115_v34, %s4269_s16  ;;  %1057 = vrot.lane.b32.xlu0 %v5118_v60, %s4269_s16  ;;  %v5145_v60 = vpop.permute.xlu0 %888  ;;  %8725 = vst [vmem:[#allocation162_spill] sm:$0xff] %v5166_v61  ;;  %8734 = vst [vmem:[#allocation171_spill] sm:$0xff] %v5203_v25 }
 0x146   :  { %8720 = vst [vmem:[#allocation157_spill] sm:$0xff] %v5145_v60 }
 0x149   :  { %1063 = vrot.lane.b32.xlu1 %v5132_v13, %s4269_s16  ;;  %1061 = vrot.lane.b32.xlu0 %v5135_v31, %s4269_s16  ;;  %v5160_v31 = vpop.permute.xlu1 %894  ;;  %v5162_v60 = vpop.permute.xlu0 %892 }
 0x14a   :  { %8723 = vst [vmem:[#allocation160_spill] sm:$0xff] %v5160_v31  ;;  %8724 = vst [vmem:[#allocation161_spill] sm:$0xff] %v5162_v60  ;;  %v722_v31 = vrot.slane %v4470_v58, 2 }
 0x14c   :  { %v5183_v40 = vsel %vm689_vm2, %v722_v31, %v723_v59  ;;  %v5220_v59 = vsel %vm689_vm2, %v728_v54, %v730_v63  ;;  %v8748_v63 = vld [vmem:[#allocation37_spill] sm:$0xff] }
 0x14d   :  { %1067 = vrot.lane.b32.xlu1 %v5149_v45, %s4269_s16  ;;  %1065 = vrot.lane.b32.xlu0 %v5152_v21, %s4269_s16  ;;  %v5177_v21 = vpop.permute.xlu1 %898  ;;  %v5179_v60 = vpop.permute.xlu0 %896  ;;  %8729 = vst [vmem:[#allocation166_spill] sm:$0xff] %v5183_v40  ;;  %8740 = vst [vmem:[#allocation173_spill] sm:$0xff] %v5220_v59  ;;  %v738_v45 = vrot.slane %v8741_v35, 2  ;;  %v743_v34 = vrot.slane %v8748_v63, 2 }
 0x14e   :  { %8727 = vst [vmem:[#allocation164_spill] sm:$0xff] %v5177_v21  ;;  %8728 = vst [vmem:[#allocation165_spill] sm:$0xff] %v5179_v60  ;;  %v727_v21 = vrot.slane %v4496_v41, 2 }
 0x150   :  { %v5200_v31 = vsel %vm689_vm2, %v727_v21, %v728_v54  ;;  %v735_v21 = vrot.slane %v8738_v55, 2  ;;  %v8745_v55 = vld [vmem:[#allocation33_spill] sm:$0xff] }
 0x151   :  { %1071 = vrot.lane.b32.xlu1 %v5166_v61, %s4269_s16  ;;  %1069 = vrot.lane.b32.xlu0 %v5169_v6, %s4269_s16  ;;  %v5194_v6 = vpop.permute.xlu1 %902  ;;  %v5196_v60 = vpop.permute.xlu0 %900  ;;  %8733 = vst [vmem:[#allocation170_spill] sm:$0xff] %v5200_v31 }
 0x152   :  { %8731 = vst [vmem:[#allocation168_spill] sm:$0xff] %v5194_v6  ;;  %8732 = vst [vmem:[#allocation169_spill] sm:$0xff] %v5196_v60  ;;  %v5237_v54 = vsel %vm689_vm2, %v733_v2, %v735_v21  ;;  %v8755_v21 = vld [vmem:[#allocation42_spill] sm:$0xff] }
 0x153   :  { %8747 = vst [vmem:[#allocation175_spill] sm:$0xff] %v5237_v54  ;;  %v748_v37 = vrot.slane %v8755_v21, 2 }
 0x155   :  { %1075 = vrot.lane.b32.xlu1 %v5183_v40, %s4269_s16  ;;  %1073 = vrot.lane.b32.xlu0 %v5186_v19, %s4269_s16  ;;  %v8735_v19 = vld [vmem:[#allocation27_spill] sm:$0xff]  ;;  %v5211_v40 = vpop.permute.xlu1 %906  ;;  %v5213_v60 = vpop.permute.xlu0 %904 }
 0x156   :  { %v732_v6 = vrot.slane %v8735_v19, 2  ;;  %8736 = vst [vmem:[#allocation27_spill] sm:$0xff] %v5211_v40  ;;  %8737 = vst [vmem:[#allocation172_spill] sm:$0xff] %v5213_v60 }
 0x158   :  { %v5217_v61 = vsel %vm689_vm2, %v732_v6, %v733_v2  ;;  %v740_v6 = vrot.slane %v8745_v55, 2  ;;  %v8752_v55 = vld [vmem:[#allocation38_spill] sm:$0xff] }
 0x159   :  { %1079 = vrot.lane.b32.xlu1 %v5200_v31, %s4269_s16  ;;  %1077 = vrot.lane.b32.xlu0 %v5203_v25, %s4269_s16  ;;  %8739 = vst [vmem:[#allocation28_spill] sm:$0xff] %v5217_v61  ;;  %v8742_v25 = vld [vmem:[#allocation31_spill] sm:$0xff]  ;;  %v5228_v31 = vpop.permute.xlu1 %910  ;;  %v5230_v60 = vpop.permute.xlu0 %908 }
 0x15a   :  { %v737_v40 = vrot.slane %v8742_v25, 2  ;;  %8743 = vst [vmem:[#allocation31_spill] sm:$0xff] %v5228_v31  ;;  %8744 = vst [vmem:[#allocation174_spill] sm:$0xff] %v5230_v60  ;;  %v5254_v2 = vsel %vm689_vm2, %v738_v45, %v740_v6  ;;  %v8762_v6 = vld [vmem:[#allocation47_spill] sm:$0xff] }
 0x15b   :  { %8754 = vst [vmem:[#allocation178_spill] sm:$0xff] %v5254_v2  ;;  %v753_v21 = vrot.slane %v8762_v6, 2 }
 0x15c   :  { %v5234_v13 = vsel %vm689_vm2, %v737_v40, %v738_v45  ;;  %v745_v40 = vrot.slane %v8752_v55, 2  ;;  %v8759_v55 = vld [vmem:[#allocation43_spill] sm:$0xff] }
 0x15d   :  { %1083 = vrot.lane.b32.xlu1 %v5217_v61, %s4269_s16  ;;  %1081 = vrot.lane.b32.xlu0 %v5220_v59, %s4269_s16  ;;  %8746 = vst [vmem:[#allocation33_spill] sm:$0xff] %v5234_v13  ;;  %v8749_v59 = vld [vmem:[#allocation36_spill] sm:$0xff]  ;;  %v5245_v61 = vpop.permute.xlu1 %914  ;;  %v5247_v60 = vpop.permute.xlu0 %912 }
 0x15e   :  { %v742_v31 = vrot.slane %v8749_v59, 2  ;;  %8750 = vst [vmem:[#allocation176_spill] sm:$0xff] %v5245_v61  ;;  %8751 = vst [vmem:[#allocation177_spill] sm:$0xff] %v5247_v60  ;;  %v5271_v45 = vsel %vm689_vm2, %v743_v34, %v745_v40  ;;  %v8769_v40 = vld [vmem:[#allocation52_spill] sm:$0xff] }
 0x15f   :  { %8761 = vst [vmem:[#allocation181_spill] sm:$0xff] %v5271_v45  ;;  %v758_v6 = vrot.slane %v8769_v40, 2 }
 0x160   :  { %v5251_v18 = vsel %vm689_vm2, %v742_v31, %v743_v34  ;;  %v750_v31 = vrot.slane %v8759_v55, 2  ;;  %v8766_v55 = vld [vmem:[#allocation48_spill] sm:$0xff] }
 0x161   :  { %1087 = vrot.lane.b32.xlu1 %v5234_v13, %s4269_s16  ;;  %1085 = vrot.lane.b32.xlu0 %v5237_v54, %s4269_s16  ;;  %8753 = vst [vmem:[#allocation38_spill] sm:$0xff] %v5251_v18  ;;  %v8756_v54 = vld [vmem:[#allocation41_spill] sm:$0xff]  ;;  %v5262_v13 = vpop.permute.xlu1 %918  ;;  %v5264_v60 = vpop.permute.xlu0 %916 }
 0x162   :  { %v747_v61 = vrot.slane %v8756_v54, 2  ;;  %8757 = vst [vmem:[#allocation179_spill] sm:$0xff] %v5262_v13  ;;  %8758 = vst [vmem:[#allocation180_spill] sm:$0xff] %v5264_v60  ;;  %v5288_v34 = vsel %vm689_vm2, %v748_v37, %v750_v31  ;;  %v8776_v31 = vld [vmem:[#allocation60_spill] sm:$0xff] }
 0x163   :  { %8768 = vst [vmem:[#allocation184_spill] sm:$0xff] %v5288_v34  ;;  %v763_v40 = vrot.slane %v8776_v31, 2 }
 0x164   :  { %v5268_v28 = vsel %vm689_vm2, %v747_v61, %v748_v37  ;;  %v755_v61 = vrot.slane %v8766_v55, 2  ;;  %v8773_v55 = vld [vmem:[#allocation53_spill] sm:$0xff] }
 0x165   :  { %1091 = vrot.lane.b32.xlu1 %v5251_v18, %s4269_s16  ;;  %1089 = vrot.lane.b32.xlu0 %v5254_v2, %s4269_s16  ;;  %8760 = vst [vmem:[#allocation43_spill] sm:$0xff] %v5268_v28  ;;  %v8763_v2 = vld [vmem:[#allocation46_spill] sm:$0xff] }
 0x166   :  { %v752_v13 = vrot.slane %v8763_v2, 2  ;;  %v5305_v37 = vsel %vm689_vm2, %v753_v21, %v755_v61 }
 0x167   :  { %v5279_v18 = vpop.permute.xlu1 %922  ;;  %v5281_v60 = vpop.permute.xlu0 %920  ;;  %8775 = vst [vmem:[#allocation187_spill] sm:$0xff] %v5305_v37 }
 0x168   :  { %8764 = vst [vmem:[#allocation182_spill] sm:$0xff] %v5279_v18  ;;  %8765 = vst [vmem:[#allocation183_spill] sm:$0xff] %v5281_v60  ;;  %v5285_v63 = vsel %vm689_vm2, %v752_v13, %v753_v21  ;;  %v760_v13 = vrot.slane %v8773_v55, 2 }
 0x169   :  { %1095 = vrot.lane.b32.xlu1 %v5268_v28, %s4269_s16  ;;  %1093 = vrot.lane.b32.xlu0 %v5271_v45, %s4269_s16  ;;  %8767 = vst [vmem:[#allocation48_spill] sm:$0xff] %v5285_v63  ;;  %v8770_v45 = vld [vmem:[#allocation51_spill] sm:$0xff] }
 0x16a   :  { %v757_v18 = vrot.slane %v8770_v45, 2  ;;  %v5323_v61 = vsel %vm689_vm2, %v758_v6, %v760_v13  ;;  %v772_v13 = vrot.slane %v4697_v11, 2 }
 0x16b   :  { %8782 = vst [vmem:[#allocation190_spill] sm:$0xff] %v5323_v61 }
 0x16c   :  { %v5302_v2 = vsel %vm689_vm2, %v757_v18, %v758_v6  ;;  %v8780_v18 = vld [vmem:[#allocation61_spill] sm:$0xff] }
 0x16d   :  { %1099 = vrot.lane.b32.xlu1 %v5285_v63, %s4269_s16  ;;  %1097 = vrot.lane.b32.xlu0 %v5288_v34, %s4269_s16  ;;  %8774 = vst [vmem:[#allocation53_spill] sm:$0xff] %v5302_v2  ;;  %v8777_v34 = vld [vmem:[#allocation58_spill] sm:$0xff]  ;;  %v765_v45 = vrot.slane %v8780_v18, 2  ;;  %v773_v18 = vrot.slane %v4700_v32, 2 }
 0x16f   :  { %v5296_v28 = vpop.permute.xlu1 %926  ;;  %v5298_v60 = vpop.permute.xlu0 %924  ;;  %v5339_v6 = vsel %vm689_vm2, %v763_v40, %v765_v45 }
 0x170   :  { %8771 = vst [vmem:[#allocation185_spill] sm:$0xff] %v5296_v28  ;;  %8772 = vst [vmem:[#allocation186_spill] sm:$0xff] %v5298_v60  ;;  %v762_v28 = vrot.slane %v8777_v34, 2  ;;  %v767_v60 = vrot.slane %v4683_v5, 2 }
 0x171   :  { %1103 = vrot.lane.b32.xlu1 %v5302_v2, %s4269_s16  ;;  %1101 = vrot.lane.b32.xlu0 %v5305_v37, %s4269_s16  ;;  %v8783_v2 = vld [vmem:[#allocation56_spill] sm:$0xff]  ;;  %v8784_v37 = vld [vmem:[#allocation57_spill] sm:$0xff]  ;;  %8788 = vst [vmem:[#allocation193_spill] sm:$0xff] %v5339_v6 }
 0x172   :  { %v5320_v21 = vsel %vm689_vm2, %v762_v28, %v763_v40  ;;  %v768_v31 = vrot.slane %v8783_v2, 2  ;;  %v5356_v40 = vsel %vm689_vm2, %v772_v13, %v773_v18  ;;  %v782_v13 = vrot.slane %v4753_v29, 2 }
 0x173   :  { %v5314_v63 = vpop.permute.xlu1 %930  ;;  %v5316_v55 = vpop.permute.xlu0 %928  ;;  %8781 = vst [vmem:[#allocation61_spill] sm:$0xff] %v5320_v21 }
 0x174   :  { %8778 = vst [vmem:[#allocation188_spill] sm:$0xff] %v5314_v63  ;;  %8779 = vst [vmem:[#allocation189_spill] sm:$0xff] %v5316_v55  ;;  %v770_v63 = vrot.slane %v8784_v37, 2  ;;  %v5336_v28 = vsel %vm689_vm2, %v767_v60, %v768_v31 }
 0x175   :  { %1107 = vrot.lane.b32.xlu1 %v5320_v21, %s4269_s16  ;;  %1105 = vrot.lane.b32.xlu0 %v5323_v61, %s4269_s16  ;;  %8787 = vst [vmem:[#allocation192_spill] sm:$0xff] %v5336_v28  ;;  %v777_v61 = vrot.slane %v4730_v9, 2  ;;  %v8794_v21 = vld [vmem:[#allocation70_spill] sm:$0xff] }
 0x176   :  { %v5352_v60 = vsel %vm689_vm2, %v768_v31, %v770_v63  ;;  %v778_v32 = vrot.slane %v8794_v21, 2 }
 0x177   :  { %v5331_v5 = vpop.permute.xlu1 %934  ;;  %v5333_v55 = vpop.permute.xlu0 %932  ;;  %8791 = vst [vmem:[#allocation196_spill] sm:$0xff] %v5352_v60 }
 0x178   :  { %8785 = vst [vmem:[#allocation57_spill] sm:$0xff] %v5331_v5  ;;  %8786 = vst [vmem:[#allocation191_spill] sm:$0xff] %v5333_v55  ;;  %v8792_v55 = vld [vmem:[#allocation64_spill] sm:$0xff]  ;;  %v5370_v31 = vsel %vm689_vm2, %v777_v61, %v778_v32 }
 0x179   :  { %1111 = vrot.lane.b32.xlu1 %v5336_v28, %s4269_s16  ;;  %1109 = vrot.lane.b32.xlu0 %v5339_v6, %s4269_s16  ;;  %v775_v45 = vrot.slane %v8792_v55, 2  ;;  %8793 = vst [vmem:[#allocation64_spill] sm:$0xff] %v5356_v40  ;;  %8798 = vst [vmem:[#allocation198_spill] sm:$0xff] %v5370_v31  ;;  %v8800_v6 = vld [vmem:[#allocation75_spill] sm:$0xff] }
 0x17a   :  { %v783_v21 = vrot.slane %v8800_v6, 2 }
 0x17b   :  { %v5347_v37 = vpop.permute.xlu1 %938  ;;  %v5349_v5 = vpop.permute.xlu0 %936  ;;  %v5373_v55 = vsel %vm689_vm2, %v773_v18, %v775_v45 }
 0x17c   :  { %8789 = vst [vmem:[#allocation194_spill] sm:$0xff] %v5347_v37  ;;  %8790 = vst [vmem:[#allocation195_spill] sm:$0xff] %v5349_v5  ;;  %v8795_v37 = vld [vmem:[#allocation71_spill] sm:$0xff]  ;;  %v5390_v45 = vsel %vm689_vm2, %v782_v13, %v783_v21  ;;  %v792_v13 = vrot.slane %v4808_v12, 2 }
 0x17d   :  { %1115 = vrot.lane.b32.xlu1 %v5356_v40, %s4269_s16  ;;  %1113 = vrot.lane.b32.xlu0 %v5352_v60, %s4269_s16  ;;  %v780_v5 = vrot.slane %v8795_v37, 2  ;;  %8799 = vst [vmem:[#allocation199_spill] sm:$0xff] %v5373_v55  ;;  %v787_v60 = vrot.slane %v4786_v53, 2  ;;  %v8806_v40 = vld [vmem:[#allocation79_spill] sm:$0xff] }
 0x17e   :  { %v788_v6 = vrot.slane %v8806_v40, 2 }
 0x17f   :  { %v5365_v28 = vpop.permute.xlu1 %942  ;;  %v5367_v63 = vpop.permute.xlu0 %940  ;;  %v5386_v61 = vsel %vm689_vm2, %v778_v32, %v780_v5 }
 0x180   :  { %8796 = vst [vmem:[#allocation71_spill] sm:$0xff] %v5365_v28  ;;  %8797 = vst [vmem:[#allocation197_spill] sm:$0xff] %v5367_v63  ;;  %v8804_v63 = vld [vmem:[#allocation76_spill] sm:$0xff]  ;;  %v5404_v32 = vsel %vm689_vm2, %v787_v60, %v788_v6 }
 0x181   :  { %1119 = vrot.lane.b32.xlu1 %v5370_v31, %s4269_s16  ;;  %1117 = vrot.lane.b32.xlu0 %v5373_v55, %s4269_s16  ;;  %8803 = vst [vmem:[#allocation202_spill] sm:$0xff] %v5386_v61  ;;  %v785_v18 = vrot.slane %v8804_v63, 2  ;;  %8805 = vst [vmem:[#allocation76_spill] sm:$0xff] %v5390_v45  ;;  %v793_v31 = vrot.slane %v4811_v49, 2 }
 0x182   :  { %8810 = vst [vmem:[#allocation204_spill] sm:$0xff] %v5404_v32 }
 0x183   :  { %v5381_v37 = vpop.permute.xlu1 %946  ;;  %v5383_v28 = vpop.permute.xlu0 %944  ;;  %v5407_v63 = vsel %vm689_vm2, %v783_v21, %v785_v18  ;;  %v5424_v18 = vsel %vm689_vm2, %v792_v13, %v793_v31  ;;  %v802_v13 = vrot.slane %v4858_v43, 2 }
 0x184   :  { %8801 = vst [vmem:[#allocation200_spill] sm:$0xff] %v5381_v37  ;;  %8802 = vst [vmem:[#allocation201_spill] sm:$0xff] %v5383_v28  ;;  %v8807_v37 = vld [vmem:[#allocation80_spill] sm:$0xff] }
 0x185   :  { %1123 = vrot.lane.b32.xlu1 %v5390_v45, %s4269_s16  ;;  %1121 = vrot.lane.b32.xlu0 %v5386_v61, %s4269_s16  ;;  %v790_v28 = vrot.slane %v8807_v37, 2  ;;  %8811 = vst [vmem:[#allocation205_spill] sm:$0xff] %v5407_v63  ;;  %v797_v61 = vrot.slane %v4821_v57, 2  ;;  %v8817_v45 = vld [vmem:[#allocation88_spill] sm:$0xff] }
 0x186   :  { %v798_v49 = vrot.slane %v8817_v45, 2 }
 0x187   :  { %v5399_v55 = vpop.permute.xlu1 %950  ;;  %v5401_v5 = vpop.permute.xlu0 %948  ;;  %v5420_v60 = vsel %vm689_vm2, %v788_v6, %v790_v28 }
 0x188   :  { %8808 = vst [vmem:[#allocation80_spill] sm:$0xff] %v5399_v55  ;;  %8809 = vst [vmem:[#allocation203_spill] sm:$0xff] %v5401_v5  ;;  %v8815_v5 = vld [vmem:[#allocation86_spill] sm:$0xff]  ;;  %v5438_v6 = vsel %vm689_vm2, %v797_v61, %v798_v49 }
 0x189   :  { %1127 = vrot.lane.b32.xlu1 %v5404_v32, %s4269_s16  ;;  %1125 = vrot.lane.b32.xlu0 %v5407_v63, %s4269_s16  ;;  %8814 = vst [vmem:[#allocation208_spill] sm:$0xff] %v5420_v60  ;;  %v795_v21 = vrot.slane %v8815_v5, 2  ;;  %8816 = vst [vmem:[#allocation86_spill] sm:$0xff] %v5424_v18  ;;  %v803_v32 = vrot.slane %v4861_v8, 2 }
 0x18a   :  { %8821 = vst [vmem:[#allocation210_spill] sm:$0xff] %v5438_v6 }
 0x18b   :  { %v5415_v37 = vpop.permute.xlu1 %954  ;;  %v5417_v55 = vpop.permute.xlu0 %952  ;;  %v5441_v5 = vsel %vm689_vm2, %v793_v31, %v795_v21  ;;  %v805_v31 = vrot.slane %v4864_v51, 2  ;;  %v5458_v21 = vsel %vm689_vm2, %v802_v13, %v803_v32  ;;  %v812_v13 = vrot.slane %v4909_v50, 2 }
 0x18c   :  { %8812 = vst [vmem:[#allocation206_spill] sm:$0xff] %v5415_v37  ;;  %8813 = vst [vmem:[#allocation207_spill] sm:$0xff] %v5417_v55  ;;  %v8818_v37 = vld [vmem:[#allocation89_spill] sm:$0xff] }
 0x18d   :  { %1131 = vrot.lane.b32.xlu1 %v5424_v18, %s4269_s16  ;;  %1129 = vrot.lane.b32.xlu0 %v5420_v60, %s4269_s16  ;;  %v800_v55 = vrot.slane %v8818_v37, 2  ;;  %8822 = vst [vmem:[#allocation211_spill] sm:$0xff] %v5441_v5  ;;  %8826 = vst [vmem:[#allocation215_spill] sm:$0xff] %v5458_v21  ;;  %v808_v18 = vrot.slane %v4888_v15, 2 }
 0x18f   :  { %v5433_v63 = vpop.permute.xlu1 %958  ;;  %v5435_v28 = vpop.permute.xlu0 %956  ;;  %v5454_v61 = vsel %vm689_vm2, %v798_v49, %v800_v55  ;;  %v5475_v55 = vsel %vm689_vm2, %v803_v32, %v805_v31 }
 0x190   :  { %8819 = vst [vmem:[#allocation89_spill] sm:$0xff] %v5433_v63  ;;  %8820 = vst [vmem:[#allocation209_spill] sm:$0xff] %v5435_v28  ;;  %v8827_v28 = vld [vmem:[#allocation99_spill] sm:$0xff] }
 0x191   :  { %1135 = vrot.lane.b32.xlu1 %v5438_v6, %s4269_s16  ;;  %1133 = vrot.lane.b32.xlu0 %v5441_v5, %s4269_s16  ;;  %8825 = vst [vmem:[#allocation214_spill] sm:$0xff] %v5454_v61  ;;  %v807_v60 = vrot.slane %v8827_v28, 2  ;;  %8832 = vst [vmem:[#allocation218_spill] sm:$0xff] %v5475_v55  ;;  %v813_v6 = vrot.slane %v4899_v0, 2 }
 0x193   :  { %v5449_v37 = vpop.permute.xlu1 %962  ;;  %v5451_v63 = vpop.permute.xlu0 %960  ;;  %v5472_v51 = vsel %vm689_vm2, %v807_v60, %v808_v18  ;;  %v5492_v31 = vsel %vm689_vm2, %v812_v13, %v813_v6  ;;  %v822_v13 = vrot.slane %v4958_v39, 2 }
 0x194   :  { %8823 = vst [vmem:[#allocation212_spill] sm:$0xff] %v5449_v37  ;;  %8824 = vst [vmem:[#allocation213_spill] sm:$0xff] %v5451_v63  ;;  %v8828_v37 = vld [vmem:[#allocation100_spill] sm:$0xff] }
 0x195   :  { %1139 = vrot.lane.b32.xlu1 %v5458_v21, %s4269_s16  ;;  %1137 = vrot.lane.b32.xlu0 %v5454_v61, %s4269_s16  ;;  %v810_v63 = vrot.slane %v8828_v37, 2  ;;  %8831 = vst [vmem:[#allocation217_spill] sm:$0xff] %v5472_v51  ;;  %v817_v61 = vrot.slane %v4925_v22, 2  ;;  %v818_v21 = vrot.slane %v4935_v26, 2 }
 0x197   :  { %v5467_v5 = vpop.permute.xlu1 %966  ;;  %v5469_v49 = vpop.permute.xlu0 %964  ;;  %v5488_v60 = vsel %vm689_vm2, %v808_v18, %v810_v63  ;;  %v5506_v18 = vsel %vm689_vm2, %v817_v61, %v818_v21 }
 0x198   :  { %8829 = vst [vmem:[#allocation100_spill] sm:$0xff] %v5467_v5  ;;  %8830 = vst [vmem:[#allocation216_spill] sm:$0xff] %v5469_v49  ;;  %v8836_v49 = vld [vmem:[#allocation103_spill] sm:$0xff] }
 0x199   :  { %1143 = vrot.lane.b32.xlu1 %v5472_v51, %s4269_s16  ;;  %1141 = vrot.lane.b32.xlu0 %v5475_v55, %s4269_s16  ;;  %8835 = vst [vmem:[#allocation221_spill] sm:$0xff] %v5488_v60  ;;  %v815_v32 = vrot.slane %v8836_v49, 2  ;;  %8837 = vst [vmem:[#allocation103_spill] sm:$0xff] %v5492_v31  ;;  %v823_v55 = vrot.slane %v4961_v38, 2 }
 0x19a   :  { %8840 = vst [vmem:[#allocation224_spill] sm:$0xff] %v5506_v18 }
 0x19b   :  { %v5483_v37 = vpop.permute.xlu1 %970  ;;  %v5485_v5 = vpop.permute.xlu0 %968  ;;  %v5509_v49 = vsel %vm689_vm2, %v813_v6, %v815_v32  ;;  %v5526_v32 = vsel %vm689_vm2, %v822_v13, %v823_v55  ;;  %v832_v13 = vrot.slane %v5016_v7, 2 }
 0x19c   :  { %8833 = vst [vmem:[#allocation219_spill] sm:$0xff] %v5483_v37  ;;  %8834 = vst [vmem:[#allocation220_spill] sm:$0xff] %v5485_v5  ;;  %v820_v5 = vrot.slane %v4938_v44, 2 }
 0x19d   :  { %1147 = vrot.lane.b32.xlu1 %v5492_v31, %s4269_s16  ;;  %1145 = vrot.lane.b32.xlu0 %v5488_v60, %s4269_s16  ;;  %8841 = vst [vmem:[#allocation225_spill] sm:$0xff] %v5509_v49  ;;  %v827_v60 = vrot.slane %v4983_v36, 2  ;;  %v828_v31 = vrot.slane %v4991_v16, 2 }
 0x19e   :  { %v5522_v61 = vsel %vm689_vm2, %v818_v21, %v820_v5 }
 0x19f   :  { %v5501_v37 = vpop.permute.xlu1 %974  ;;  %v5503_v63 = vpop.permute.xlu0 %972  ;;  %8844 = vst [vmem:[#allocation228_spill] sm:$0xff] %v5522_v61  ;;  %v5540_v21 = vsel %vm689_vm2, %v827_v60, %v828_v31 }
 0x1a0   :  { %8838 = vst [vmem:[#allocation222_spill] sm:$0xff] %v5501_v37  ;;  %8839 = vst [vmem:[#allocation223_spill] sm:$0xff] %v5503_v63  ;;  %v8845_v63 = vld [vmem:[#allocation117_spill] sm:$0xff] }
 0x1a1   :  { %1151 = vrot.lane.b32.xlu1 %v5506_v18, %s4269_s16  ;;  %1149 = vrot.lane.b32.xlu0 %v5509_v49, %s4269_s16  ;;  %v825_v6 = vrot.slane %v8845_v63, 2  ;;  %8846 = vst [vmem:[#allocation117_spill] sm:$0xff] %v5526_v32  ;;  %8850 = vst [vmem:[#allocation230_spill] sm:$0xff] %v5540_v21  ;;  %v833_v18 = vrot.slane %v5009_v20, 2 }
 0x1a3   :  { %v5517_v44 = vpop.permute.xlu1 %978  ;;  %v5519_v37 = vpop.permute.xlu0 %976  ;;  %v5543_v63 = vsel %vm689_vm2, %v823_v55, %v825_v6  ;;  %v5560_v6 = vsel %vm689_vm2, %v832_v13, %v833_v18 }
 0x1a4   :  { %8842 = vst [vmem:[#allocation226_spill] sm:$0xff] %v5517_v44  ;;  %8843 = vst [vmem:[#allocation227_spill] sm:$0xff] %v5519_v37  ;;  %v8847_v44 = vld [vmem:[#allocation124_spill] sm:$0xff] }
 0x1a5   :  { %1155 = vrot.lane.b32.xlu1 %v5526_v32, %s4269_s16  ;;  %1153 = vrot.lane.b32.xlu0 %v5522_v61, %s4269_s16  ;;  %v830_v37 = vrot.slane %v8847_v44, 2  ;;  %8851 = vst [vmem:[#allocation231_spill] sm:$0xff] %v5543_v63  ;;  %v837_v61 = vrot.slane %v5038_v47, 2  ;;  %v838_v32 = vrot.slane %v5041_v23, 2 }
 0x1a7   :  { %v5535_v49 = vpop.permute.xlu1 %982  ;;  %v5537_v5 = vpop.permute.xlu0 %980  ;;  %v5556_v60 = vsel %vm689_vm2, %v828_v31, %v830_v37  ;;  %v840_v37 = vrot.slane %v5044_v10, 2  ;;  %v5574_v31 = vsel %vm689_vm2, %v837_v61, %v838_v32 }
 0x1a8   :  { %8848 = vst [vmem:[#allocation124_spill] sm:$0xff] %v5535_v49  ;;  %8849 = vst [vmem:[#allocation229_spill] sm:$0xff] %v5537_v5  ;;  %v8855_v5 = vld [vmem:[#allocation128_spill] sm:$0xff] }
 0x1a9   :  { %1159 = vrot.lane.b32.xlu1 %v5540_v21, %s4269_s16  ;;  %1157 = vrot.lane.b32.xlu0 %v5543_v63, %s4269_s16  ;;  %8854 = vst [vmem:[#allocation234_spill] sm:$0xff] %v5556_v60  ;;  %v835_v55 = vrot.slane %v8855_v5, 2  ;;  %8856 = vst [vmem:[#allocation128_spill] sm:$0xff] %v5560_v6 }
 0x1aa   :  { %8859 = vst [vmem:[#allocation237_spill] sm:$0xff] %v5574_v31 }
 0x1ab   :  { %v5551_v44 = vpop.permute.xlu1 %986  ;;  %v5553_v49 = vpop.permute.xlu0 %984  ;;  %v5577_v5 = vsel %vm689_vm2, %v833_v18, %v835_v55 }
 0x1ac   :  { %8852 = vst [vmem:[#allocation232_spill] sm:$0xff] %v5551_v44  ;;  %8853 = vst [vmem:[#allocation233_spill] sm:$0xff] %v5553_v49 }
 0x1ad   :  { %1163 = vrot.lane.b32.xlu1 %v5560_v6, %s4269_s16  ;;  %1161 = vrot.lane.b32.xlu0 %v5556_v60, %s4269_s16  ;;  %8860 = vst [vmem:[#allocation238_spill] sm:$0xff] %v5577_v5 }
 0x1af   :  { %v5568_v44 = vpop.permute.xlu1 %1051  ;;  %v5570_v49 = vpop.permute.xlu0 %1049 }
 0x1b0   :  { %8857 = vst [vmem:[#allocation235_spill] sm:$0xff] %v5568_v44  ;;  %8858 = vst [vmem:[#allocation236_spill] sm:$0xff] %v5570_v49  ;;  %v5588_v44 = vsel %vm689_vm2, %v838_v32, %v840_v37 }
 0x1b1   :  { %1167 = vrot.lane.b32.xlu1 %v5574_v31, %s4269_s16  ;;  %1165 = vrot.lane.b32.xlu0 %v5577_v5, %s4269_s16  ;;  %8863 = vst [vmem:[#allocation241_spill] sm:$0xff] %v5588_v44 }
 0x1b3   :  { %v5583_v13 = vpop.permute.xlu1 %1055  ;;  %v5585_v60 = vpop.permute.xlu0 %1053 }
 0x1b4   :  { %8861 = vst [vmem:[#allocation239_spill] sm:$0xff] %v5583_v13  ;;  %8862 = vst [vmem:[#allocation240_spill] sm:$0xff] %v5585_v60  ;;  %v8890_v13 = vld [vmem:[#allocation42_spill] sm:$0xff] }
 0x1b5   :  { %1232 = vrot.lane.b32.xlu1 %v4318_v17, %s4270_s17  ;;  %1169 = vrot.lane.b32.xlu0 %v5588_v44, %s4269_s16 }
 0x1b7   :  { %v5594_v10 = vpop.permute.xlu1 %1059  ;;  %v5596_v18 = vpop.permute.xlu0 %1057 }
 0x1b8   :  { %8864 = vst [vmem:[#allocation242_spill] sm:$0xff] %v5594_v10  ;;  %8865 = vst [vmem:[#allocation243_spill] sm:$0xff] %v5596_v18 }
 0x1b9   :  { %1236 = vrot.lane.b32.xlu1 %v4339_v30, %s4270_s17  ;;  %1234 = vrot.lane.b32.xlu0 %v4313_v14, %s4270_s17  ;;  %v8894_v14 = vld [vmem:[#allocation47_spill] sm:$0xff] }
 0x1bb   :  { %v5602_v61 = vpop.permute.xlu1 %1063  ;;  %v5604_v32 = vpop.permute.xlu0 %1061 }
 0x1bc   :  { %8866 = vst [vmem:[#allocation244_spill] sm:$0xff] %v5602_v61  ;;  %8867 = vst [vmem:[#allocation245_spill] sm:$0xff] %v5604_v32 }
 0x1bd   :  { %1240 = vrot.lane.b32.xlu1 %v4369_v46, %s4270_s17  ;;  %1238 = vrot.lane.b32.xlu0 %v4332_v27, %s4270_s17 }
 0x1bf   :  { %v5610_v55 = vpop.permute.xlu1 %1067  ;;  %v5612_v37 = vpop.permute.xlu0 %1065 }
 0x1c0   :  { %8868 = vst [vmem:[#allocation246_spill] sm:$0xff] %v5610_v55  ;;  %8869 = vst [vmem:[#allocation247_spill] sm:$0xff] %v5612_v37 }
 0x1c1   :  { %1244 = vrot.lane.b32.xlu1 %v4390_v56, %s4270_s17  ;;  %1242 = vrot.lane.b32.xlu0 %v4358_v42, %s4270_s17 }
 0x1c3   :  { %v5618_v10 = vpop.permute.xlu1 %1071  ;;  %v5620_v61 = vpop.permute.xlu0 %1069 }
 0x1c4   :  { %8870 = vst [vmem:[#allocation248_spill] sm:$0xff] %v5618_v10  ;;  %8871 = vst [vmem:[#allocation249_spill] sm:$0xff] %v5620_v61 }
 0x1c5   :  { %1248 = vrot.lane.b32.xlu1 %v4414_v4, %s4270_s17  ;;  %1246 = vrot.lane.b32.xlu0 %v4376_v52, %s4270_s17 }
 0x1c7   :  { %v5626_v32 = vpop.permute.xlu1 %1075  ;;  %v5628_v55 = vpop.permute.xlu0 %1073 }
 0x1c8   :  { %8872 = vst [vmem:[#allocation250_spill] sm:$0xff] %v5626_v32  ;;  %8873 = vst [vmem:[#allocation251_spill] sm:$0xff] %v5628_v55 }
 0x1c9   :  { %1252 = vrot.lane.b32.xlu1 %v4434_v24, %s4270_s17  ;;  %1250 = vrot.lane.b32.xlu0 %v4405_v1, %s4270_s17 }
 0x1cb   :  { %v5634_v37 = vpop.permute.xlu1 %1079  ;;  %v5636_v10 = vpop.permute.xlu0 %1077 }
 0x1cc   :  { %8874 = vst [vmem:[#allocation252_spill] sm:$0xff] %v5634_v37  ;;  %8875 = vst [vmem:[#allocation253_spill] sm:$0xff] %v5636_v10 }
 0x1cd   :  { %1256 = vrot.lane.b32.xlu1 %v4470_v58, %s4270_s17  ;;  %1254 = vrot.lane.b32.xlu0 %v4445_v33, %s4270_s17 }
 0x1cf   :  { %v5642_v61 = vpop.permute.xlu1 %1083  ;;  %v5644_v32 = vpop.permute.xlu0 %1081 }
 0x1d0   :  { %8876 = vst [vmem:[#allocation254_spill] sm:$0xff] %v5642_v61  ;;  %8877 = vst [vmem:[#allocation255_spill] sm:$0xff] %v5644_v32 }
 0x1d1   :  { %1260 = vrot.lane.b32.xlu1 %v4496_v41, %s4270_s17  ;;  %1258 = vrot.lane.b32.xlu0 %v4473_v62, %s4270_s17 }
 0x1d3   :  { %v5650_v55 = vpop.permute.xlu1 %1087  ;;  %v5652_v37 = vpop.permute.xlu0 %1085 }
 0x1d4   :  { %8878 = vst [vmem:[#allocation256_spill] sm:$0xff] %v5650_v55  ;;  %8879 = vst [vmem:[#allocation257_spill] sm:$0xff] %v5652_v37 }
 0x1d5   :  { %1264 = vrot.lane.b32.xlu1 %v8735_v19, %s4270_s17  ;;  %1262 = vrot.lane.b32.xlu0 %v4499_v48, %s4270_s17 }
 0x1d7   :  { %v5658_v10 = vpop.permute.xlu1 %1091  ;;  %v5660_v61 = vpop.permute.xlu0 %1089 }
 0x1d8   :  { %8880 = vst [vmem:[#allocation258_spill] sm:$0xff] %v5658_v10  ;;  %8881 = vst [vmem:[#allocation259_spill] sm:$0xff] %v5660_v61  ;;  %v8886_v61 = vld [vmem:[#allocation37_spill] sm:$0xff] }
 0x1d9   :  { %1268 = vrot.lane.b32.xlu1 %v8742_v25, %s4270_s17  ;;  %1266 = vrot.lane.b32.xlu0 %v4525_v3, %s4270_s17 }
 0x1db   :  { %v5666_v32 = vpop.permute.xlu1 %1095  ;;  %v5668_v55 = vpop.permute.xlu0 %1093 }
 0x1dc   :  { %8882 = vst [vmem:[#allocation260_spill] sm:$0xff] %v5666_v32  ;;  %8883 = vst [vmem:[#allocation261_spill] sm:$0xff] %v5668_v55  ;;  %v8889_v55 = vld [vmem:[#allocation46_spill] sm:$0xff] }
 0x1dd   :  { %1272 = vrot.lane.b32.xlu1 %v8749_v59, %s4270_s17  ;;  %1270 = vrot.lane.b32.xlu0 %v8741_v35, %s4270_s17 }
 0x1df   :  { %v5674_v37 = vpop.permute.xlu1 %1099  ;;  %v5676_v10 = vpop.permute.xlu0 %1097 }
 0x1e0   :  { %8884 = vst [vmem:[#allocation262_spill] sm:$0xff] %v5674_v37  ;;  %8885 = vst [vmem:[#allocation263_spill] sm:$0xff] %v5676_v10  ;;  %v8893_v10 = vld [vmem:[#allocation51_spill] sm:$0xff] }
 0x1e1   :  { %1276 = vrot.lane.b32.xlu1 %v8756_v54, %s4270_s17  ;;  %1274 = vrot.lane.b32.xlu0 %v8886_v61, %s4270_s17 }
 0x1e3   :  { %v5682_v18 = vpop.permute.xlu1 %1103  ;;  %v5684_v32 = vpop.permute.xlu0 %1101 }
 0x1e4   :  { %8887 = vst [vmem:[#allocation264_spill] sm:$0xff] %v5682_v18  ;;  %8888 = vst [vmem:[#allocation265_spill] sm:$0xff] %v5684_v32  ;;  %v8897_v32 = vld [vmem:[#allocation118_spill] sm:$0xff] }
 0x1e5   :  { %1280 = vrot.lane.b32.xlu1 %v8889_v55, %s4270_s17  ;;  %1278 = vrot.lane.b32.xlu0 %v8890_v13, %s4270_s17  ;;  %v261_v49 = vrot.slane %v8897_v32, 7  ;;  %v8898_v13 = vld [vmem:[#allocation52_spill] sm:$0xff] }
 0x1e6   :  { %v8902_v32 = vld [vmem:[#allocation60_spill] sm:$0xff] }
 0x1e7   :  { %v5690_v60 = vpop.permute.xlu1 %1107  ;;  %v5692_v37 = vpop.permute.xlu0 %1105 }
 0x1e8   :  { %8891 = vst [vmem:[#allocation266_spill] sm:$0xff] %v5690_v60  ;;  %8892 = vst [vmem:[#allocation267_spill] sm:$0xff] %v5692_v37 }
 0x1e9   :  { %1284 = vrot.lane.b32.xlu1 %v8893_v10, %s4270_s17  ;;  %1282 = vrot.lane.b32.xlu0 %v8894_v14, %s4270_s17  ;;  %v8901_v10 = vld [vmem:[#allocation130_spill] sm:$0xff]  ;;  %v5713_v14 = vsel %vm215_vm0, 0.0, %v261_v49 }
 0x1ea   :  { %v8501_v55 = vrot.slane %v8901_v10, 7 }
 0x1eb   :  { %v5698_v17 = vpop.permute.xlu1 %1111  ;;  %v5700_v18 = vpop.permute.xlu0 %1109 }
 0x1ec   :  { %8895 = vst [vmem:[#allocation268_spill] sm:$0xff] %v5698_v17  ;;  %8896 = vst [vmem:[#allocation269_spill] sm:$0xff] %v5700_v18 }
 0x1ed   :  { %1288 = vrot.lane.b32.xlu1 %v8777_v34, %s4270_s17  ;;  %1286 = vrot.lane.b32.xlu0 %v8898_v13, %s4270_s17 }
 0x1ef   :  { %v5707_v60 = vpop.permute.xlu1 %1115  ;;  %v5709_v37 = vpop.permute.xlu0 %1113 }
 0x1f0   :  { %8899 = vst [vmem:[#allocation118_spill] sm:$0xff] %v5707_v60  ;;  %8900 = vst [vmem:[#allocation270_spill] sm:$0xff] %v5709_v37  ;;  %v5726_v60 = vsel %vm215_vm0, %v261_v49, %v8501_v55  ;;  %v8905_v37 = vld [vmem:[#allocation59_spill] sm:$0xff] }
 0x1f1   :  { %1292 = vrot.lane.b32.xlu1 %v5713_v14, %s4270_s17  ;;  %1290 = vrot.lane.b32.xlu0 %v8902_v32, %s4270_s17  ;;  %v8910_v55 = vld [vmem:[#allocation63_spill] sm:$0xff] }
 0x1f3   :  { %v5719_v18 = vpop.permute.xlu1 %1119  ;;  %v5721_v17 = vpop.permute.xlu0 %1117 }
 0x1f4   :  { %8903 = vst [vmem:[#allocation130_spill] sm:$0xff] %v5719_v18  ;;  %8904 = vst [vmem:[#allocation271_spill] sm:$0xff] %v5721_v17 }
 0x1f5   :  { %1296 = vrot.lane.b32.xlu1 %v8905_v37, %s4270_s17  ;;  %1294 = vrot.lane.b32.xlu0 %v5726_v60, %s4270_s17 }
 0x1f7   :  { %v5732_v13 = vpop.permute.xlu1 %1123  ;;  %v5734_v34 = vpop.permute.xlu0 %1121 }
 0x1f8   :  { %8906 = vst [vmem:[#allocation272_spill] sm:$0xff] %v5732_v13  ;;  %8907 = vst [vmem:[#allocation273_spill] sm:$0xff] %v5734_v34  ;;  %v8913_v34 = vld [vmem:[#allocation70_spill] sm:$0xff] }
 0x1f9   :  { %1300 = vrot.lane.b32.xlu1 %v4697_v11, %s4270_s17  ;;  %1298 = vrot.lane.b32.xlu0 %v8783_v2, %s4270_s17 }
 0x1fb   :  { %v5740_v18 = vpop.permute.xlu1 %1127  ;;  %v5742_v49 = vpop.permute.xlu0 %1125 }
 0x1fc   :  { %8908 = vst [vmem:[#allocation274_spill] sm:$0xff] %v5740_v18  ;;  %8909 = vst [vmem:[#allocation275_spill] sm:$0xff] %v5742_v49  ;;  %v8916_v49 = vld [vmem:[#allocation75_spill] sm:$0xff] }
 0x1fd   :  { %1304 = vrot.lane.b32.xlu1 %v4730_v9, %s4270_s17  ;;  %1302 = vrot.lane.b32.xlu0 %v8910_v55, %s4270_s17 }
 0x1ff   :  { %v5748_v17 = vpop.permute.xlu1 %1131  ;;  %v5750_v13 = vpop.permute.xlu0 %1129 }
 0x200   :  { %8911 = vst [vmem:[#allocation276_spill] sm:$0xff] %v5748_v17  ;;  %8912 = vst [vmem:[#allocation277_spill] sm:$0xff] %v5750_v13 }
 0x201   :  { %1308 = vrot.lane.b32.xlu1 %v4753_v29, %s4270_s17  ;;  %1306 = vrot.lane.b32.xlu0 %v8913_v34, %s4270_s17 }
 0x203   :  { %v5756_v2 = vpop.permute.xlu1 %1135  ;;  %v5758_v18 = vpop.permute.xlu0 %1133 }
 0x204   :  { %8914 = vst [vmem:[#allocation278_spill] sm:$0xff] %v5756_v2  ;;  %8915 = vst [vmem:[#allocation279_spill] sm:$0xff] %v5758_v18  ;;  %v8921_v18 = vld [vmem:[#allocation85_spill] sm:$0xff] }
 0x205   :  { %1312 = vrot.lane.b32.xlu1 %v4786_v53, %s4270_s17  ;;  %1310 = vrot.lane.b32.xlu0 %v8916_v49, %s4270_s17 }
 0x207   :  { %v5764_v37 = vpop.permute.xlu1 %1139  ;;  %v5766_v17 = vpop.permute.xlu0 %1137 }
 0x208   :  { %8917 = vst [vmem:[#allocation280_spill] sm:$0xff] %v5764_v37  ;;  %8918 = vst [vmem:[#allocation281_spill] sm:$0xff] %v5766_v17 }
 0x209   :  { %1316 = vrot.lane.b32.xlu1 %v4808_v12, %s4270_s17  ;;  %1314 = vrot.lane.b32.xlu0 %v8806_v40, %s4270_s17 }
 0x20b   :  { %v5772_v13 = vpop.permute.xlu1 %1143  ;;  %v5774_v2 = vpop.permute.xlu0 %1141 }
 0x20c   :  { %8919 = vst [vmem:[#allocation282_spill] sm:$0xff] %v5772_v13  ;;  %8920 = vst [vmem:[#allocation283_spill] sm:$0xff] %v5774_v2 }
 0x20d   :  { %1320 = vrot.lane.b32.xlu1 %v4821_v57, %s4270_s17  ;;  %1318 = vrot.lane.b32.xlu0 %v8921_v18, %s4270_s17 }
 0x20f   :  { %v5780_v53 = vpop.permute.xlu1 %1147  ;;  %v5782_v37 = vpop.permute.xlu0 %1145 }
 0x210   :  { %8922 = vst [vmem:[#allocation284_spill] sm:$0xff] %v5780_v53  ;;  %8923 = vst [vmem:[#allocation285_spill] sm:$0xff] %v5782_v37 }
 0x211   :  { %1324 = vrot.lane.b32.xlu1 %v4858_v43, %s4270_s17  ;;  %1322 = vrot.lane.b32.xlu0 %v8817_v45, %s4270_s17 }
 0x213   :  { %v5788_v17 = vpop.permute.xlu1 %1151  ;;  %v5790_v13 = vpop.permute.xlu0 %1149 }
 0x214   :  { %8924 = vst [vmem:[#allocation286_spill] sm:$0xff] %v5788_v17  ;;  %8925 = vst [vmem:[#allocation287_spill] sm:$0xff] %v5790_v13 }
 0x215   :  { %1328 = vrot.lane.b32.xlu1 %v8827_v28, %s4270_s17  ;;  %1326 = vrot.lane.b32.xlu0 %v4861_v8, %s4270_s17 }
 0x217   :  { %v5796_v2 = vpop.permute.xlu1 %1155  ;;  %v5798_v53 = vpop.permute.xlu0 %1153 }
 0x218   :  { %8926 = vst [vmem:[#allocation288_spill] sm:$0xff] %v5796_v2  ;;  %8927 = vst [vmem:[#allocation289_spill] sm:$0xff] %v5798_v53 }
 0x219   :  { %1332 = vrot.lane.b32.xlu1 %v4909_v50, %s4270_s17  ;;  %1330 = vrot.lane.b32.xlu0 %v4888_v15, %s4270_s17 }
 0x21b   :  { %v5804_v37 = vpop.permute.xlu1 %1159  ;;  %v5806_v17 = vpop.permute.xlu0 %1157 }
 0x21c   :  { %8928 = vst [vmem:[#allocation290_spill] sm:$0xff] %v5804_v37  ;;  %8929 = vst [vmem:[#allocation291_spill] sm:$0xff] %v5806_v17 }
 0x21d   :  { %1336 = vrot.lane.b32.xlu1 %v4925_v22, %s4270_s17  ;;  %1334 = vrot.lane.b32.xlu0 %v4899_v0, %s4270_s17  ;;  %v8946_v22 = vld [vmem:[#allocation10_spill] sm:$0xff]  ;;  %v8950_v0 = vld [vmem:[#allocation11_spill] sm:$0xff] }
 0x21f   :  { %v5812_v13 = vpop.permute.xlu1 %1163  ;;  %v5814_v2 = vpop.permute.xlu0 %1161 }
 0x220   :  { %8930 = vst [vmem:[#allocation292_spill] sm:$0xff] %v5812_v13  ;;  %8931 = vst [vmem:[#allocation293_spill] sm:$0xff] %v5814_v2 }
 0x221   :  { %1340 = vrot.lane.b32.xlu1 %v4958_v39, %s4270_s17  ;;  %1338 = vrot.lane.b32.xlu0 %v4935_v26, %s4270_s17 }
 0x223   :  { %v5820_v53 = vpop.permute.xlu1 %1167  ;;  %v5822_v37 = vpop.permute.xlu0 %1165 }
 0x224   :  { %8932 = vst [vmem:[#allocation294_spill] sm:$0xff] %v5820_v53  ;;  %8933 = vst [vmem:[#allocation295_spill] sm:$0xff] %v5822_v37  ;;  %v8938_v37 = vld [vmem:[#allocation96_spill] sm:$0xff] }
 0x225   :  { %1344 = vrot.lane.b32.xlu1 %v4983_v36, %s4270_s17  ;;  %1342 = vrot.lane.b32.xlu0 %v4961_v38, %s4270_s17  ;;  %v309_v39 = vrot.slane %v8938_v37, 7 }
 0x227   :  { %v5828_v17 = vpop.permute.xlu1 %1232  ;;  %v5830_v13 = vpop.permute.xlu0 %1169 }
 0x228   :  { %8934 = vst [vmem:[#allocation296_spill] sm:$0xff] %v5828_v17  ;;  %8935 = vst [vmem:[#allocation297_spill] sm:$0xff] %v5830_v13  ;;  %v8974_v17 = vld [vmem:[#allocation23_spill] sm:$0xff] }
 0x229   :  { %1348 = vrot.lane.b32.xlu1 %v5016_v7, %s4270_s17  ;;  %1346 = vrot.lane.b32.xlu0 %v4991_v16, %s4270_s17  ;;  %v8941_v7 = vld [vmem:[#allocation104_spill] sm:$0xff]  ;;  %v5851_v16 = vsel %vm215_vm0, 0.0, %v309_v39 }
 0x22a   :  { %v8530_v38 = vrot.slane %v8941_v7, 7  ;;  %8942 = vst [vmem:[#allocation104_spill] sm:$0xff] %v5851_v16 }
 0x22b   :  { %v5836_v2 = vpop.permute.xlu1 %1236  ;;  %v5838_v53 = vpop.permute.xlu0 %1234 }
 0x22c   :  { %8936 = vst [vmem:[#allocation298_spill] sm:$0xff] %v5836_v2  ;;  %8937 = vst [vmem:[#allocation299_spill] sm:$0xff] %v5838_v53  ;;  %v8970_v2 = vld [vmem:[#allocation21_spill] sm:$0xff] }
 0x22d   :  { %1352 = vrot.lane.b32.xlu1 %v5038_v47, %s4270_s17  ;;  %1350 = vrot.lane.b32.xlu0 %v5009_v20, %s4270_s17  ;;  %v5864_v20 = vsel %vm215_vm0, %v309_v39, %v8530_v38  ;;  %v8953_v38 = vld [vmem:[#allocation15_spill] sm:$0xff] }
 0x22e   :  { %8945 = vst [vmem:[#allocation303_spill] sm:$0xff] %v5864_v20 }
 0x22f   :  { %v5845_v36 = vpop.permute.xlu1 %1240  ;;  %v5847_v13 = vpop.permute.xlu0 %1238 }
 0x230   :  { %8939 = vst [vmem:[#allocation96_spill] sm:$0xff] %v5845_v36  ;;  %8940 = vst [vmem:[#allocation300_spill] sm:$0xff] %v5847_v13  ;;  %v8966_v36 = vld [vmem:[#allocation20_spill] sm:$0xff] }
 0x231   :  { %1356 = vrot.lane.b32.xlu1 %v5851_v16, %s4270_s17  ;;  %1354 = vrot.lane.b32.xlu0 %v5041_v23, %s4270_s17  ;;  %v8949_v23 = vld [vmem:[#allocation13_spill] sm:$0xff] }
 0x233   :  { %v5857_v37 = vpop.permute.xlu1 %1244  ;;  %v5859_v47 = vpop.permute.xlu0 %1242 }
 0x234   :  { %8943 = vst [vmem:[#allocation301_spill] sm:$0xff] %v5857_v37  ;;  %8944 = vst [vmem:[#allocation302_spill] sm:$0xff] %v5859_v47  ;;  %v8962_v37 = vld [vmem:[#allocation18_spill] sm:$0xff] }
 0x235   :  { %1424 = vrot.lane.b32.xlu1 %v8946_v22, %s4271_s18  ;;  %1358 = vrot.lane.b32.xlu0 %v5864_v20, %s4270_s17  ;;  %v8954_v22 = vld [vmem:[#allocation14_spill] sm:$0xff] }
 0x237   :  { %v5870_v26 = vpop.permute.xlu1 %1248  ;;  %v5872_v50 = vpop.permute.xlu0 %1246 }
 0x238   :  { %8947 = vst [vmem:[#allocation10_spill] sm:$0xff] %v5870_v26  ;;  %8948 = vst [vmem:[#allocation304_spill] sm:$0xff] %v5872_v50  ;;  %v8957_v26 = vld [vmem:[#allocation17_spill] sm:$0xff]  ;;  %v8958_v50 = vld [vmem:[#allocation16_spill] sm:$0xff] }
 0x239   :  { %1428 = vrot.lane.b32.xlu1 %v8949_v23, %s4271_s18  ;;  %1426 = vrot.lane.b32.xlu0 %v8950_v0, %s4271_s18 }
 0x23b   :  { %v5878_v28 = vpop.permute.xlu1 %1252  ;;  %v5880_v39 = vpop.permute.xlu0 %1250 }
 0x23c   :  { %8951 = vst [vmem:[#allocation13_spill] sm:$0xff] %v5878_v28  ;;  %8952 = vst [vmem:[#allocation11_spill] sm:$0xff] %v5880_v39  ;;  %v8961_v39 = vld [vmem:[#allocation19_spill] sm:$0xff] }
 0x23d   :  { %1432 = vrot.lane.b32.xlu1 %v8953_v38, %s4271_s18  ;;  %1430 = vrot.lane.b32.xlu0 %v8954_v22, %s4271_s18 }
 0x23f   :  { %v5886_v15 = vpop.permute.xlu1 %1256  ;;  %v5888_v8 = vpop.permute.xlu0 %1254 }
 0x240   :  { %8955 = vst [vmem:[#allocation15_spill] sm:$0xff] %v5886_v15  ;;  %8956 = vst [vmem:[#allocation14_spill] sm:$0xff] %v5888_v8  ;;  %v8965_v8 = vld [vmem:[#allocation22_spill] sm:$0xff] }
 0x241   :  { %1436 = vrot.lane.b32.xlu1 %v8957_v26, %s4271_s18  ;;  %1434 = vrot.lane.b32.xlu0 %v8958_v50, %s4271_s18 }
 0x243   :  { %v5894_v0 = vpop.permute.xlu1 %1260  ;;  %v5896_v28 = vpop.permute.xlu0 %1258 }
 0x244   :  { %8959 = vst [vmem:[#allocation16_spill] sm:$0xff] %v5894_v0  ;;  %8960 = vst [vmem:[#allocation305_spill] sm:$0xff] %v5896_v28  ;;  %v8969_v28 = vld [vmem:[#allocation24_spill] sm:$0xff] }
 0x245   :  { %1440 = vrot.lane.b32.xlu1 %v8961_v39, %s4271_s18  ;;  %1438 = vrot.lane.b32.xlu0 %v8962_v37, %s4271_s18  ;;  %v9092_v39 = vld [vmem:[#allocation159_spill] sm:$0xff] }
 0x247   :  { %v5902_v47 = vpop.permute.xlu1 %1264  ;;  %v5904_v15 = vpop.permute.xlu0 %1262 }
 0x248   :  { %8963 = vst [vmem:[#allocation306_spill] sm:$0xff] %v5902_v47  ;;  %8964 = vst [vmem:[#allocation307_spill] sm:$0xff] %v5904_v15  ;;  %v8973_v15 = vld [vmem:[#allocation26_spill] sm:$0xff] }
 0x249   :  { %1444 = vrot.lane.b32.xlu1 %v8965_v8, %s4271_s18  ;;  %1442 = vrot.lane.b32.xlu0 %v8966_v36, %s4271_s18 }
 0x24b   :  { %v5910_v13 = vpop.permute.xlu1 %1268  ;;  %v5912_v0 = vpop.permute.xlu0 %1266 }
 0x24c   :  { %8967 = vst [vmem:[#allocation308_spill] sm:$0xff] %v5910_v13  ;;  %8968 = vst [vmem:[#allocation309_spill] sm:$0xff] %v5912_v0  ;;  %v8977_v0 = vld [vmem:[#allocation30_spill] sm:$0xff] }
 0x24d   :  { %1448 = vrot.lane.b32.xlu1 %v8969_v28, %s4271_s18  ;;  %1446 = vrot.lane.b32.xlu0 %v8970_v2, %s4271_s18  ;;  %v8978_v28 = vld [vmem:[#allocation25_spill] sm:$0xff] }
 0x24f   :  { %v5918_v53 = vpop.permute.xlu1 %1272  ;;  %v5920_v47 = vpop.permute.xlu0 %1270 }
 0x250   :  { %8971 = vst [vmem:[#allocation310_spill] sm:$0xff] %v5918_v53  ;;  %8972 = vst [vmem:[#allocation311_spill] sm:$0xff] %v5920_v47  ;;  %v8981_v47 = vld [vmem:[#allocation35_spill] sm:$0xff] }
 0x251   :  { %1452 = vrot.lane.b32.xlu1 %v8973_v15, %s4271_s18  ;;  %1450 = vrot.lane.b32.xlu0 %v8974_v17, %s4271_s18  ;;  %v8982_v15 = vld [vmem:[#allocation29_spill] sm:$0xff] }
 0x253   :  { %v5926_v8 = vpop.permute.xlu1 %1276  ;;  %v5928_v13 = vpop.permute.xlu0 %1274 }
 0x254   :  { %8975 = vst [vmem:[#allocation312_spill] sm:$0xff] %v5926_v8  ;;  %8976 = vst [vmem:[#allocation313_spill] sm:$0xff] %v5928_v13  ;;  %v8985_v13 = vld [vmem:[#allocation40_spill] sm:$0xff] }
 0x255   :  { %1456 = vrot.lane.b32.xlu1 %v8977_v0, %s4271_s18  ;;  %1454 = vrot.lane.b32.xlu0 %v8978_v28, %s4271_s18  ;;  %v8986_v0 = vld [vmem:[#allocation34_spill] sm:$0xff] }
 0x257   :  { %v5934_v2 = vpop.permute.xlu1 %1280  ;;  %v5936_v53 = vpop.permute.xlu0 %1278 }
 0x258   :  { %8979 = vst [vmem:[#allocation314_spill] sm:$0xff] %v5934_v2  ;;  %8980 = vst [vmem:[#allocation315_spill] sm:$0xff] %v5936_v53  ;;  %v8989_v53 = vld [vmem:[#allocation45_spill] sm:$0xff] }
 0x259   :  { %1460 = vrot.lane.b32.xlu1 %v8981_v47, %s4271_s18  ;;  %1458 = vrot.lane.b32.xlu0 %v8982_v15, %s4271_s18  ;;  %v8990_v47 = vld [vmem:[#allocation39_spill] sm:$0xff] }
 0x25b   :  { %v5942_v17 = vpop.permute.xlu1 %1284  ;;  %v5944_v8 = vpop.permute.xlu0 %1282 }
 0x25c   :  { %8983 = vst [vmem:[#allocation316_spill] sm:$0xff] %v5942_v17  ;;  %8984 = vst [vmem:[#allocation317_spill] sm:$0xff] %v5944_v8  ;;  %v8993_v8 = vld [vmem:[#allocation50_spill] sm:$0xff] }
 0x25d   :  { %1464 = vrot.lane.b32.xlu1 %v8985_v13, %s4271_s18  ;;  %1462 = vrot.lane.b32.xlu0 %v8986_v0, %s4271_s18  ;;  %v8994_v13 = vld [vmem:[#allocation44_spill] sm:$0xff] }
 0x25f   :  { %v5950_v28 = vpop.permute.xlu1 %1288  ;;  %v5952_v2 = vpop.permute.xlu0 %1286 }
 0x260   :  { %8987 = vst [vmem:[#allocation318_spill] sm:$0xff] %v5950_v28  ;;  %8988 = vst [vmem:[#allocation319_spill] sm:$0xff] %v5952_v2  ;;  %v8997_v2 = vld [vmem:[#allocation55_spill] sm:$0xff] }
 0x261   :  { %1468 = vrot.lane.b32.xlu1 %v8989_v53, %s4271_s18  ;;  %1466 = vrot.lane.b32.xlu0 %v8990_v47, %s4271_s18  ;;  %v8998_v53 = vld [vmem:[#allocation49_spill] sm:$0xff] }
 0x263   :  { %v5958_v15 = vpop.permute.xlu1 %1292  ;;  %v5960_v17 = vpop.permute.xlu0 %1290 }
 0x264   :  { %8991 = vst [vmem:[#allocation320_spill] sm:$0xff] %v5958_v15  ;;  %8992 = vst [vmem:[#allocation321_spill] sm:$0xff] %v5960_v17  ;;  %v846_v17 = vrot.slane %v5713_v14, 1 }
 0x265   :  { %1472 = vrot.lane.b32.xlu1 %v8993_v8, %s4271_s18  ;;  %1470 = vrot.lane.b32.xlu0 %v8994_v13, %s4271_s18  ;;  %v847_v8 = vrot.slane %v5726_v60, 1  ;;  %v9001_v13 = vrot.slane %v8901_v10, 7 }
 0x267   :  { %v5966_v0 = vpop.permute.xlu1 %1296  ;;  %v5968_v28 = vpop.permute.xlu0 %1294  ;;  %v5995_v36 = vsel %vm536_vm1, %v846_v17, %v847_v8 }
 0x268   :  { %8995 = vst [vmem:[#allocation322_spill] sm:$0xff] %v5966_v0  ;;  %8996 = vst [vmem:[#allocation323_spill] sm:$0xff] %v5968_v28  ;;  %v5983_v0 = vsel %vm215_vm0, %v9001_v13, 0.0  ;;  %v9002_v28 = vld [vmem:[#allocation66_spill] sm:$0xff]  ;;  %v9007_v13 = vld [vmem:[#allocation65_spill] sm:$0xff] }
 0x269   :  { %1476 = vrot.lane.b32.xlu1 %v8997_v2, %s4271_s18  ;;  %1474 = vrot.lane.b32.xlu0 %v8998_v53, %s4271_s18  ;;  %v9003_v2 = vld [vmem:[#allocation54_spill] sm:$0xff]  ;;  %9006 = vst [vmem:[#allocation328_spill] sm:$0xff] %v5995_v36 }
 0x26b   :  { %v5974_v47 = vpop.permute.xlu1 %1300  ;;  %v5976_v15 = vpop.permute.xlu0 %1298 }
 0x26c   :  { %8999 = vst [vmem:[#allocation324_spill] sm:$0xff] %v5974_v47  ;;  %9000 = vst [vmem:[#allocation325_spill] sm:$0xff] %v5976_v15  ;;  %v849_v15 = vrot.slane %v5983_v0, 1 }
 0x26d   :  { %1480 = vrot.lane.b32.xlu1 %v9002_v28, %s4271_s18  ;;  %1478 = vrot.lane.b32.xlu0 %v9003_v2, %s4271_s18 }
 0x26e   :  { %v6006_v2 = vsel %vm536_vm1, %v847_v8, %v849_v15  ;;  %v9018_v15 = vld [vmem:[#allocation78_spill] sm:$0xff] }
 0x26f   :  { %v5989_v53 = vpop.permute.xlu1 %1304  ;;  %v5991_v47 = vpop.permute.xlu0 %1302  ;;  %9010 = vst [vmem:[#allocation331_spill] sm:$0xff] %v6006_v2 }
 0x270   :  { %9004 = vst [vmem:[#allocation326_spill] sm:$0xff] %v5989_v53  ;;  %9005 = vst [vmem:[#allocation327_spill] sm:$0xff] %v5991_v47  ;;  %v9011_v53 = vld [vmem:[#allocation68_spill] sm:$0xff] }
 0x271   :  { %1484 = vrot.lane.b32.xlu1 %v5995_v36, %s4271_s18  ;;  %1482 = vrot.lane.b32.xlu0 %v9007_v13, %s4271_s18  ;;  %v9014_v36 = vld [vmem:[#allocation74_spill] sm:$0xff]  ;;  %v9023_v13 = vld [vmem:[#allocation77_spill] sm:$0xff] }
 0x273   :  { %v6001_v10 = vpop.permute.xlu1 %1308  ;;  %v6003_v28 = vpop.permute.xlu0 %1306 }
 0x274   :  { %9008 = vst [vmem:[#allocation329_spill] sm:$0xff] %v6001_v10  ;;  %9009 = vst [vmem:[#allocation330_spill] sm:$0xff] %v6003_v28  ;;  %v9015_v10 = vld [vmem:[#allocation67_spill] sm:$0xff] }
 0x275   :  { %1488 = vrot.lane.b32.xlu1 %v9011_v53, %s4271_s18  ;;  %1486 = vrot.lane.b32.xlu0 %v6006_v2, %s4271_s18  ;;  %v9019_v53 = vld [vmem:[#allocation72_spill] sm:$0xff] }
 0x277   :  { %v6012_v17 = vpop.permute.xlu1 %1312  ;;  %v6014_v47 = vpop.permute.xlu0 %1310 }
 0x278   :  { %9012 = vst [vmem:[#allocation68_spill] sm:$0xff] %v6012_v17  ;;  %9013 = vst [vmem:[#allocation332_spill] sm:$0xff] %v6014_v47  ;;  %v9022_v47 = vld [vmem:[#allocation83_spill] sm:$0xff] }
 0x279   :  { %1492 = vrot.lane.b32.xlu1 %v9014_v36, %s4271_s18  ;;  %1490 = vrot.lane.b32.xlu0 %v9015_v10, %s4271_s18 }
 0x27b   :  { %v6020_v28 = vpop.permute.xlu1 %1316  ;;  %v6022_v8 = vpop.permute.xlu0 %1314 }
 0x27c   :  { %9016 = vst [vmem:[#allocation67_spill] sm:$0xff] %v6020_v28  ;;  %9017 = vst [vmem:[#allocation333_spill] sm:$0xff] %v6022_v8  ;;  %v9026_v8 = vld [vmem:[#allocation91_spill] sm:$0xff] }
 0x27d   :  { %1496 = vrot.lane.b32.xlu1 %v9018_v15, %s4271_s18  ;;  %1494 = vrot.lane.b32.xlu0 %v9019_v53, %s4271_s18  ;;  %v9027_v15 = vld [vmem:[#allocation82_spill] sm:$0xff] }
 0x27f   :  { %v6028_v2 = vpop.permute.xlu1 %1320  ;;  %v6030_v17 = vpop.permute.xlu0 %1318 }
 0x280   :  { %9020 = vst [vmem:[#allocation334_spill] sm:$0xff] %v6028_v2  ;;  %9021 = vst [vmem:[#allocation335_spill] sm:$0xff] %v6030_v17  ;;  %v9030_v17 = vld [vmem:[#allocation93_spill] sm:$0xff] }
 0x281   :  { %1500 = vrot.lane.b32.xlu1 %v9022_v47, %s4271_s18  ;;  %1498 = vrot.lane.b32.xlu0 %v9023_v13, %s4271_s18  ;;  %v9031_v47 = vld [vmem:[#allocation90_spill] sm:$0xff] }
 0x283   :  { %v6036_v10 = vpop.permute.xlu1 %1324  ;;  %v6038_v28 = vpop.permute.xlu0 %1322 }
 0x284   :  { %9024 = vst [vmem:[#allocation336_spill] sm:$0xff] %v6036_v10  ;;  %9025 = vst [vmem:[#allocation337_spill] sm:$0xff] %v6038_v28  ;;  %v9034_v28 = vld [vmem:[#allocation98_spill] sm:$0xff] }
 0x285   :  { %1504 = vrot.lane.b32.xlu1 %v9026_v8, %s4271_s18  ;;  %1502 = vrot.lane.b32.xlu0 %v9027_v15, %s4271_s18  ;;  %v9035_v8 = vld [vmem:[#allocation92_spill] sm:$0xff] }
 0x287   :  { %v6044_v53 = vpop.permute.xlu1 %1328  ;;  %v6046_v2 = vpop.permute.xlu0 %1326 }
 0x288   :  { %9028 = vst [vmem:[#allocation338_spill] sm:$0xff] %v6044_v53  ;;  %9029 = vst [vmem:[#allocation339_spill] sm:$0xff] %v6046_v2  ;;  %v9038_v2 = vld [vmem:[#allocation107_spill] sm:$0xff] }
 0x289   :  { %1508 = vrot.lane.b32.xlu1 %v9030_v17, %s4271_s18  ;;  %1506 = vrot.lane.b32.xlu0 %v9031_v47, %s4271_s18  ;;  %v9039_v17 = vld [vmem:[#allocation97_spill] sm:$0xff] }
 0x28b   :  { %v6052_v13 = vpop.permute.xlu1 %1332  ;;  %v6054_v10 = vpop.permute.xlu0 %1330 }
 0x28c   :  { %9032 = vst [vmem:[#allocation340_spill] sm:$0xff] %v6052_v13  ;;  %9033 = vst [vmem:[#allocation341_spill] sm:$0xff] %v6054_v10  ;;  %v9042_v10 = vld [vmem:[#allocation110_spill] sm:$0xff] }
 0x28d   :  { %1512 = vrot.lane.b32.xlu1 %v9034_v28, %s4271_s18  ;;  %1510 = vrot.lane.b32.xlu0 %v9035_v8, %s4271_s18  ;;  %v9043_v28 = vld [vmem:[#allocation106_spill] sm:$0xff] }
 0x28f   :  { %v6060_v15 = vpop.permute.xlu1 %1336  ;;  %v6062_v53 = vpop.permute.xlu0 %1334 }
 0x290   :  { %9036 = vst [vmem:[#allocation342_spill] sm:$0xff] %v6060_v15  ;;  %9037 = vst [vmem:[#allocation343_spill] sm:$0xff] %v6062_v53  ;;  %v9046_v53 = vld [vmem:[#allocation114_spill] sm:$0xff] }
 0x291   :  { %1516 = vrot.lane.b32.xlu1 %v9038_v2, %s4271_s18  ;;  %1514 = vrot.lane.b32.xlu0 %v9039_v17, %s4271_s18  ;;  %v9047_v2 = vld [vmem:[#allocation109_spill] sm:$0xff] }
 0x293   :  { %v6068_v47 = vpop.permute.xlu1 %1340  ;;  %v6070_v13 = vpop.permute.xlu0 %1338 }
 0x294   :  { %9040 = vst [vmem:[#allocation344_spill] sm:$0xff] %v6068_v47  ;;  %9041 = vst [vmem:[#allocation345_spill] sm:$0xff] %v6070_v13  ;;  %v9050_v13 = vld [vmem:[#allocation122_spill] sm:$0xff] }
 0x295   :  { %1520 = vrot.lane.b32.xlu1 %v9042_v10, %s4271_s18  ;;  %1518 = vrot.lane.b32.xlu0 %v9043_v28, %s4271_s18  ;;  %v9051_v10 = vld [vmem:[#allocation113_spill] sm:$0xff] }
 0x297   :  { %v6076_v8 = vpop.permute.xlu1 %1344  ;;  %v6078_v15 = vpop.permute.xlu0 %1342 }
 0x298   :  { %9044 = vst [vmem:[#allocation346_spill] sm:$0xff] %v6076_v8  ;;  %9045 = vst [vmem:[#allocation347_spill] sm:$0xff] %v6078_v15  ;;  %v9054_v15 = vld [vmem:[#allocation126_spill] sm:$0xff] }
 0x299   :  { %1524 = vrot.lane.b32.xlu1 %v9046_v53, %s4271_s18  ;;  %1522 = vrot.lane.b32.xlu0 %v9047_v2, %s4271_s18  ;;  %v9055_v53 = vld [vmem:[#allocation120_spill] sm:$0xff] }
 0x29b   :  { %v6084_v17 = vpop.permute.xlu1 %1348  ;;  %v6086_v47 = vpop.permute.xlu0 %1346 }
 0x29c   :  { %9048 = vst [vmem:[#allocation348_spill] sm:$0xff] %v6084_v17  ;;  %9049 = vst [vmem:[#allocation349_spill] sm:$0xff] %v6086_v47  ;;  %v9058_v47 = vld [vmem:[#allocation133_spill] sm:$0xff] }
 0x29d   :  { %1528 = vrot.lane.b32.xlu1 %v9050_v13, %s4271_s18  ;;  %1526 = vrot.lane.b32.xlu0 %v9051_v10, %s4271_s18  ;;  %v9059_v13 = vld [vmem:[#allocation125_spill] sm:$0xff] }
 0x29f   :  { %v6092_v28 = vpop.permute.xlu1 %1352  ;;  %v6094_v8 = vpop.permute.xlu0 %1350 }
 0x2a0   :  { %9052 = vst [vmem:[#allocation350_spill] sm:$0xff] %v6092_v28  ;;  %9053 = vst [vmem:[#allocation351_spill] sm:$0xff] %v6094_v8  ;;  %v9062_v8 = vld [vmem:[#allocation139_spill] sm:$0xff] }
 0x2a1   :  { %1532 = vrot.lane.b32.xlu1 %v9054_v15, %s4271_s18  ;;  %1530 = vrot.lane.b32.xlu0 %v9055_v53, %s4271_s18  ;;  %v9063_v15 = vld [vmem:[#allocation132_spill] sm:$0xff] }
 0x2a3   :  { %v6100_v2 = vpop.permute.xlu1 %1356  ;;  %v6102_v17 = vpop.permute.xlu0 %1354 }
 0x2a4   :  { %9056 = vst [vmem:[#allocation352_spill] sm:$0xff] %v6100_v2  ;;  %9057 = vst [vmem:[#allocation353_spill] sm:$0xff] %v6102_v17  ;;  %v851_v17 = vrot.slane %v5851_v16, 1 }
 0x2a5   :  { %1536 = vrot.lane.b32.xlu1 %v9058_v47, %s4271_s18  ;;  %1534 = vrot.lane.b32.xlu0 %v9059_v13, %s4271_s18  ;;  %v852_v47 = vrot.slane %v5864_v20, 1  ;;  %v9066_v13 = vrot.slane %v8941_v7, 7  ;;  %v9072_v7 = vld [vmem:[#allocation140_spill] sm:$0xff] }
 0x2a7   :  { %v6108_v10 = vpop.permute.xlu1 %1424  ;;  %v6110_v28 = vpop.permute.xlu0 %1358  ;;  %v6137_v36 = vsel %vm536_vm1, %v851_v17, %v852_v47 }
 0x2a8   :  { %9060 = vst [vmem:[#allocation354_spill] sm:$0xff] %v6108_v10  ;;  %9061 = vst [vmem:[#allocation355_spill] sm:$0xff] %v6110_v28  ;;  %v6125_v10 = vsel %vm215_vm0, %v9066_v13, 0.0  ;;  %v9067_v28 = vld [vmem:[#allocation141_spill] sm:$0xff] }
 0x2a9   :  { %1540 = vrot.lane.b32.xlu1 %v9062_v8, %s4271_s18  ;;  %1538 = vrot.lane.b32.xlu0 %v9063_v15, %s4271_s18  ;;  %v9068_v8 = vld [vmem:[#allocation138_spill] sm:$0xff]  ;;  %9071 = vst [vmem:[#allocation360_spill] sm:$0xff] %v6137_v36 }
 0x2ab   :  { %v6116_v53 = vpop.permute.xlu1 %1428  ;;  %v6118_v2 = vpop.permute.xlu0 %1426 }
 0x2ac   :  { %9064 = vst [vmem:[#allocation356_spill] sm:$0xff] %v6116_v53  ;;  %9065 = vst [vmem:[#allocation357_spill] sm:$0xff] %v6118_v2  ;;  %v854_v2 = vrot.slane %v6125_v10, 1 }
 0x2ad   :  { %1544 = vrot.lane.b32.xlu1 %v9067_v28, %s4271_s18  ;;  %1542 = vrot.lane.b32.xlu0 %v9068_v8, %s4271_s18 }
 0x2ae   :  { %v6148_v8 = vsel %vm536_vm1, %v852_v47, %v854_v2  ;;  %v9083_v2 = vld [vmem:[#allocation150_spill] sm:$0xff] }
 0x2af   :  { %v6131_v15 = vpop.permute.xlu1 %1432  ;;  %v6133_v53 = vpop.permute.xlu0 %1430  ;;  %9075 = vst [vmem:[#allocation363_spill] sm:$0xff] %v6148_v8 }
 0x2b0   :  { %9069 = vst [vmem:[#allocation358_spill] sm:$0xff] %v6131_v15  ;;  %9070 = vst [vmem:[#allocation359_spill] sm:$0xff] %v6133_v53  ;;  %v9076_v15 = vld [vmem:[#allocation145_spill] sm:$0xff]  ;;  %v9088_v53 = vld [vmem:[#allocation155_spill] sm:$0xff] }
 0x2b1   :  { %1548 = vrot.lane.b32.xlu1 %v6137_v36, %s4271_s18  ;;  %1546 = vrot.lane.b32.xlu0 %v9072_v7, %s4271_s18  ;;  %v9079_v7 = vld [vmem:[#allocation148_spill] sm:$0xff] }
 0x2b3   :  { %v6143_v13 = vpop.permute.xlu1 %1436  ;;  %v6145_v28 = vpop.permute.xlu0 %1434 }
 0x2b4   :  { %9073 = vst [vmem:[#allocation361_spill] sm:$0xff] %v6143_v13  ;;  %9074 = vst [vmem:[#allocation362_spill] sm:$0xff] %v6145_v28  ;;  %v9080_v13 = vld [vmem:[#allocation149_spill] sm:$0xff] }
 0x2b5   :  { %1616 = vrot.lane.b32.xlu1 %v9076_v15, %s4272_s19  ;;  %1550 = vrot.lane.b32.xlu0 %v6148_v8, %s4271_s18  ;;  %v9084_v15 = vld [vmem:[#allocation151_spill] sm:$0xff] }
 0x2b7   :  { %v6154_v17 = vpop.permute.xlu1 %1440  ;;  %v6156_v36 = vpop.permute.xlu0 %1438 }
 0x2b8   :  { %9077 = vst [vmem:[#allocation145_spill] sm:$0xff] %v6154_v17  ;;  %9078 = vst [vmem:[#allocation364_spill] sm:$0xff] %v6156_v36  ;;  %v9087_v36 = vld [vmem:[#allocation154_spill] sm:$0xff] }
 0x2b9   :  { %1620 = vrot.lane.b32.xlu1 %v9079_v7, %s4272_s19  ;;  %1618 = vrot.lane.b32.xlu0 %v9080_v13, %s4272_s19 }
 0x2bb   :  { %v6162_v28 = vpop.permute.xlu1 %1444  ;;  %v6164_v47 = vpop.permute.xlu0 %1442 }
 0x2bc   :  { %9081 = vst [vmem:[#allocation148_spill] sm:$0xff] %v6162_v28  ;;  %9082 = vst [vmem:[#allocation149_spill] sm:$0xff] %v6164_v47  ;;  %v9091_v47 = vld [vmem:[#allocation158_spill] sm:$0xff] }
 0x2bd   :  { %1624 = vrot.lane.b32.xlu1 %v9083_v2, %s4272_s19  ;;  %1622 = vrot.lane.b32.xlu0 %v9084_v15, %s4272_s19 }
 0x2bf   :  { %v6170_v8 = vpop.permute.xlu1 %1448  ;;  %v6172_v17 = vpop.permute.xlu0 %1446 }
 0x2c0   :  { %9085 = vst [vmem:[#allocation150_spill] sm:$0xff] %v6170_v8  ;;  %9086 = vst [vmem:[#allocation151_spill] sm:$0xff] %v6172_v17  ;;  %v9095_v17 = vld [vmem:[#allocation162_spill] sm:$0xff] }
 0x2c1   :  { %1628 = vrot.lane.b32.xlu1 %v9087_v36, %s4272_s19  ;;  %1626 = vrot.lane.b32.xlu0 %v9088_v53, %s4272_s19  ;;  %v9096_v36 = vld [vmem:[#allocation163_spill] sm:$0xff] }
 0x2c3   :  { %v6178_v13 = vpop.permute.xlu1 %1452  ;;  %v6180_v28 = vpop.permute.xlu0 %1450 }
 0x2c4   :  { %9089 = vst [vmem:[#allocation365_spill] sm:$0xff] %v6178_v13  ;;  %9090 = vst [vmem:[#allocation366_spill] sm:$0xff] %v6180_v28  ;;  %v9099_v28 = vld [vmem:[#allocation166_spill] sm:$0xff] }
 0x2c5   :  { %1632 = vrot.lane.b32.xlu1 %v9091_v47, %s4272_s19  ;;  %1630 = vrot.lane.b32.xlu0 %v9092_v39, %s4272_s19  ;;  %v9100_v47 = vld [vmem:[#allocation167_spill] sm:$0xff] }
 0x2c7   :  { %v6186_v37 = vpop.permute.xlu1 %1456  ;;  %v6188_v8 = vpop.permute.xlu0 %1454 }
 0x2c8   :  { %9093 = vst [vmem:[#allocation367_spill] sm:$0xff] %v6186_v37  ;;  %9094 = vst [vmem:[#allocation368_spill] sm:$0xff] %v6188_v8  ;;  %v9103_v8 = vld [vmem:[#allocation170_spill] sm:$0xff] }
 0x2c9   :  { %1636 = vrot.lane.b32.xlu1 %v9095_v17, %s4272_s19  ;;  %1634 = vrot.lane.b32.xlu0 %v9096_v36, %s4272_s19  ;;  %v9104_v17 = vld [vmem:[#allocation171_spill] sm:$0xff] }
 0x2cb   :  { %v6194_v53 = vpop.permute.xlu1 %1460  ;;  %v6196_v13 = vpop.permute.xlu0 %1458 }
 0x2cc   :  { %9097 = vst [vmem:[#allocation369_spill] sm:$0xff] %v6194_v53  ;;  %9098 = vst [vmem:[#allocation370_spill] sm:$0xff] %v6196_v13  ;;  %v9107_v13 = vld [vmem:[#allocation28_spill] sm:$0xff] }
 0x2cd   :  { %1640 = vrot.lane.b32.xlu1 %v9099_v28, %s4272_s19  ;;  %1638 = vrot.lane.b32.xlu0 %v9100_v47, %s4272_s19  ;;  %v9108_v28 = vld [vmem:[#allocation173_spill] sm:$0xff] }
 0x2cf   :  { %v6202_v39 = vpop.permute.xlu1 %1464  ;;  %v6204_v37 = vpop.permute.xlu0 %1462 }
 0x2d0   :  { %9101 = vst [vmem:[#allocation371_spill] sm:$0xff] %v6202_v39  ;;  %9102 = vst [vmem:[#allocation372_spill] sm:$0xff] %v6204_v37  ;;  %v9111_v37 = vld [vmem:[#allocation33_spill] sm:$0xff] }
 0x2d1   :  { %1644 = vrot.lane.b32.xlu1 %v9103_v8, %s4272_s19  ;;  %1642 = vrot.lane.b32.xlu0 %v9104_v17, %s4272_s19  ;;  %v9112_v8 = vld [vmem:[#allocation175_spill] sm:$0xff] }
 0x2d3   :  { %v6210_v36 = vpop.permute.xlu1 %1468  ;;  %v6212_v53 = vpop.permute.xlu0 %1466 }
 0x2d4   :  { %9105 = vst [vmem:[#allocation373_spill] sm:$0xff] %v6210_v36  ;;  %9106 = vst [vmem:[#allocation374_spill] sm:$0xff] %v6212_v53  ;;  %v9115_v53 = vld [vmem:[#allocation38_spill] sm:$0xff] }
 0x2d5   :  { %1648 = vrot.lane.b32.xlu1 %v9107_v13, %s4272_s19  ;;  %1646 = vrot.lane.b32.xlu0 %v9108_v28, %s4272_s19  ;;  %v9116_v13 = vld [vmem:[#allocation178_spill] sm:$0xff] }
 0x2d7   :  { %v6218_v47 = vpop.permute.xlu1 %1472  ;;  %v6220_v39 = vpop.permute.xlu0 %1470 }
 0x2d8   :  { %9109 = vst [vmem:[#allocation375_spill] sm:$0xff] %v6218_v47  ;;  %9110 = vst [vmem:[#allocation376_spill] sm:$0xff] %v6220_v39  ;;  %v9119_v39 = vld [vmem:[#allocation43_spill] sm:$0xff] }
 0x2d9   :  { %1652 = vrot.lane.b32.xlu1 %v9111_v37, %s4272_s19  ;;  %1650 = vrot.lane.b32.xlu0 %v9112_v8, %s4272_s19  ;;  %v9120_v37 = vld [vmem:[#allocation181_spill] sm:$0xff] }
 0x2db   :  { %v6226_v17 = vpop.permute.xlu1 %1476  ;;  %v6228_v36 = vpop.permute.xlu0 %1474 }
 0x2dc   :  { %9113 = vst [vmem:[#allocation377_spill] sm:$0xff] %v6226_v17  ;;  %9114 = vst [vmem:[#allocation378_spill] sm:$0xff] %v6228_v36  ;;  %v9123_v36 = vld [vmem:[#allocation48_spill] sm:$0xff] }
 0x2dd   :  { %1656 = vrot.lane.b32.xlu1 %v9115_v53, %s4272_s19  ;;  %1654 = vrot.lane.b32.xlu0 %v9116_v13, %s4272_s19  ;;  %v9124_v53 = vld [vmem:[#allocation184_spill] sm:$0xff] }
 0x2df   :  { %v6234_v28 = vpop.permute.xlu1 %1480  ;;  %v6236_v47 = vpop.permute.xlu0 %1478 }
 0x2e0   :  { %9117 = vst [vmem:[#allocation379_spill] sm:$0xff] %v6234_v28  ;;  %9118 = vst [vmem:[#allocation380_spill] sm:$0xff] %v6236_v47  ;;  %v9127_v47 = vld [vmem:[#allocation53_spill] sm:$0xff] }
 0x2e1   :  { %1660 = vrot.lane.b32.xlu1 %v9119_v39, %s4272_s19  ;;  %1658 = vrot.lane.b32.xlu0 %v9120_v37, %s4272_s19  ;;  %v9128_v39 = vld [vmem:[#allocation187_spill] sm:$0xff] }
 0x2e3   :  { %v6242_v8 = vpop.permute.xlu1 %1484  ;;  %v6244_v17 = vpop.permute.xlu0 %1482 }
 0x2e4   :  { %9121 = vst [vmem:[#allocation381_spill] sm:$0xff] %v6242_v8  ;;  %9122 = vst [vmem:[#allocation382_spill] sm:$0xff] %v6244_v17  ;;  %v856_v17 = vrot.slane %v5713_v14, 2 }
 0x2e5   :  { %1664 = vrot.lane.b32.xlu1 %v9123_v36, %s4272_s19  ;;  %1662 = vrot.lane.b32.xlu0 %v9124_v53, %s4272_s19  ;;  %v857_v36 = vrot.slane %v5726_v60, 2  ;;  %v9131_v53 = vld [vmem:[#allocation61_spill] sm:$0xff] }
 0x2e7   :  { %v6250_v13 = vpop.permute.xlu1 %1488  ;;  %v6252_v28 = vpop.permute.xlu0 %1486 }
 0x2e8   :  { %9125 = vst [vmem:[#allocation383_spill] sm:$0xff] %v6250_v13  ;;  %9126 = vst [vmem:[#allocation384_spill] sm:$0xff] %v6252_v28  ;;  %v9132_v13 = vld [vmem:[#allocation190_spill] sm:$0xff] }
 0x2e9   :  { %1668 = vrot.lane.b32.xlu1 %v9127_v47, %s4272_s19  ;;  %1666 = vrot.lane.b32.xlu0 %v9128_v39, %s4272_s19  ;;  %v859_v39 = vrot.slane %v5983_v0, 2 }
 0x2eb   :  { %v6258_v37 = vpop.permute.xlu1 %1492  ;;  %v6260_v8 = vpop.permute.xlu0 %1490 }
 0x2ec   :  { %9129 = vst [vmem:[#allocation385_spill] sm:$0xff] %v6258_v37  ;;  %9130 = vst [vmem:[#allocation386_spill] sm:$0xff] %v6260_v8  ;;  %v6274_v37 = vsel %vm689_vm2, %v856_v17, %v857_v36  ;;  %v9136_v8 = vld [vmem:[#allocation193_spill] sm:$0xff] }
 0x2ed   :  { %1672 = vrot.lane.b32.xlu1 %v9131_v53, %s4272_s19  ;;  %1670 = vrot.lane.b32.xlu0 %v9132_v13, %s4272_s19  ;;  %9135 = vst [vmem:[#allocation389_spill] sm:$0xff] %v6274_v37  ;;  %v6285_v13 = vsel %vm689_vm2, %v857_v36, %v859_v39  ;;  %v9147_v39 = vld [vmem:[#allocation198_spill] sm:$0xff] }
 0x2ee   :  { %9139 = vst [vmem:[#allocation392_spill] sm:$0xff] %v6285_v13 }
 0x2ef   :  { %v6268_v28 = vpop.permute.xlu1 %1496  ;;  %v6270_v47 = vpop.permute.xlu0 %1494 }
 0x2f0   :  { %9133 = vst [vmem:[#allocation387_spill] sm:$0xff] %v6268_v28  ;;  %9134 = vst [vmem:[#allocation388_spill] sm:$0xff] %v6270_v47  ;;  %v9140_v28 = vld [vmem:[#allocation192_spill] sm:$0xff] }
 0x2f1   :  { %1676 = vrot.lane.b32.xlu1 %v6274_v37, %s4272_s19  ;;  %1674 = vrot.lane.b32.xlu0 %v9136_v8, %s4272_s19  ;;  %v9143_v47 = vld [vmem:[#allocation64_spill] sm:$0xff]  ;;  %v9152_v37 = vld [vmem:[#allocation202_spill] sm:$0xff]  ;;  %v9156_v8 = vld [vmem:[#allocation205_spill] sm:$0xff] }
 0x2f3   :  { %v6280_v26 = vpop.permute.xlu1 %1500  ;;  %v6282_v53 = vpop.permute.xlu0 %1498 }
 0x2f4   :  { %9137 = vst [vmem:[#allocation390_spill] sm:$0xff] %v6280_v26  ;;  %9138 = vst [vmem:[#allocation391_spill] sm:$0xff] %v6282_v53  ;;  %v9144_v26 = vld [vmem:[#allocation196_spill] sm:$0xff] }
 0x2f5   :  { %1680 = vrot.lane.b32.xlu1 %v9140_v28, %s4272_s19  ;;  %1678 = vrot.lane.b32.xlu0 %v6285_v13, %s4272_s19  ;;  %v9148_v28 = vld [vmem:[#allocation199_spill] sm:$0xff] }
 0x2f7   :  { %v6291_v0 = vpop.permute.xlu1 %1504  ;;  %v6293_v17 = vpop.permute.xlu0 %1502 }
 0x2f8   :  { %9141 = vst [vmem:[#allocation192_spill] sm:$0xff] %v6291_v0  ;;  %9142 = vst [vmem:[#allocation393_spill] sm:$0xff] %v6293_v17  ;;  %v9151_v17 = vld [vmem:[#allocation76_spill] sm:$0xff] }
 0x2f9   :  { %1684 = vrot.lane.b32.xlu1 %v9143_v47, %s4272_s19  ;;  %1682 = vrot.lane.b32.xlu0 %v9144_v26, %s4272_s19 }
 0x2fb   :  { %v6299_v53 = vpop.permute.xlu1 %1508  ;;  %v6301_v36 = vpop.permute.xlu0 %1506 }
 0x2fc   :  { %9145 = vst [vmem:[#allocation64_spill] sm:$0xff] %v6299_v53  ;;  %9146 = vst [vmem:[#allocation196_spill] sm:$0xff] %v6301_v36  ;;  %v9155_v36 = vld [vmem:[#allocation204_spill] sm:$0xff] }
 0x2fd   :  { %1688 = vrot.lane.b32.xlu1 %v9147_v39, %s4272_s19  ;;  %1686 = vrot.lane.b32.xlu0 %v9148_v28, %s4272_s19 }
 0x2ff   :  { %v6307_v13 = vpop.permute.xlu1 %1512  ;;  %v6309_v0 = vpop.permute.xlu0 %1510 }
 0x300   :  { %9149 = vst [vmem:[#allocation199_spill] sm:$0xff] %v6307_v13  ;;  %9150 = vst [vmem:[#allocation394_spill] sm:$0xff] %v6309_v0  ;;  %v9159_v0 = vld [vmem:[#allocation86_spill] sm:$0xff] }
 0x301   :  { %1692 = vrot.lane.b32.xlu1 %v9151_v17, %s4272_s19  ;;  %1690 = vrot.lane.b32.xlu0 %v9152_v37, %s4272_s19  ;;  %v9160_v17 = vld [vmem:[#allocation208_spill] sm:$0xff] }
 0x303   :  { %v6315_v26 = vpop.permute.xlu1 %1516  ;;  %v6317_v53 = vpop.permute.xlu0 %1514 }
 0x304   :  { %9153 = vst [vmem:[#allocation395_spill] sm:$0xff] %v6315_v26  ;;  %9154 = vst [vmem:[#allocation396_spill] sm:$0xff] %v6317_v53  ;;  %v9163_v53 = vld [vmem:[#allocation210_spill] sm:$0xff] }
 0x305   :  { %1696 = vrot.lane.b32.xlu1 %v9155_v36, %s4272_s19  ;;  %1694 = vrot.lane.b32.xlu0 %v9156_v8, %s4272_s19  ;;  %v9164_v36 = vld [vmem:[#allocation211_spill] sm:$0xff] }
 0x307   :  { %v6323_v39 = vpop.permute.xlu1 %1520  ;;  %v6325_v13 = vpop.permute.xlu0 %1518 }
 0x308   :  { %9157 = vst [vmem:[#allocation397_spill] sm:$0xff] %v6323_v39  ;;  %9158 = vst [vmem:[#allocation398_spill] sm:$0xff] %v6325_v13  ;;  %v9167_v13 = vld [vmem:[#allocation215_spill] sm:$0xff] }
 0x309   :  { %1700 = vrot.lane.b32.xlu1 %v9159_v0, %s4272_s19  ;;  %1698 = vrot.lane.b32.xlu0 %v9160_v17, %s4272_s19  ;;  %v9168_v0 = vld [vmem:[#allocation214_spill] sm:$0xff] }
 0x30b   :  { %v6331_v37 = vpop.permute.xlu1 %1524  ;;  %v6333_v26 = vpop.permute.xlu0 %1522 }
 0x30c   :  { %9161 = vst [vmem:[#allocation399_spill] sm:$0xff] %v6331_v37  ;;  %9162 = vst [vmem:[#allocation400_spill] sm:$0xff] %v6333_v26  ;;  %v9171_v26 = vld [vmem:[#allocation218_spill] sm:$0xff] }
 0x30d   :  { %1704 = vrot.lane.b32.xlu1 %v9163_v53, %s4272_s19  ;;  %1702 = vrot.lane.b32.xlu0 %v9164_v36, %s4272_s19 }
 0x30f   :  { %v6339_v8 = vpop.permute.xlu1 %1528  ;;  %v6341_v39 = vpop.permute.xlu0 %1526 }
 0x310   :  { %9165 = vst [vmem:[#allocation211_spill] sm:$0xff] %v6339_v8  ;;  %9166 = vst [vmem:[#allocation401_spill] sm:$0xff] %v6341_v39  ;;  %v9174_v39 = vld [vmem:[#allocation103_spill] sm:$0xff] }
 0x311   :  { %1708 = vrot.lane.b32.xlu1 %v9167_v13, %s4272_s19  ;;  %1706 = vrot.lane.b32.xlu0 %v9168_v0, %s4272_s19  ;;  %v9175_v13 = vld [vmem:[#allocation221_spill] sm:$0xff] }
 0x313   :  { %v6347_v17 = vpop.permute.xlu1 %1532  ;;  %v6349_v37 = vpop.permute.xlu0 %1530 }
 0x314   :  { %9169 = vst [vmem:[#allocation402_spill] sm:$0xff] %v6347_v17  ;;  %9170 = vst [vmem:[#allocation403_spill] sm:$0xff] %v6349_v37  ;;  %v9178_v37 = vld [vmem:[#allocation224_spill] sm:$0xff] }
 0x315   :  { %1712 = vrot.lane.b32.xlu1 %v5472_v51, %s4272_s19  ;;  %1710 = vrot.lane.b32.xlu0 %v9171_v26, %s4272_s19  ;;  %v9179_v51 = vld [vmem:[#allocation225_spill] sm:$0xff] }
 0x317   :  { %v6355_v53 = vpop.permute.xlu1 %1536  ;;  %v6357_v8 = vpop.permute.xlu0 %1534 }
 0x318   :  { %9172 = vst [vmem:[#allocation404_spill] sm:$0xff] %v6355_v53  ;;  %9173 = vst [vmem:[#allocation405_spill] sm:$0xff] %v6357_v8  ;;  %v9182_v8 = vld [vmem:[#allocation117_spill] sm:$0xff] }
 0x319   :  { %1716 = vrot.lane.b32.xlu1 %v9174_v39, %s4272_s19  ;;  %1714 = vrot.lane.b32.xlu0 %v9175_v13, %s4272_s19  ;;  %v9183_v39 = vld [vmem:[#allocation228_spill] sm:$0xff] }
 0x31b   :  { %v6363_v0 = vpop.permute.xlu1 %1540  ;;  %v6365_v17 = vpop.permute.xlu0 %1538 }
 0x31c   :  { %9176 = vst [vmem:[#allocation406_spill] sm:$0xff] %v6363_v0  ;;  %9177 = vst [vmem:[#allocation407_spill] sm:$0xff] %v6365_v17 }
 0x31d   :  { %1720 = vrot.lane.b32.xlu1 %v9178_v37, %s4272_s19  ;;  %1718 = vrot.lane.b32.xlu0 %v9179_v51, %s4272_s19 }
 0x31f   :  { %v6371_v26 = vpop.permute.xlu1 %1544  ;;  %v6373_v53 = vpop.permute.xlu0 %1542 }
 0x320   :  { %9180 = vst [vmem:[#allocation408_spill] sm:$0xff] %v6371_v26  ;;  %9181 = vst [vmem:[#allocation409_spill] sm:$0xff] %v6373_v53  ;;  %v9187_v53 = vld [vmem:[#allocation234_spill] sm:$0xff] }
 0x321   :  { %1724 = vrot.lane.b32.xlu1 %v9182_v8, %s4272_s19  ;;  %1722 = vrot.lane.b32.xlu0 %v9183_v39, %s4272_s19 }
 0x323   :  { %v6379_v13 = vpop.permute.xlu1 %1548  ;;  %v6381_v0 = vpop.permute.xlu0 %1546 }
 0x324   :  { %9184 = vst [vmem:[#allocation410_spill] sm:$0xff] %v6379_v13  ;;  %9185 = vst [vmem:[#allocation411_spill] sm:$0xff] %v6381_v0  ;;  %v861_v0 = vrot.slane %v5851_v16, 2 }
 0x325   :  { %1728 = vrot.lane.b32.xlu1 %v5540_v21, %s4272_s19  ;;  %1726 = vrot.lane.b32.xlu0 %v5543_v63, %s4272_s19  ;;  %v862_v21 = vrot.slane %v5864_v20, 2 }
 0x327   :  { %v6387_v17 = vpop.permute.xlu1 %1616  ;;  %v6389_v26 = vpop.permute.xlu0 %1550  ;;  %v6411_v63 = vsel %vm689_vm2, %v861_v0, %v862_v21 }
 0x328   :  { %9186 = vst [vmem:[#allocation412_spill] sm:$0xff] %v6389_v26  ;;  %9188 = vst [vmem:[#allocation413_spill] sm:$0xff] %v6411_v63 }
 0x329   :  { %1732 = vrot.lane.b32.xlu1 %v5560_v6, %s4272_s19  ;;  %1730 = vrot.lane.b32.xlu0 %v9187_v53, %s4272_s19  ;;  %v864_v53 = vrot.slane %v6125_v10, 2 }
 0x32b   :  { %v6395_v8 = vpop.permute.xlu1 %1620  ;;  %v6397_v13 = vpop.permute.xlu0 %1618 }
 0x32d   :  { %1736 = vrot.lane.b32.xlu1 %v5574_v31, %s4272_s19  ;;  %1734 = vrot.lane.b32.xlu0 %v5577_v5, %s4272_s19  ;;  %v6422_v31 = vsel %vm689_vm2, %v862_v21, %v864_v53 }
 0x32e   :  { %9189 = vst [vmem:[#allocation414_spill] sm:$0xff] %v6422_v31 }
 0x32f   :  { %v6405_v26 = vpop.permute.xlu1 %1624  ;;  %v6407_v6 = vpop.permute.xlu0 %1622 }
 0x331   :  { %1740 = vrot.lane.b32.xlu1 %v6411_v63, %s4272_s19  ;;  %1738 = vrot.lane.b32.xlu0 %v5588_v44, %s4272_s19 }
 0x333   :  { %v6417_v16 = vpop.permute.xlu1 %1628  ;;  %v6419_v20 = vpop.permute.xlu0 %1626 }
 0x335   :  { %1808 = vrot.lane.b32.xlu1 %v4339_v30, %s4273_s20  ;;  %1742 = vrot.lane.b32.xlu0 %v6422_v31, %s4272_s19 }
 0x337   :  { %v6428_v10 = vpop.permute.xlu1 %1632  ;;  %v6430_v0 = vpop.permute.xlu0 %1630 }
 0x339   :  { %1812 = vrot.lane.b32.xlu1 %v4369_v46, %s4273_s20  ;;  %1810 = vrot.lane.b32.xlu0 %v4332_v27, %s4273_s20 }
 0x33b   :  { %v6436_v63 = vpop.permute.xlu1 %1636  ;;  %v6438_v21 = vpop.permute.xlu0 %1634 }
 0x33d   :  { %1816 = vrot.lane.b32.xlu1 %v4390_v56, %s4273_s20  ;;  %1814 = vrot.lane.b32.xlu0 %v4358_v42, %s4273_s20 }
 0x33f   :  { %v6444_v53 = vpop.permute.xlu1 %1640  ;;  %v6446_v31 = vpop.permute.xlu0 %1638 }
 0x341   :  { %1820 = vrot.lane.b32.xlu1 %v4414_v4, %s4273_s20  ;;  %1818 = vrot.lane.b32.xlu0 %v4376_v52, %s4273_s20 }
 0x343   :  { %v6452_v44 = vpop.permute.xlu1 %1644  ;;  %v6454_v5 = vpop.permute.xlu0 %1642 }
 0x344   :  { %9190 = vst [vmem:[#allocation415_spill] sm:$0xff] %v6452_v44  ;;  %9191 = vst [vmem:[#allocation416_spill] sm:$0xff] %v6454_v5 }
 0x345   :  { %1824 = vrot.lane.b32.xlu1 %v4434_v24, %s4273_s20  ;;  %1822 = vrot.lane.b32.xlu0 %v4405_v1, %s4273_s20 }
 0x347   :  { %v6460_v37 = vpop.permute.xlu1 %1648  ;;  %v6462_v39 = vpop.permute.xlu0 %1646 }
 0x348   :  { %9192 = vst [vmem:[#allocation417_spill] sm:$0xff] %v6460_v37  ;;  %9193 = vst [vmem:[#allocation418_spill] sm:$0xff] %v6462_v39 }
 0x349   :  { %1828 = vrot.lane.b32.xlu1 %v4470_v58, %s4273_s20  ;;  %1826 = vrot.lane.b32.xlu0 %v4445_v33, %s4273_s20 }
 0x34b   :  { %v6468_v51 = vpop.permute.xlu1 %1652  ;;  %v6470_v44 = vpop.permute.xlu0 %1650 }
 0x34c   :  { %9194 = vst [vmem:[#allocation419_spill] sm:$0xff] %v6468_v51  ;;  %9195 = vst [vmem:[#allocation420_spill] sm:$0xff] %v6470_v44 }
 0x34d   :  { %1832 = vrot.lane.b32.xlu1 %v4496_v41, %s4273_s20  ;;  %1830 = vrot.lane.b32.xlu0 %v4473_v62, %s4273_s20 }
 0x34f   :  { %v6476_v5 = vpop.permute.xlu1 %1656  ;;  %v6478_v37 = vpop.permute.xlu0 %1654 }
 0x350   :  { %9196 = vst [vmem:[#allocation421_spill] sm:$0xff] %v6476_v5  ;;  %9197 = vst [vmem:[#allocation422_spill] sm:$0xff] %v6478_v37 }
 0x351   :  { %1836 = vrot.lane.b32.xlu1 %v8735_v19, %s4273_s20  ;;  %1834 = vrot.lane.b32.xlu0 %v4499_v48, %s4273_s20 }
 0x353   :  { %v6484_v39 = vpop.permute.xlu1 %1660  ;;  %v6486_v51 = vpop.permute.xlu0 %1658 }
 0x354   :  { %9198 = vst [vmem:[#allocation423_spill] sm:$0xff] %v6484_v39  ;;  %9199 = vst [vmem:[#allocation424_spill] sm:$0xff] %v6486_v51 }
 0x355   :  { %1840 = vrot.lane.b32.xlu1 %v8742_v25, %s4273_s20  ;;  %1838 = vrot.lane.b32.xlu0 %v4525_v3, %s4273_s20 }
 0x357   :  { %v6492_v44 = vpop.permute.xlu1 %1664  ;;  %v6494_v5 = vpop.permute.xlu0 %1662 }
 0x358   :  { %9200 = vst [vmem:[#allocation425_spill] sm:$0xff] %v6492_v44  ;;  %9201 = vst [vmem:[#allocation426_spill] sm:$0xff] %v6494_v5  ;;  %v9206_v5 = vld [vmem:[#allocation46_spill] sm:$0xff] }
 0x359   :  { %1844 = vrot.lane.b32.xlu1 %v8749_v59, %s4273_s20  ;;  %1842 = vrot.lane.b32.xlu0 %v8741_v35, %s4273_s20  ;;  %v9207_v59 = vld [vmem:[#allocation42_spill] sm:$0xff] }
 0x35b   :  { %v6500_v37 = vpop.permute.xlu1 %1668  ;;  %v6502_v39 = vpop.permute.xlu0 %1666 }
 0x35c   :  { %9202 = vst [vmem:[#allocation427_spill] sm:$0xff] %v6500_v37  ;;  %9203 = vst [vmem:[#allocation428_spill] sm:$0xff] %v6502_v39  ;;  %v9210_v39 = vld [vmem:[#allocation51_spill] sm:$0xff] }
 0x35d   :  { %1848 = vrot.lane.b32.xlu1 %v8756_v54, %s4273_s20  ;;  %1846 = vrot.lane.b32.xlu0 %v8886_v61, %s4273_s20  ;;  %v9211_v54 = vld [vmem:[#allocation47_spill] sm:$0xff] }
 0x35f   :  { %v6508_v51 = vpop.permute.xlu1 %1672  ;;  %v6510_v44 = vpop.permute.xlu0 %1670 }
 0x360   :  { %9204 = vst [vmem:[#allocation429_spill] sm:$0xff] %v6508_v51  ;;  %9205 = vst [vmem:[#allocation430_spill] sm:$0xff] %v6510_v44  ;;  %v9214_v44 = vld [vmem:[#allocation58_spill] sm:$0xff] }
 0x361   :  { %1852 = vrot.lane.b32.xlu1 %v9206_v5, %s4273_s20  ;;  %1850 = vrot.lane.b32.xlu0 %v9207_v59, %s4273_s20  ;;  %v9215_v5 = vld [vmem:[#allocation52_spill] sm:$0xff] }
 0x363   :  { %v6516_v35 = vpop.permute.xlu1 %1676  ;;  %v6518_v37 = vpop.permute.xlu0 %1674 }
 0x364   :  { %9208 = vst [vmem:[#allocation431_spill] sm:$0xff] %v6516_v35  ;;  %9209 = vst [vmem:[#allocation432_spill] sm:$0xff] %v6518_v37 }
 0x365   :  { %1856 = vrot.lane.b32.xlu1 %v9210_v39, %s4273_s20  ;;  %1854 = vrot.lane.b32.xlu0 %v9211_v54, %s4273_s20  ;;  %v9277_v54 = vld [vmem:[#allocation33_spill] sm:$0xff] }
 0x367   :  { %v6524_v61 = vpop.permute.xlu1 %1680  ;;  %v6526_v51 = vpop.permute.xlu0 %1678 }
 0x368   :  { %9212 = vst [vmem:[#allocation433_spill] sm:$0xff] %v6524_v61  ;;  %9213 = vst [vmem:[#allocation434_spill] sm:$0xff] %v6526_v51  ;;  %v9220_v51 = vmov 0.0  }
 0x369   :  { %1860 = vrot.lane.b32.xlu1 %v9214_v44, %s4273_s20  ;;  %1858 = vrot.lane.b32.xlu0 %v9215_v5, %s4273_s20 }
 0x36b   :  { %v6532_v59 = vpop.permute.xlu1 %1684  ;;  %v6534_v35 = vpop.permute.xlu0 %1682 }
 0x36c   :  { %9216 = vst [vmem:[#allocation435_spill] sm:$0xff] %v6532_v59  ;;  %9217 = vst [vmem:[#allocation436_spill] sm:$0xff] %v6534_v35  ;;  %v9285_v35 = vld [vmem:[#allocation38_spill] sm:$0xff] }
 0x36d   :  { %1864 = vrot.lane.b32.xlu1 %v5713_v14, %s4273_s20  ;;  %1862 = vrot.lane.b32.xlu0 %v8902_v32, %s4273_s20 }
 0x36f   :  { %v6540_v37 = vpop.permute.xlu1 %1688  ;;  %v6542_v39 = vpop.permute.xlu0 %1686 }
 0x370   :  { %9218 = vst [vmem:[#allocation437_spill] sm:$0xff] %v6540_v37  ;;  %9219 = vst [vmem:[#allocation438_spill] sm:$0xff] %v6542_v39  ;;  %v9281_v39 = vld [vmem:[#allocation40_spill] sm:$0xff] }
 0x371   :  { %1868 = vrot.lane.b32.xlu1 %v9220_v51, %s4273_s20  ;;  %1866 = vrot.lane.b32.xlu0 %v5726_v60, %s4273_s20 }
 0x373   :  { %v6548_v44 = vpop.permute.xlu1 %1692  ;;  %v6550_v5 = vpop.permute.xlu0 %1690 }
 0x374   :  { %9221 = vst [vmem:[#allocation439_spill] sm:$0xff] %v6548_v44  ;;  %9222 = vst [vmem:[#allocation440_spill] sm:$0xff] %v6550_v5 }
 0x375   :  { %1872 = vrot.lane.b32.xlu1 %v8910_v55, %s4273_s20  ;;  %1870 = vrot.lane.b32.xlu0 %v4697_v11, %s4273_s20  ;;  %v9273_v55 = vld [vmem:[#allocation35_spill] sm:$0xff] }
 0x377   :  { %v6556_v14 = vpop.permute.xlu1 %1696  ;;  %v6558_v32 = vpop.permute.xlu0 %1694 }
 0x378   :  { %9223 = vst [vmem:[#allocation441_spill] sm:$0xff] %v6556_v14  ;;  %9224 = vst [vmem:[#allocation442_spill] sm:$0xff] %v6558_v32  ;;  %v470_v14 = vld [vmem:[%s8208_s1] sm:$0xff]  ;;  %v471_v32 = vld [vmem:[%s8208_s1 + $0x8] sm:$0xff] }
 0x379   :  { %1876 = vrot.lane.b32.xlu1 %v8913_v34, %s4273_s20  ;;  %1874 = vrot.lane.b32.xlu0 %v4730_v9, %s4273_s20  ;;  %v4192_v44 = vpack.c.bf16 %v471_v32, %v470_v14  ;;  %v473_v32 = vld [vmem:[%s8208_s1 + $0x18] sm:$0xff] }
 0x37a   :  { %v9271_v34 = vld [vmem:[#allocation28_spill] sm:$0xff] }
 0x37b   :  { %v6564_v51 = vpop.permute.xlu1 %1700  ;;  %v6566_v60 = vpop.permute.xlu0 %1698  ;;  %4193 = vmatprep.subr.bf16.mxu0 %v4192_v44  ;;  %4200 = vmatprep.subr.bf16.mxu1 %v4192_v44 }
 0x37c   :  { %9225 = vst [vmem:[#allocation443_spill] sm:$0xff] %v6564_v51  ;;  %9226 = vst [vmem:[#allocation444_spill] sm:$0xff] %v6566_v60  ;;  %v9229_v60 = vld [vmem:[#allocation81_spill] sm:$0xff]  ;;  %4195 = vmatpush3.bf16.msra.mxu0 %v4192_v44  ;;  %4203 = vmatpush3.bf16.msra.mxu1 %v4192_v44 }
 0x37d   :  { %1880 = vrot.lane.b32.xlu1 %v8916_v49, %s4273_s20  ;;  %1878 = vrot.lane.b32.xlu0 %v4753_v29, %s4273_s20  ;;  %v472_v49 = vld [vmem:[%s8208_s1 + $0x10] sm:$0xff] }
 0x37e   :  { %v4196_v14 = vpack.c.bf16 %v473_v32, %v472_v49 }
 0x37f   :  { %v6578_v9 = vpop.permute.xlu1 %1704  ;;  %v6580_v51 = vpop.permute.xlu0 %1702 }
 0x380   :  { %9227 = vst [vmem:[#allocation445_spill] sm:$0xff] %v6578_v9  ;;  %9228 = vst [vmem:[#allocation446_spill] sm:$0xff] %v6580_v51  ;;  %4197 = vmatprep.subr.bf16.mxu0 %v4196_v14  ;;  %4201 = vmatprep.subr.bf16.mxu1 %v4196_v14 }
 0x381   :  { %1884 = vrot.lane.b32.xlu1 %v8806_v40, %s4273_s20  ;;  %1882 = vrot.lane.b32.xlu0 %v9229_v60, %s4273_s20  ;;  %v474_v40 = vld [vmem:[%s8208_s1 + $0x20] sm:$0xf]  ;;  %s4274_s1 = smov 28  }
 0x382   :  { %4199 = vmatpush3.bf16.msra.mxu0 %v4196_v14  ;;  %4204 = vmatpush3.bf16.msra.mxu1 %v4196_v14  ;;  %v9267_v60 = vld [vmem:[#allocation170_spill] sm:$0xff] }
 0x383   :  { %v6592_v9 = vpop.permute.xlu1 %1708  ;;  %v6594_v51 = vpop.permute.xlu0 %1706  ;;  %4094 = vmatprep.subr.msk.mxu0 %vm3064_vm3, %v474_v40  ;;  %4202 = vmatprep.subr.msk.mxu1 %vm3064_vm3, %v474_v40 }
 0x384   :  { %9230 = vst [vmem:[#allocation447_spill] sm:$0xff] %v6592_v9  ;;  %9231 = vst [vmem:[#allocation448_spill] sm:$0xff] %v6594_v51 }
 0x385   :  { %1888 = vrot.lane.b32.xlu1 %v8921_v18, %s4273_s20  ;;  %1886 = vrot.lane.b32.xlu0 %v4808_v12, %s4273_s20  ;;  %v9265_v12 = vld [vmem:[#allocation26_spill] sm:$0xff] }
 0x386   :  { %4095 = vmatpush3.msk.msra.mxu0 %vm3064_vm3, %v474_v40  ;;  %4205 = vmatpush3.msk.msra.mxu1 %vm3064_vm3, %v474_v40 }
 0x387   :  { %v6603_v44 = vpop.permute.xlu1 %1712  ;;  %v6605_v49 = vpop.permute.xlu0 %1710 }
 0x388   :  { %9232 = vst [vmem:[#allocation449_spill] sm:$0xff] %v6603_v44  ;;  %9233 = vst [vmem:[#allocation450_spill] sm:$0xff] %v6605_v49  ;;  %v9261_v49 = vld [vmem:[#allocation24_spill] sm:$0xff] }
 0x389   :  { %1892 = vrot.lane.b32.xlu1 %v8817_v45, %s4273_s20  ;;  %1890 = vrot.lane.b32.xlu0 %v4821_v57, %s4273_s20  ;;  %v9263_v45 = vld [vmem:[#allocation166_spill] sm:$0xff] }
 0x38b   :  { %v6611_v32 = vpop.permute.xlu1 %1716  ;;  %v6613_v9 = vpop.permute.xlu0 %1714 }
 0x38c   :  { %9234 = vst [vmem:[#allocation451_spill] sm:$0xff] %v6611_v32  ;;  %9235 = vst [vmem:[#allocation452_spill] sm:$0xff] %v6613_v9  ;;  %v9259_v9 = vld [vmem:[#allocation162_spill] sm:$0xff] }
 0x38d   :  { %1991 = vrot.lane.b32.xlu1 %v8949_v23, %s4274_s1  ;;  %1894 = vrot.lane.b32.xlu0 %v4858_v43, %s4273_s20 }
 0x38f   :  { %v6619_v14 = vpop.permute.xlu1 %1720  ;;  %v6621_v44 = vpop.permute.xlu0 %1718 }
 0x390   :  { %9236 = vst [vmem:[#allocation453_spill] sm:$0xff] %v6619_v14  ;;  %9237 = vst [vmem:[#allocation454_spill] sm:$0xff] %v6621_v44 }
 0x391   :  { %2174 = vrot.lane.b32.xlu1 %v9079_v7, %s4275_s4  ;;  %1993 = vrot.lane.b32.xlu0 %v8954_v22, %s4274_s1 }
 0x393   :  { %v6627_v40 = vpop.permute.xlu1 %1724  ;;  %v6629_v32 = vpop.permute.xlu0 %1722 }
 0x394   :  { %9238 = vst [vmem:[#allocation455_spill] sm:$0xff] %v6627_v40  ;;  %9239 = vst [vmem:[#allocation456_spill] sm:$0xff] %v6629_v32  ;;  %v9244_v40 = vld [vmem:[#allocation17_spill] sm:$0xff] }
 0x395   :  { %1995 = vrot.lane.b32.xlu1 %v8953_v38, %s4274_s1  ;;  %2176 = vrot.lane.b32.xlu0 %v9084_v15, %s4275_s4  ;;  %v9245_v38 = vld [vmem:[#allocation155_spill] sm:$0xff] }
 0x397   :  { %v6635_v23 = vpop.permute.xlu1 %1728  ;;  %v6637_v14 = vpop.permute.xlu0 %1726 }
 0x398   :  { %9240 = vst [vmem:[#allocation457_spill] sm:$0xff] %v6635_v23  ;;  %9241 = vst [vmem:[#allocation458_spill] sm:$0xff] %v6637_v14  ;;  %v9248_v14 = vld [vmem:[#allocation154_spill] sm:$0xff] }
 0x399   :  { %2178 = vrot.lane.b32.xlu1 %v9083_v2, %s4275_s4  ;;  %1997 = vrot.lane.b32.xlu0 %v8958_v50, %s4274_s1  ;;  %v9249_v2 = vld [vmem:[#allocation18_spill] sm:$0xff] }
 0x39b   :  { %v6643_v22 = vpop.permute.xlu1 %1732  ;;  %v6645_v7 = vpop.permute.xlu0 %1730 }
 0x39c   :  { %9242 = vst [vmem:[#allocation459_spill] sm:$0xff] %v6643_v22  ;;  %9243 = vst [vmem:[#allocation460_spill] sm:$0xff] %v6645_v7  ;;  %v9252_v7 = vld [vmem:[#allocation19_spill] sm:$0xff] }
 0x39d   :  { %1999 = vrot.lane.b32.xlu1 %v9244_v40, %s4274_s1  ;;  %2180 = vrot.lane.b32.xlu0 %v9245_v38, %s4275_s4  ;;  %v9253_v40 = vld [vmem:[#allocation159_spill] sm:$0xff] }
 0x39f   :  { %v6651_v15 = vpop.permute.xlu1 %1736  ;;  %v6653_v23 = vpop.permute.xlu0 %1734 }
 0x3a0   :  { %9246 = vst [vmem:[#allocation17_spill] sm:$0xff] %v6651_v15  ;;  %9247 = vst [vmem:[#allocation155_spill] sm:$0xff] %v6653_v23  ;;  %v9255_v23 = vld [vmem:[#allocation158_spill] sm:$0xff] }
 0x3a1   :  { %2182 = vrot.lane.b32.xlu1 %v9248_v14, %s4275_s4  ;;  %2001 = vrot.lane.b32.xlu0 %v9249_v2, %s4274_s1  ;;  %v9256_v14 = vld [vmem:[#allocation20_spill] sm:$0xff] }
 0x3a3   :  { %v6659_v50 = vpop.permute.xlu1 %1740  ;;  %v6661_v22 = vpop.permute.xlu0 %1738 }
 0x3a4   :  { %9250 = vst [vmem:[#allocation154_spill] sm:$0xff] %v6659_v50  ;;  %9251 = vst [vmem:[#allocation18_spill] sm:$0xff] %v6661_v22  ;;  %v9257_v22 = vld [vmem:[#allocation22_spill] sm:$0xff] }
 0x3a5   :  { %2003 = vrot.lane.b32.xlu1 %v9252_v7, %s4274_s1  ;;  %2184 = vrot.lane.b32.xlu0 %v9253_v40, %s4275_s4  ;;  %v9258_v7 = vld [vmem:[#allocation163_spill] sm:$0xff]  ;;  %v9269_v50 = vld [vmem:[#allocation30_spill] sm:$0xff] }
 0x3a7   :  { %v6667_v38 = vpop.permute.xlu1 %1808  ;;  %v6669_v15 = vpop.permute.xlu0 %1742 }
 0x3a8   :  { %9254 = vst [vmem:[#allocation19_spill] sm:$0xff] %v6669_v15 }
 0x3a9   :  { %2186 = vrot.lane.b32.xlu1 %v9255_v23, %s4275_s4  ;;  %2005 = vrot.lane.b32.xlu0 %v9256_v14, %s4274_s1  ;;  %v9260_v23 = vld [vmem:[#allocation21_spill] sm:$0xff] }
 0x3ab   :  { %v6675_v2 = vpop.permute.xlu1 %1812  ;;  %v6677_v32 = vpop.permute.xlu0 %1810 }
 0x3ad   :  { %2007 = vrot.lane.b32.xlu1 %v9257_v22, %s4274_s1  ;;  %2188 = vrot.lane.b32.xlu0 %v9258_v7, %s4275_s4  ;;  %v9262_v22 = vld [vmem:[#allocation167_spill] sm:$0xff] }
 0x3af   :  { %v6683_v40 = vpop.permute.xlu1 %1816  ;;  %v6685_v44 = vpop.permute.xlu0 %1814 }
 0x3b1   :  { %2190 = vrot.lane.b32.xlu1 %v9259_v9, %s4275_s4  ;;  %2009 = vrot.lane.b32.xlu0 %v9260_v23, %s4274_s1  ;;  %v9264_v9 = vld [vmem:[#allocation23_spill] sm:$0xff] }
 0x3b3   :  { %v6691_v14 = vpop.permute.xlu1 %1820  ;;  %v6693_v43 = vpop.permute.xlu0 %1818 }
 0x3b5   :  { %2011 = vrot.lane.b32.xlu1 %v9261_v49, %s4274_s1  ;;  %2192 = vrot.lane.b32.xlu0 %v9262_v22, %s4275_s4  ;;  %v9266_v49 = vld [vmem:[#allocation171_spill] sm:$0xff] }
 0x3b7   :  { %v6699_v7 = vpop.permute.xlu1 %1824  ;;  %v6701_v57 = vpop.permute.xlu0 %1822 }
 0x3b9   :  { %2194 = vrot.lane.b32.xlu1 %v9263_v45, %s4275_s4  ;;  %2013 = vrot.lane.b32.xlu0 %v9264_v9, %s4274_s1  ;;  %v9268_v45 = vld [vmem:[#allocation25_spill] sm:$0xff] }
 0x3bb   :  { %v6707_v23 = vpop.permute.xlu1 %1828  ;;  %v6709_v51 = vpop.permute.xlu0 %1826 }
 0x3bd   :  { %2015 = vrot.lane.b32.xlu1 %v9265_v12, %s4274_s1  ;;  %2196 = vrot.lane.b32.xlu0 %v9266_v49, %s4275_s4  ;;  %v9270_v12 = vld [vmem:[#allocation173_spill] sm:$0xff] }
 0x3bf   :  { %v6715_v22 = vpop.permute.xlu1 %1832  ;;  %v6717_v18 = vpop.permute.xlu0 %1830 }
 0x3c1   :  { %2198 = vrot.lane.b32.xlu1 %v9267_v60, %s4275_s4  ;;  %2017 = vrot.lane.b32.xlu0 %v9268_v45, %s4274_s1  ;;  %v9272_v60 = vld [vmem:[#allocation29_spill] sm:$0xff] }
 0x3c3   :  { %v6723_v9 = vpop.permute.xlu1 %1836  ;;  %v6725_v15 = vpop.permute.xlu0 %1834 }
 0x3c5   :  { %2019 = vrot.lane.b32.xlu1 %v9269_v50, %s4274_s1  ;;  %2200 = vrot.lane.b32.xlu0 %v9270_v12, %s4275_s4  ;;  %v9274_v50 = vld [vmem:[#allocation175_spill] sm:$0xff] }
 0x3c7   :  { %v6731_v49 = vpop.permute.xlu1 %1840  ;;  %v6733_v29 = vpop.permute.xlu0 %1838 }
 0x3c9   :  { %2202 = vrot.lane.b32.xlu1 %v9271_v34, %s4275_s4  ;;  %2021 = vrot.lane.b32.xlu0 %v9272_v60, %s4274_s1  ;;  %v9278_v34 = vld [vmem:[#allocation34_spill] sm:$0xff] }
 0x3cb   :  { %v6739_v45 = vpop.permute.xlu1 %1844  ;;  %v6741_v5 = vpop.permute.xlu0 %1842 }
 0x3cd   :  { %2023 = vrot.lane.b32.xlu1 %v9273_v55, %s4274_s1  ;;  %2204 = vrot.lane.b32.xlu0 %v9274_v50, %s4275_s4  ;;  %v9282_v55 = vld [vmem:[#allocation178_spill] sm:$0xff] }
 0x3cf   :  { %v6747_v12 = vpop.permute.xlu1 %1848  ;;  %v6749_v37 = vpop.permute.xlu0 %1846 }
 0x3d0   :  { %9275 = vst [vmem:[#allocation159_spill] sm:$0xff] %v6747_v12  ;;  %9276 = vst [vmem:[#allocation158_spill] sm:$0xff] %v6749_v37  ;;  %v9330_v12 = vld [vmem:[#allocation112_spill] sm:$0xff] }
 0x3d1   :  { %2206 = vrot.lane.b32.xlu1 %v9277_v54, %s4275_s4  ;;  %2025 = vrot.lane.b32.xlu0 %v9278_v34, %s4274_s1  ;;  %v9286_v54 = vld [vmem:[#allocation39_spill] sm:$0xff] }
 0x3d3   :  { %v6755_v60 = vpop.permute.xlu1 %1852  ;;  %v6757_v11 = vpop.permute.xlu0 %1850 }
 0x3d4   :  { %9279 = vst [vmem:[#allocation20_spill] sm:$0xff] %v6755_v60  ;;  %9280 = vst [vmem:[#allocation22_spill] sm:$0xff] %v6757_v11  ;;  %v9289_v60 = vld [vmem:[#allocation45_spill] sm:$0xff] }
 0x3d5   :  { %2027 = vrot.lane.b32.xlu1 %v9281_v39, %s4274_s1  ;;  %2208 = vrot.lane.b32.xlu0 %v9282_v55, %s4275_s4  ;;  %v9290_v39 = vld [vmem:[#allocation181_spill] sm:$0xff] }
 0x3d7   :  { %v6763_v50 = vpop.permute.xlu1 %1856  ;;  %v6765_v59 = vpop.permute.xlu0 %1854 }
 0x3d8   :  { %9283 = vst [vmem:[#allocation163_spill] sm:$0xff] %v6763_v50  ;;  %9284 = vst [vmem:[#allocation162_spill] sm:$0xff] %v6765_v59  ;;  %v9293_v59 = vld [vmem:[#allocation43_spill] sm:$0xff] }
 0x3d9   :  { %2210 = vrot.lane.b32.xlu1 %v9285_v35, %s4275_s4  ;;  %2029 = vrot.lane.b32.xlu0 %v9286_v54, %s4274_s1  ;;  %v9294_v35 = vld [vmem:[#allocation44_spill] sm:$0xff] }
 0x3db   :  { %v6771_v34 = vpop.permute.xlu1 %1860  ;;  %v6773_v61 = vpop.permute.xlu0 %1858 }
 0x3dc   :  { %9287 = vst [vmem:[#allocation21_spill] sm:$0xff] %v6771_v34  ;;  %9288 = vst [vmem:[#allocation24_spill] sm:$0xff] %v6773_v61  ;;  %v9297_v61 = vld [vmem:[#allocation50_spill] sm:$0xff] }
 0x3dd   :  { %2031 = vrot.lane.b32.xlu1 %v9289_v60, %s4274_s1  ;;  %2212 = vrot.lane.b32.xlu0 %v9290_v39, %s4275_s4  ;;  %v9298_v60 = vld [vmem:[#allocation184_spill] sm:$0xff] }
 0x3df   :  { %v6779_v55 = vpop.permute.xlu1 %1864  ;;  %v6781_v50 = vpop.permute.xlu0 %1862 }
 0x3e0   :  { %9291 = vst [vmem:[#allocation167_spill] sm:$0xff] %v6779_v55  ;;  %9292 = vst [vmem:[#allocation166_spill] sm:$0xff] %v6781_v50  ;;  %v9301_v50 = vld [vmem:[#allocation74_spill] sm:$0xff] }
 0x3e1   :  { %2214 = vrot.lane.b32.xlu1 %v9293_v59, %s4275_s4  ;;  %2033 = vrot.lane.b32.xlu0 %v9294_v35, %s4274_s1  ;;  %v9302_v59 = vld [vmem:[#allocation49_spill] sm:$0xff] }
 0x3e3   :  { %v6787_v54 = vpop.permute.xlu1 %1868  ;;  %v6789_v34 = vpop.permute.xlu0 %1866 }
 0x3e4   :  { %9295 = vst [vmem:[#allocation23_spill] sm:$0xff] %v6787_v54  ;;  %9296 = vst [vmem:[#allocation26_spill] sm:$0xff] %v6789_v34  ;;  %v9305_v34 = vld [vmem:[#allocation72_spill] sm:$0xff] }
 0x3e5   :  { %2035 = vrot.lane.b32.xlu1 %v9297_v61, %s4274_s1  ;;  %2216 = vrot.lane.b32.xlu0 %v9298_v60, %s4275_s4  ;;  %v9306_v61 = vld [vmem:[#allocation48_spill] sm:$0xff] }
 0x3e7   :  { %v6795_v39 = vpop.permute.xlu1 %1872  ;;  %v6797_v55 = vpop.permute.xlu0 %1870 }
 0x3e8   :  { %9299 = vst [vmem:[#allocation171_spill] sm:$0xff] %v6795_v39  ;;  %9300 = vst [vmem:[#allocation170_spill] sm:$0xff] %v6797_v55 }
 0x3e9   :  { %2053 = vrot.lane.b32.xlu1 %v9301_v50, %s4274_s1  ;;  %2037 = vrot.lane.b32.xlu0 %v9302_v59, %s4274_s1  ;;  %v9309_v50 = vld [vmem:[#allocation187_spill] sm:$0xff] }
 0x3eb   :  { %v6803_v35 = vpop.permute.xlu1 %1876  ;;  %v6805_v54 = vpop.permute.xlu0 %1874 }
 0x3ec   :  { %9303 = vst [vmem:[#allocation25_spill] sm:$0xff] %v6803_v35  ;;  %9304 = vst [vmem:[#allocation30_spill] sm:$0xff] %v6805_v54  ;;  %v9312_v54 = vld [vmem:[#allocation55_spill] sm:$0xff] }
 0x3ed   :  { %2055 = vrot.lane.b32.xlu1 %v9305_v34, %s4274_s1  ;;  %2218 = vrot.lane.b32.xlu0 %v9306_v61, %s4275_s4 }
 0x3ef   :  { %v6811_v60 = vpop.permute.xlu1 %1880  ;;  %v6813_v39 = vpop.permute.xlu0 %1878 }
 0x3f0   :  { %9307 = vst [vmem:[#allocation173_spill] sm:$0xff] %v6811_v60  ;;  %9308 = vst [vmem:[#allocation28_spill] sm:$0xff] %v6813_v39  ;;  %v9315_v60 = vld [vmem:[#allocation78_spill] sm:$0xff] }
 0x3f1   :  { %2236 = vrot.lane.b32.xlu1 %v9143_v47, %s4275_s4  ;;  %2220 = vrot.lane.b32.xlu0 %v9309_v50, %s4275_s4  ;;  %v9316_v47 = vld [vmem:[#allocation54_spill] sm:$0xff] }
 0x3f3   :  { %v6819_v59 = vpop.permute.xlu1 %1884  ;;  %v6821_v35 = vpop.permute.xlu0 %1882 }
 0x3f4   :  { %9310 = vst [vmem:[#allocation29_spill] sm:$0xff] %v6819_v59  ;;  %9311 = vst [vmem:[#allocation35_spill] sm:$0xff] %v6821_v35 }
 0x3f5   :  { %2039 = vrot.lane.b32.xlu1 %v9312_v54, %s4274_s1  ;;  %2238 = vrot.lane.b32.xlu0 %v9148_v28, %s4275_s4  ;;  %v9319_v54 = vld [vmem:[#allocation136_spill] sm:$0xff] }
 0x3f6   :  { %v2358_v28 = vsel %vm2357_vm5, 0.0, %v9319_v54  ;;  %v9325_v54 = vld [vmem:[#allocation354_spill] sm:$0xff] }
 0x3f7   :  { %v6827_v34 = vpop.permute.xlu1 %1888  ;;  %v6829_v61 = vpop.permute.xlu0 %1886 }
 0x3f8   :  { %9313 = vst [vmem:[#allocation175_spill] sm:$0xff] %v6827_v34  ;;  %9314 = vst [vmem:[#allocation33_spill] sm:$0xff] %v6829_v61  ;;  %v9320_v34 = vld [vmem:[#allocation77_spill] sm:$0xff] }
 0x3f9   :  { %2057 = vrot.lane.b32.xlu1 %v9315_v60, %s4274_s1  ;;  %2041 = vrot.lane.b32.xlu0 %v9316_v47, %s4274_s1  ;;  %v9321_v61 = vld [vmem:[#allocation53_spill] sm:$0xff]  ;;  %v9322_v60 = vld [vmem:[#allocation236_spill] sm:$0xff] }
 0x3fa   :  { %v6847_v47 = vsel %vm2419_vm4, %v2358_v28, %v9322_v60  ;;  %v9327_v28 = vld [vmem:[#allocation190_spill] sm:$0xff]  ;;  %v9328_v60 = vld [vmem:[#allocation299_spill] sm:$0xff] }
 0x3fb   :  { %v6835_v50 = vpop.permute.xlu1 %1892  ;;  %v6837_v59 = vpop.permute.xlu0 %1890 }
 0x3fc   :  { %9317 = vst [vmem:[#allocation34_spill] sm:$0xff] %v6835_v50  ;;  %9318 = vst [vmem:[#allocation40_spill] sm:$0xff] %v6837_v59  ;;  %v9323_v50 = vld [vmem:[#allocation296_spill] sm:$0xff] }
 0x3fd   :  { %2059 = vrot.lane.b32.xlu1 %v9320_v34, %s4274_s1  ;;  %2222 = vrot.lane.b32.xlu0 %v9321_v61, %s4275_s4  ;;  %v2482_v59 = vsel %vm2481_vm6, %v6847_v47, %v9323_v50  ;;  %v9326_v61 = vld [vmem:[#allocation198_spill] sm:$0xff] }
 0x3fe   :  { %v2547_v55 = vsel %vm2546_vm7, %v2482_v59, %v9325_v54 }
 0x3ff   :  { %v1992_v35 = vpop.permute.xlu1 %1991  ;;  %v6852_v39 = vpop.permute.xlu0 %1894  ;;  %v2612_v34 = vsel %vm2611_vm8, %v2547_v55, %v6387_v17  ;;  %v9329_v17 = vld [vmem:[#allocation357_spill] sm:$0xff] }
 0x400   :  { %9324 = vst [vmem:[#allocation178_spill] sm:$0xff] %v6852_v39  ;;  %v2677_v50 = vsel %vm2676_vm9, %v2612_v34, %v6667_v38  ;;  %v2483_v39 = vsel %vm2481_vm6, %v6847_v47, %v9328_v60  ;;  %v9332_v34 = vld [vmem:[#allocation66_spill] sm:$0xff] }
 0x401   :  { %2240 = vrot.lane.b32.xlu1 %v9326_v61, %s4275_s4  ;;  %2224 = vrot.lane.b32.xlu0 %v9327_v28, %s4275_s4  ;;  %v2742_v59 = vsel %vm2741_vm10, %v2677_v50, %v1992_v35  ;;  %v2548_v55 = vsel %vm2546_vm7, %v2483_v39, %v9329_v17  ;;  %v9331_v28 = vld [vmem:[#allocation9_spill] sm:$0xff]  ;;  %v9333_v35 = vld [vmem:[#allocation235_spill] sm:$0xff]  ;;  %v9334_v60 = vld [vmem:[#allocation202_spill] sm:$0xff] }
 0x402   :  { %v2359_v37 = vsel %vm2357_vm5, %v9331_v28, %v9330_v12  ;;  %v2613_v38 = vsel %vm2611_vm8, %v2548_v55, %v6397_v13  ;;  %v9336_v55 = vld [vmem:[#allocation356_spill] sm:$0xff] }
 0x403   :  { %v2175_v54 = vpop.permute.xlu1 %2174  ;;  %v1994_v11 = vpop.permute.xlu0 %1993  ;;  %v2421_v50 = vsel %vm2419_vm4, %v2359_v37, %v9333_v35  ;;  %v2678_v39 = vsel %vm2676_vm9, %v2613_v38, %v6677_v32  ;;  %v9338_v37 = vld [vmem:[#allocation8_spill] sm:$0xff]  ;;  %v9339_v38 = vld [vmem:[#allocation83_spill] sm:$0xff] }
 0x404   :  { %v2807_v61 = vsel %vm2806_vm11, %v2742_v59, %v2175_v54  ;;  %v9335_v59 = vld [vmem:[#allocation298_spill] sm:$0xff]  ;;  %v2743_v54 = vsel %vm2741_vm10, %v2678_v39, %v1994_v11  ;;  %v9340_v11 = vld [vmem:[#allocation240_spill] sm:$0xff] }
 0x405   :  { %2043 = vrot.lane.b32.xlu1 %v9332_v34, %s4274_s1  ;;  %4096 = vmatprep.mubr.msk.f32.mxu0 %vm2871_vm12, %v2807_v61  ;;  %v2484_v12 = vsel %vm2481_vm6, %v2421_v50, %v9335_v59  ;;  %v9337_v34 = vld [vmem:[#allocation119_spill] sm:$0xff]  ;;  %v9342_v59 = vld [vmem:[#allocation300_spill] sm:$0xff] }
 0x406   :  { %2242 = vrot.lane.b32.xlu0 %v9334_v60, %s4275_s4  ;;  %v2549_v28 = vsel %vm2546_vm7, %v2484_v12, %v9336_v55  ;;  %v2360_v35 = vsel %vm2357_vm5, %v9338_v37, %v9337_v34  ;;  %v9341_v60 = vld [vmem:[#allocation65_spill] sm:$0xff]  ;;  %v9343_v55 = vld [vmem:[#allocation359_spill] sm:$0xff] }
 0x407   :  { %v1996_v13 = vpop.permute.xlu1 %1995  ;;  %v2177_v17 = vpop.permute.xlu0 %2176  ;;  %v2614_v32 = vsel %vm2611_vm8, %v2549_v28, %v6395_v8  ;;  %v2422_v50 = vsel %vm2419_vm4, %v2360_v35, %v9340_v11  ;;  %v9344_v34 = vld [vmem:[#allocation131_spill] sm:$0xff]  ;;  %v9345_v35 = vld [vmem:[#allocation82_spill] sm:$0xff]  ;;  %v9347_v11 = vld [vmem:[#allocation61_spill] sm:$0xff] }
 0x408   :  { %v2808_v61 = vsel %vm2806_vm11, %v2743_v54, %v2177_v17  ;;  %v2679_v39 = vsel %vm2676_vm9, %v2614_v32, %v6675_v2  ;;  %v2485_v12 = vsel %vm2481_vm6, %v2422_v50, %v9342_v59  ;;  %v2361_v37 = vsel %vm2357_vm5, %v4339_v30, %v9344_v34  ;;  %v9348_v50 = vld [vmem:[#allocation96_spill] sm:$0xff]  ;;  %v9349_v59 = vld [vmem:[#allocation358_spill] sm:$0xff] }
 0x409   :  { %2061 = vrot.lane.b32.xlu1 %v9339_v38, %s4274_s1  ;;  %4097 = vmatmul.mubr.msk.f32.vlgmr.msra.gmra.mrb[0].mxu0 %vm2871_vm12, %v2808_v61  ;;  %v2744_v54 = vsel %vm2741_vm10, %v2679_v39, %v1996_v13  ;;  %v2550_v28 = vsel %vm2546_vm7, %v2485_v12, %v9343_v55  ;;  %v9346_v13 = vld [vmem:[#allocation239_spill] sm:$0xff] }
 0x40a   :  { %2045 = vrot.lane.b32.xlu0 %v9341_v60, %s4274_s1  ;;  %v2615_v2 = vsel %vm2611_vm8, %v2550_v28, %v6407_v6  ;;  %v2423_v32 = vsel %vm2419_vm4, %v2361_v37, %v9346_v13  ;;  %v9351_v28 = vld [vmem:[#allocation76_spill] sm:$0xff]  ;;  %v9353_v37 = vld [vmem:[#allocation193_spill] sm:$0xff] }
 0x40b   :  { %v2179_v8 = vpop.permute.xlu1 %2178  ;;  %v1998_v17 = vpop.permute.xlu0 %1997  ;;  %v2680_v38 = vsel %vm2676_vm9, %v2615_v2, %v6685_v44  ;;  %v2486_v30 = vsel %vm2481_vm6, %v2423_v32, %v9348_v50  ;;  %v9354_v2 = vld [vmem:[#allocation302_spill] sm:$0xff] }
 0x40c   :  { %v2809_v61 = vsel %vm2806_vm11, %v2744_v54, %v2179_v8  ;;  %v2745_v39 = vsel %vm2741_vm10, %v2680_v38, %v1998_v17  ;;  %v2551_v12 = vsel %vm2546_vm7, %v2486_v30, %v9349_v59  ;;  %v9350_v8 = vld [vmem:[#allocation137_spill] sm:$0xff]  ;;  %v9352_v17 = vld [vmem:[#allocation243_spill] sm:$0xff]  ;;  %v9355_v32 = vld [vmem:[#allocation362_spill] sm:$0xff] }
 0x40d   :  { %2063 = vrot.lane.b32.xlu1 %v9345_v35, %s4274_s1  ;;  %4099 = vmatprep.mubr.msk.f32.mxu0 %vm2871_vm12, %v2809_v61  ;;  %v2362_v55 = vsel %vm2357_vm5, %v4332_v27, %v9350_v8  ;;  %v2616_v44 = vsel %vm2611_vm8, %v2551_v12, %v6405_v26  ;;  %v9356_v50 = vld [vmem:[#allocation142_spill] sm:$0xff]  ;;  %v9359_v12 = vld [vmem:[#allocation205_spill] sm:$0xff] }
 0x40e   :  { %2226 = vrot.lane.b32.xlu0 %v9347_v11, %s4275_s4  ;;  %v2424_v61 = vsel %vm2419_vm4, %v2362_v55, %v9352_v17  ;;  %v2681_v34 = vsel %vm2676_vm9, %v2616_v44, %v6683_v40  ;;  %v2363_v30 = vsel %vm2357_vm5, %v4369_v46, %v9356_v50  ;;  %v9361_v44 = vld [vmem:[#allocation361_spill] sm:$0xff] }
 0x40f   :  { %v2000_v6 = vpop.permute.xlu1 %1999  ;;  %v2181_v60 = vpop.permute.xlu0 %2180  ;;  %v2487_v27 = vsel %vm2481_vm6, %v2424_v61, %v9354_v2  ;;  %v9362_v61 = vld [vmem:[#allocation143_spill] sm:$0xff]  ;;  %v9364_v2 = vld [vmem:[#allocation245_spill] sm:$0xff] }
 0x410   :  { %v2810_v54 = vsel %vm2806_vm11, %v2745_v39, %v2181_v60  ;;  %v2746_v35 = vsel %vm2741_vm10, %v2681_v34, %v2000_v6  ;;  %v2552_v38 = vsel %vm2546_vm7, %v2487_v27, %v9355_v32  ;;  %v9357_v39 = vld [vmem:[#allocation328_spill] sm:$0xff]  ;;  %v9358_v6 = vld [vmem:[#allocation242_spill] sm:$0xff]  ;;  %v2364_v34 = vsel %vm2357_vm5, %v4358_v42, %v9362_v61 }
 0x411   :  { %2244 = vrot.lane.b32.xlu1 %v9351_v28, %s4275_s4  ;;  %4100 = vmatmul.mubr.msk.f32.gmra.mrb[2].mxu0 %vm2871_vm12, %v2810_v54  ;;  %v2617_v40 = vsel %vm2611_vm8, %v2552_v38, %v6419_v20  ;;  %v2425_v60 = vsel %vm2419_vm4, %v2363_v30, %v9358_v6  ;;  %v9360_v54 = vld [vmem:[#allocation301_spill] sm:$0xff]  ;;  %v2426_v27 = vsel %vm2419_vm4, %v2364_v34, %v9364_v2  ;;  %v9369_v6 = vld [vmem:[#allocation90_spill] sm:$0xff]  ;;  %v9375_v34 = vld [vmem:[#allocation204_spill] sm:$0xff] }
 0x412   :  { %2228 = vrot.lane.b32.xlu0 %v9353_v37, %s4275_s4  ;;  %v2682_v59 = vsel %vm2676_vm9, %v2617_v40, %v6693_v43  ;;  %v2488_v46 = vsel %vm2481_vm6, %v2425_v60, %v9360_v54  ;;  %v9363_v37 = vld [vmem:[#allocation91_spill] sm:$0xff]  ;;  %v9368_v40 = vld [vmem:[#allocation146_spill] sm:$0xff]  ;;  %v9370_v60 = vld [vmem:[#allocation244_spill] sm:$0xff] }
 0x413   :  { %v2183_v26 = vpop.permute.xlu1 %2182  ;;  %v2002_v13 = vpop.permute.xlu0 %2001  ;;  %v2553_v28 = vsel %vm2546_vm7, %v2488_v46, %v9361_v44  ;;  %v9371_v54 = vld [vmem:[#allocation389_spill] sm:$0xff]  ;;  %v9372_v46 = vld [vmem:[#allocation10_spill] sm:$0xff] }
 0x414   :  { %v2811_v11 = vsel %vm2806_vm11, %v2746_v35, %v2183_v26  ;;  %v2747_v8 = vsel %vm2741_vm10, %v2682_v59, %v2002_v13  ;;  %v2618_v43 = vsel %vm2611_vm8, %v2553_v28, %v6417_v16  ;;  %v9365_v26 = vld [vmem:[#allocation331_spill] sm:$0xff]  ;;  %v9366_v13 = vld [vmem:[#allocation304_spill] sm:$0xff] }
 0x415   :  { %2047 = vrot.lane.b32.xlu1 %v9357_v39, %s4274_s1  ;;  %4102 = vmatprep.mubr.msk.f32.mxu0 %vm2871_vm12, %v2811_v11  ;;  %v2683_v35 = vsel %vm2676_vm9, %v2618_v43, %v6691_v14  ;;  %v2489_v42 = vsel %vm2481_vm6, %v2426_v27, %v9366_v13  ;;  %v9367_v11 = vld [vmem:[#allocation364_spill] sm:$0xff]  ;;  %v2365_v39 = vsel %vm2357_vm5, %v4390_v56, %v9368_v40  ;;  %v9376_v43 = vld [vmem:[#allocation247_spill] sm:$0xff] }
 0x416   :  { %2246 = vrot.lane.b32.xlu0 %v9359_v12, %s4275_s4  ;;  %v2554_v50 = vsel %vm2546_vm7, %v2489_v42, %v9367_v11  ;;  %v2427_v59 = vsel %vm2419_vm4, %v2365_v39, %v9370_v60  ;;  %v9377_v27 = vld [vmem:[#allocation392_spill] sm:$0xff]  ;;  %v9379_v42 = vld [vmem:[#allocation149_spill] sm:$0xff] }
 0x417   :  { %v2004_v20 = vpop.permute.xlu1 %2003  ;;  %v2185_v55 = vpop.permute.xlu0 %2184  ;;  %v2619_v14 = vsel %vm2611_vm8, %v2554_v50, %v6430_v0  ;;  %v2490_v56 = vsel %vm2481_vm6, %v2427_v59, %v9372_v46  ;;  %v9381_v50 = vld [vmem:[#allocation12_spill] sm:$0xff] }
 0x418   :  { %v2812_v17 = vsel %vm2806_vm11, %v2747_v8, %v2185_v55  ;;  %v2748_v32 = vsel %vm2741_vm10, %v2683_v35, %v2004_v20  ;;  %v2684_v12 = vsel %vm2676_vm9, %v2619_v14, %v6701_v57  ;;  %v9373_v55 = vld [vmem:[#allocation145_spill] sm:$0xff]  ;;  %v9378_v35 = vld [vmem:[#allocation11_spill] sm:$0xff]  ;;  %v9383_v14 = vld [vmem:[#allocation208_spill] sm:$0xff] }
 0x419   :  { %2065 = vrot.lane.b32.xlu1 %v9363_v37, %s4274_s1  ;;  %4103 = vmatmul.mubr.msk.f32.gmra.mrb[4].mxu0 %vm2871_vm12, %v2812_v17  ;;  %v2555_v44 = vsel %vm2546_vm7, %v2490_v56, %v9373_v55  ;;  %v9374_v17 = vld [vmem:[#allocation147_spill] sm:$0xff]  ;;  %v9386_v56 = vld [vmem:[#allocation153_spill] sm:$0xff] }
 0x41a   :  { %2049 = vrot.lane.b32.xlu0 %v9365_v26, %s4274_s1  ;;  %v2366_v61 = vsel %vm2357_vm5, %v4376_v52, %v9374_v17  ;;  %v2620_v57 = vsel %vm2611_vm8, %v2555_v44, %v6428_v10  ;;  %v9390_v17 = vld [vmem:[#allocation14_spill] sm:$0xff] }
 0x41b   :  { %v2187_v16 = vpop.permute.xlu1 %2186  ;;  %v2006_v38 = vpop.permute.xlu0 %2005  ;;  %v2428_v37 = vsel %vm2419_vm4, %v2366_v61, %v9376_v43  ;;  %v2685_v2 = vsel %vm2676_vm9, %v2620_v57, %v6699_v7 }
 0x41c   :  { %v2813_v30 = vsel %vm2806_vm11, %v2748_v32, %v2187_v16  ;;  %v2749_v8 = vsel %vm2741_vm10, %v2684_v12, %v2006_v38  ;;  %v2491_v52 = vsel %vm2481_vm6, %v2428_v37, %v9378_v35  ;;  %v9380_v38 = vld [vmem:[#allocation152_spill] sm:$0xff]  ;;  %v9393_v35 = vld [vmem:[#allocation86_spill] sm:$0xff] }
 0x41d   :  { %2067 = vrot.lane.b32.xlu1 %v9369_v6, %s4274_s1  ;;  %4105 = vmatprep.mubr.msk.f32.mxu0 %vm2871_vm12, %v2813_v30  ;;  %v2556_v32 = vsel %vm2546_vm7, %v2491_v52, %v9379_v42  ;;  %v2367_v11 = vsel %vm2357_vm5, %v4414_v4, %v9380_v38  ;;  %v9382_v30 = vld [vmem:[#allocation246_spill] sm:$0xff]  ;;  %v9384_v6 = vld [vmem:[#allocation13_spill] sm:$0xff]  ;;  %v9385_v12 = vld [vmem:[#allocation148_spill] sm:$0xff] }
 0x41e   :  { %2230 = vrot.lane.b32.xlu0 %v9371_v54, %s4275_s4  ;;  %v2621_v7 = vsel %vm2611_vm8, %v2556_v32, %v6438_v21  ;;  %v2429_v40 = vsel %vm2419_vm4, %v2367_v11, %v9382_v30  ;;  %v9394_v52 = vld [vmem:[#allocation248_spill] sm:$0xff]  ;;  %v9396_v42 = vld [vmem:[#allocation15_spill] sm:$0xff]  ;;  %v9397_v38 = vld [vmem:[#allocation150_spill] sm:$0xff] }
 0x41f   :  { %v2008_v0 = vpop.permute.xlu1 %2007  ;;  %v2189_v20 = vpop.permute.xlu0 %2188  ;;  %v2686_v39 = vsel %vm2676_vm9, %v2621_v7, %v6709_v51  ;;  %v2492_v4 = vsel %vm2481_vm6, %v2429_v40, %v9384_v6  ;;  %v9399_v40 = vld [vmem:[#allocation98_spill] sm:$0xff] }
 0x420   :  { %v2814_v28 = vsel %vm2806_vm11, %v2749_v8, %v2189_v20  ;;  %v2750_v26 = vsel %vm2741_vm10, %v2685_v2, %v2008_v0  ;;  %v2557_v54 = vsel %vm2546_vm7, %v2492_v4, %v9385_v12  ;;  %v2368_v8 = vsel %vm2357_vm5, %v4405_v1, %v9386_v56  ;;  %v9387_v0 = vld [vmem:[#allocation144_spill] sm:$0xff]  ;;  %v9388_v20 = vld [vmem:[#allocation249_spill] sm:$0xff] }
 0x421   :  { %2248 = vrot.lane.b32.xlu1 %v9375_v34, %s4275_s4  ;;  %4106 = vmatmul.mubr.msk.f32.gmra.mrb[6].mxu0 %vm2871_vm12, %v2814_v28  ;;  %v2622_v51 = vsel %vm2611_vm8, %v2557_v54, %v6436_v63  ;;  %v2430_v55 = vsel %vm2419_vm4, %v2368_v8, %v9388_v20  ;;  %v9389_v28 = vld [vmem:[#allocation93_spill] sm:$0xff]  ;;  %v9391_v34 = vld [vmem:[#allocation151_spill] sm:$0xff] }
 0x422   :  { %2232 = vrot.lane.b32.xlu0 %v9377_v27, %s4275_s4  ;;  %v2687_v44 = vsel %vm2676_vm9, %v2622_v51, %v6707_v23  ;;  %v2493_v1 = vsel %vm2481_vm6, %v2430_v55, %v9390_v17  ;;  %v9392_v2 = vld [vmem:[#allocation157_spill] sm:$0xff]  ;;  %v9406_v51 = vld [vmem:[#allocation250_spill] sm:$0xff] }
 0x423   :  { %v2191_v10 = vpop.permute.xlu1 %2190  ;;  %v2010_v13 = vpop.permute.xlu0 %2009  ;;  %v2558_v43 = vsel %vm2546_vm7, %v2493_v1, %v9391_v34  ;;  %v2369_v27 = vsel %vm2357_vm5, %v4434_v24, %v9392_v2  ;;  %v9401_v4 = vld [vmem:[#allocation305_spill] sm:$0xff]  ;;  %v9410_v34 = vld [vmem:[#allocation160_spill] sm:$0xff]  ;;  %v9412_v2 = vld [vmem:[#allocation95_spill] sm:$0xff] }
 0x424   :  { %v2815_v16 = vsel %vm2806_vm11, %v2750_v26, %v2191_v10  ;;  %v2751_v60 = vsel %vm2741_vm10, %v2686_v39, %v2010_v13  ;;  %v2623_v23 = vsel %vm2611_vm8, %v2558_v43, %v6446_v31  ;;  %v2431_v26 = vsel %vm2419_vm4, %v2369_v27, %v9394_v52  ;;  %v9395_v13 = vld [vmem:[#allocation92_spill] sm:$0xff]  ;;  %v9400_v39 = vld [vmem:[#allocation251_spill] sm:$0xff]  ;;  %v9407_v55 = vld [vmem:[#allocation97_spill] sm:$0xff] }
 0x425   :  { %2051 = vrot.lane.b32.xlu1 %v9381_v50, %s4274_s1  ;;  %4108 = vmatprep.mubr.msk.f32.mxu0 %vm2871_vm12, %v2815_v16  ;;  %v2688_v10 = vsel %vm2676_vm9, %v2623_v23, %v6717_v18  ;;  %v2494_v24 = vsel %vm2481_vm6, %v2431_v26, %v9396_v42  ;;  %v9398_v50 = vld [vmem:[#allocation156_spill] sm:$0xff]  ;;  %v2372_v43 = vsel %vm2357_vm5, %v4473_v62, %v9410_v34  ;;  %v9413_v27 = vld [vmem:[#allocation253_spill] sm:$0xff]  ;;  %v9414_v52 = vld [vmem:[#allocation214_spill] sm:$0xff] }
 0x426   :  { %2250 = vrot.lane.b32.xlu0 %v9383_v14, %s4275_s4  ;;  %v2559_v11 = vsel %vm2546_vm7, %v2494_v24, %v9397_v38  ;;  %v2370_v30 = vsel %vm2357_vm5, %v4445_v33, %v9398_v50  ;;  %v2434_v23 = vsel %vm2419_vm4, %v2372_v43, %v9413_v27  ;;  %v9415_v26 = vld [vmem:[#allocation307_spill] sm:$0xff]  ;;  %v9416_v24 = vld [vmem:[#allocation368_spill] sm:$0xff] }
 0x427   :  { %v2012_v21 = vpop.permute.xlu1 %2011  ;;  %v2193_v59 = vpop.permute.xlu0 %2192  ;;  %v2624_v18 = vsel %vm2611_vm8, %v2559_v11, %v6444_v53  ;;  %v2432_v14 = vsel %vm2419_vm4, %v2370_v30, %v9400_v39  ;;  %v2497_v62 = vsel %vm2481_vm6, %v2434_v23, %v9415_v26  ;;  %v9420_v50 = vld [vmem:[#allocation252_spill] sm:$0xff]  ;;  %v9422_v39 = vld [vmem:[#allocation306_spill] sm:$0xff]  ;;  %v9435_v43 = vld [vmem:[#allocation99_spill] sm:$0xff] }
 0x428   :  { %v2816_v46 = vsel %vm2806_vm11, %v2751_v60, %v2193_v59  ;;  %v2752_v61 = vsel %vm2741_vm10, %v2687_v44, %v2012_v21  ;;  %v2689_v6 = vsel %vm2676_vm9, %v2624_v18, %v6715_v22  ;;  %v2495_v33 = vsel %vm2481_vm6, %v2432_v14, %v9401_v4  ;;  %v9402_v59 = vld [vmem:[#allocation366_spill] sm:$0xff]  ;;  %v9404_v22 = vld [vmem:[#allocation416_spill] sm:$0xff] }
 0x429   :  { %2234 = vrot.lane.b32.xlu1 %v9387_v0, %s4275_s4  ;;  %4109 = vmatmul.mubr.msk.f32.gmra.mrb[8].mxu0 %vm2871_vm12, %v2816_v46  ;;  %v2560_v12 = vsel %vm2546_vm7, %v2495_v33, %v9402_v59  ;;  %v9403_v46 = vld [vmem:[#allocation161_spill] sm:$0xff]  ;;  %v9408_v44 = vld [vmem:[#allocation16_spill] sm:$0xff]  ;;  %v9423_v33 = vld [vmem:[#allocation367_spill] sm:$0xff] }
 0x42a   :  { %2069 = vrot.lane.b32.xlu0 %v9389_v28, %s4274_s1  ;;  %v2371_v56 = vsel %vm2357_vm5, %v4470_v58, %v9403_v46  ;;  %v2625_v8 = vsel %vm2611_vm8, %v2560_v12, %v9404_v22  ;;  %v9427_v46 = vld [vmem:[#allocation255_spill] sm:$0xff] }
 0x42b   :  { %v2195_v63 = vpop.permute.xlu1 %2194  ;;  %v2014_v57 = vpop.permute.xlu0 %2013  ;;  %v2433_v0 = vsel %vm2419_vm4, %v2371_v56, %v9406_v51  ;;  %v2690_v20 = vsel %vm2676_vm9, %v2625_v8, %v6725_v15  ;;  %v9411_v15 = vld [vmem:[#allocation415_spill] sm:$0xff] }
 0x42c   :  { %v2817_v37 = vsel %vm2806_vm11, %v2752_v61, %v2195_v63  ;;  %v2753_v32 = vsel %vm2741_vm10, %v2688_v10, %v2014_v57  ;;  %v2496_v58 = vsel %vm2481_vm6, %v2433_v0, %v9408_v44  ;;  %v9409_v61 = vld [vmem:[#allocation365_spill] sm:$0xff]  ;;  %v9428_v8 = vld [vmem:[#allocation215_spill] sm:$0xff] }
 0x42d   :  { %2252 = vrot.lane.b32.xlu1 %v9393_v35, %s4275_s4  ;;  %4111 = vmatprep.mubr.msk.f32.mxu0 %vm2871_vm12, %v2817_v37  ;;  %v2561_v63 = vsel %vm2546_vm7, %v2496_v58, %v9409_v61  ;;  %v9433_v61 = vld [vmem:[#allocation101_spill] sm:$0xff] }
 0x42e   :  { %2071 = vrot.lane.b32.xlu0 %v9395_v13, %s4274_s1  ;;  %v2626_v37 = vsel %vm2611_vm8, %v2561_v63, %v9411_v15  ;;  %v9434_v63 = vld [vmem:[#allocation254_spill] sm:$0xff]  ;;  %v9436_v15 = vld [vmem:[#allocation308_spill] sm:$0xff] }
 0x42f   :  { %v2016_v31 = vpop.permute.xlu1 %2015  ;;  %v2197_v16 = vpop.permute.xlu0 %2196  ;;  %v2691_v35 = vsel %vm2676_vm9, %v2626_v37, %v6723_v9  ;;  %v9418_v9 = vld [vmem:[#allocation418_spill] sm:$0xff] }
 0x430   :  { %v2818_v7 = vsel %vm2806_vm11, %v2753_v32, %v2197_v16  ;;  %v2754_v60 = vsel %vm2741_vm10, %v2689_v6, %v2016_v31  ;;  %v2562_v32 = vsel %vm2546_vm7, %v2497_v62, %v9416_v24  ;;  %v9417_v16 = vld [vmem:[#allocation165_spill] sm:$0xff]  ;;  %v9438_v62 = vld [vmem:[#allocation168_spill] sm:$0xff] }
 0x431   :  { %2073 = vrot.lane.b32.xlu1 %v9399_v40, %s4274_s1  ;;  %4112 = vmatmul.mubr.msk.f32.gmra.mrb[10].mxu0 %vm2871_vm12, %v2818_v7  ;;  %v2373_v38 = vsel %vm2357_vm5, %v4496_v41, %v9417_v16  ;;  %v2627_v11 = vsel %vm2611_vm8, %v2562_v32, %v9418_v9  ;;  %v9419_v7 = vld [vmem:[#allocation106_spill] sm:$0xff]  ;;  %v9421_v40 = vld [vmem:[#allocation107_spill] sm:$0xff]  ;;  %v9441_v24 = vld [vmem:[#allocation257_spill] sm:$0xff] }
 0x432   :  { %2254 = vrot.lane.b32.xlu0 %v9164_v36, %s4275_s4  ;;  %v9405_v36 = vld [vmem:[#allocation210_spill] sm:$0xff]  ;;  %v2435_v30 = vsel %vm2419_vm4, %v2373_v38, %v9420_v50  ;;  %v2692_v18 = vsel %vm2676_vm9, %v2627_v11, %v6733_v29  ;;  %v9425_v29 = vld [vmem:[#allocation417_spill] sm:$0xff]  ;;  %v9443_v38 = vld [vmem:[#allocation311_spill] sm:$0xff] }
 0x433   :  { %v2199_v53 = vpop.permute.xlu1 %2198  ;;  %v2018_v21 = vpop.permute.xlu0 %2017  ;;  %v2498_v41 = vsel %vm2481_vm6, %v2435_v30, %v9422_v39  ;;  %v9442_v16 = vld [vmem:[#allocation110_spill] sm:$0xff]  ;;  %v9444_v50 = vld [vmem:[#allocation372_spill] sm:$0xff] }
 0x434   :  { %v2819_v54 = vsel %vm2806_vm11, %v2754_v60, %v2199_v53  ;;  %v2755_v28 = vsel %vm2741_vm10, %v2690_v20, %v2018_v21  ;;  %v2563_v60 = vsel %vm2546_vm7, %v2498_v41, %v9423_v33  ;;  %v9424_v21 = vld [vmem:[#allocation164_spill] sm:$0xff]  ;;  %v9449_v33 = vld [vmem:[#allocation158_spill] sm:$0xff] }
 0x435   :  { %2256 = vrot.lane.b32.xlu1 %v9405_v36, %s4275_s4  ;;  %4114 = vmatprep.mubr.msk.f32.mxu0 %vm2871_vm12, %v2819_v54  ;;  %v2374_v59 = vsel %vm2357_vm5, %v4499_v48, %v9424_v21  ;;  %v2628_v12 = vsel %vm2611_vm8, %v2563_v60, %v9425_v29  ;;  %v9426_v54 = vld [vmem:[#allocation218_spill] sm:$0xff]  ;;  %v9429_v36 = vld [vmem:[#allocation309_spill] sm:$0xff] }
 0x436   :  { %2075 = vrot.lane.b32.xlu0 %v9407_v55, %s4274_s1  ;;  %v2436_v56 = vsel %vm2419_vm4, %v2374_v59, %v9427_v46  ;;  %v2693_v22 = vsel %vm2676_vm9, %v2628_v12, %v6731_v49  ;;  %v9430_v55 = vld [vmem:[#allocation370_spill] sm:$0xff]  ;;  %v9432_v49 = vld [vmem:[#allocation420_spill] sm:$0xff] }
 0x437   :  { %v2020_v17 = vpop.permute.xlu1 %2019  ;;  %v2201_v1 = vpop.permute.xlu0 %2200  ;;  %v2499_v48 = vsel %vm2481_vm6, %v2436_v56, %v9429_v36  ;;  %v9451_v21 = vld [vmem:[#allocation310_spill] sm:$0xff] }
 0x438   :  { %v2820_v57 = vsel %vm2806_vm11, %v2755_v28, %v2201_v1  ;;  %v2756_v10 = vsel %vm2741_vm10, %v2691_v35, %v2020_v17  ;;  %v2564_v44 = vsel %vm2546_vm7, %v2499_v48, %v9430_v55  ;;  %v9431_v28 = vld [vmem:[#allocation169_spill] sm:$0xff] }
 0x439   :  { %1896 = vrot.lane.b32.xlu1 %v9412_v2, %s4273_s20  ;;  %4115 = vmatmul.mubr.msk.f32.gmra.mrb[12].mxu0 %vm2871_vm12, %v2820_v57  ;;  %v2375_v17 = vsel %vm2357_vm5, %v8735_v19, %v9431_v28  ;;  %v2629_v1 = vsel %vm2611_vm8, %v2564_v44, %v9432_v49  ;;  %v9437_v35 = vld [vmem:[#allocation369_spill] sm:$0xff]  ;;  %v9458_v44 = vld [vmem:[#allocation159_spill] sm:$0xff] }
 0x43a   :  { %2258 = vrot.lane.b32.xlu0 %v9414_v52, %s4275_s4  ;;  %v2437_v57 = vsel %vm2419_vm4, %v2375_v17, %v9434_v63  ;;  %v2694_v34 = vsel %vm2676_vm9, %v2629_v1, %v6741_v5  ;;  %v9439_v5 = vld [vmem:[#allocation419_spill] sm:$0xff]  ;;  %v9455_v48 = vld [vmem:[#allocation421_spill] sm:$0xff] }
 0x43b   :  { %v2203_v13 = vpop.permute.xlu1 %2202  ;;  %v2022_v42 = vpop.permute.xlu0 %2021  ;;  %v2500_v19 = vsel %vm2481_vm6, %v2437_v57, %v9436_v15  ;;  %v9459_v28 = vld [vmem:[#allocation105_spill] sm:$0xff] }
 0x43c   :  { %v2821_v31 = vsel %vm2806_vm11, %v2756_v10, %v2203_v13  ;;  %v2757_v14 = vsel %vm2741_vm10, %v2692_v18, %v2022_v42  ;;  %v2565_v52 = vsel %vm2546_vm7, %v2500_v19, %v9437_v35  ;;  %v2376_v10 = vsel %vm2357_vm5, %v4525_v3, %v9438_v62  ;;  %v9440_v42 = vld [vmem:[#allocation109_spill] sm:$0xff]  ;;  %v9464_v35 = vld [vmem:[#allocation22_spill] sm:$0xff] }
 0x43d   :  { %2079 = vrot.lane.b32.xlu1 %v9419_v7, %s4274_s1  ;;  %4117 = vmatprep.mubr.msk.f32.mxu0 %vm2871_vm12, %v2821_v31  ;;  %v2630_v13 = vsel %vm2611_vm8, %v2565_v52, %v9439_v5  ;;  %v2438_v32 = vsel %vm2419_vm4, %v2376_v10, %v9441_v24  ;;  %v9460_v17 = vld [vmem:[#allocation313_spill] sm:$0xff]  ;;  %v9467_v24 = vld [vmem:[#allocation36_spill] sm:$0xff] }
 0x43e   :  { %2077 = vrot.lane.b32.xlu0 %v9421_v40, %s4274_s1  ;;  %v2695_v31 = vsel %vm2676_vm9, %v2630_v13, %v6739_v45  ;;  %v2501_v3 = vsel %vm2481_vm6, %v2438_v32, %v9443_v38  ;;  %v9445_v40 = vld [vmem:[#allocation172_spill] sm:$0xff]  ;;  %v9446_v45 = vld [vmem:[#allocation422_spill] sm:$0xff] }
 0x43f   :  { %v2024_v6 = vpop.permute.xlu1 %2023  ;;  %v2205_v4 = vpop.permute.xlu0 %2204  ;;  %v2566_v30 = vsel %vm2546_vm7, %v2501_v3, %v9444_v50  ;;  %v2377_v39 = vsel %vm2357_vm5, %v8742_v25, %v9445_v40  ;;  %v9470_v3 = vld [vmem:[#allocation103_spill] sm:$0xff] }
 0x440   :  { %v2822_v53 = vsel %vm2806_vm11, %v2757_v14, %v2205_v4  ;;  %v2758_v51 = vsel %vm2741_vm10, %v2693_v22, %v2024_v6  ;;  %v2631_v41 = vsel %vm2611_vm8, %v2566_v30, %v9446_v45  ;;  %v9447_v14 = vld [vmem:[#allocation221_spill] sm:$0xff]  ;;  %v9448_v6 = vld [vmem:[#allocation256_spill] sm:$0xff]  ;;  %v9453_v22 = vld [vmem:[#allocation27_spill] sm:$0xff] }
 0x441   :  { %2262 = vrot.lane.b32.xlu1 %v9426_v54, %s4275_s4  ;;  %4118 = vmatmul.mubr.msk.f32.gmra.mrb[14].mxu0 %vm2871_vm12, %v2822_v53  ;;  %v2439_v4 = vsel %vm2419_vm4, %v2377_v39, %v9448_v6  ;;  %v2696_v60 = vsel %vm2676_vm9, %v2631_v41, %v9449_v33  ;;  %v9450_v53 = vld [vmem:[#allocation217_spill] sm:$0xff]  ;;  %v9452_v54 = vld [vmem:[#allocation371_spill] sm:$0xff] }
 0x442   :  { %2260 = vrot.lane.b32.xlu0 %v9428_v8, %s4275_s4  ;;  %v2502_v25 = vsel %vm2481_vm6, %v2439_v4, %v9451_v21  ;;  %v9454_v8 = vld [vmem:[#allocation32_spill] sm:$0xff]  ;;  %v9472_v30 = vld [vmem:[#allocation373_spill] sm:$0xff]  ;;  %v9473_v40 = vld [vmem:[#allocation31_spill] sm:$0xff] }
 0x443   :  { %v2207_v0 = vpop.permute.xlu1 %2206  ;;  %v2026_v20 = vpop.permute.xlu0 %2025  ;;  %v2567_v46 = vsel %vm2546_vm7, %v2502_v25, %v9452_v54  ;;  %v2378_v36 = vsel %vm2357_vm5, %v9454_v8, %v9453_v22  ;;  %v9474_v39 = vld [vmem:[#allocation37_spill] sm:$0xff]  ;;  %v9475_v41 = vld [vmem:[#allocation423_spill] sm:$0xff]  ;;  %v9479_v21 = vld [vmem:[#allocation108_spill] sm:$0xff] }
 0x444   :  { %v2823_v58 = vsel %vm2806_vm11, %v2758_v51, %v2207_v0  ;;  %v2759_v37 = vsel %vm2741_vm10, %v2694_v34, %v2026_v20  ;;  %v2632_v51 = vsel %vm2611_vm8, %v2567_v46, %v9455_v48  ;;  %v9456_v0 = vld [vmem:[#allocation102_spill] sm:$0xff]  ;;  %v9457_v20 = vld [vmem:[#allocation259_spill] sm:$0xff]  ;;  %v2380_v45 = vsel %vm2357_vm5, %v9474_v39, %v9473_v40  ;;  %v9477_v4 = vld [vmem:[#allocation261_spill] sm:$0xff] }
 0x445   :  { %1900 = vrot.lane.b32.xlu1 %v9433_v61, %s4273_s20  ;;  %4120 = vmatprep.mubr.msk.f32.mxu0 %vm2871_vm12, %v2823_v58  ;;  %v2440_v55 = vsel %vm2419_vm4, %v2378_v36, %v9457_v20  ;;  %v2697_v58 = vsel %vm2676_vm9, %v2632_v51, %v9458_v44  ;;  %v9461_v34 = vld [vmem:[#allocation374_spill] sm:$0xff]  ;;  %v9476_v6 = vld [vmem:[#allocation111_spill] sm:$0xff]  ;;  %v2442_v33 = vsel %vm2419_vm4, %v2380_v45, %v9477_v4  ;;  %v9482_v22 = vld [vmem:[#allocation376_spill] sm:$0xff] }
 0x446   :  { %1898 = vrot.lane.b32.xlu0 %v9435_v43, %s4273_s20  ;;  %v2503_v49 = vsel %vm2481_vm6, %v2440_v55, %v9460_v17  ;;  %v9480_v25 = vld [vmem:[#allocation315_spill] sm:$0xff]  ;;  %v9484_v20 = vld [vmem:[#allocation426_spill] sm:$0xff]  ;;  %v9485_v44 = vld [vmem:[#allocation433_spill] sm:$0xff] }
 0x447   :  { %v2028_v27 = vpop.permute.xlu1 %2027  ;;  %v2209_v23 = vpop.permute.xlu0 %2208  ;;  %v2568_v15 = vsel %vm2546_vm7, %v2503_v49, %v9461_v34  ;;  %v9483_v36 = vld [vmem:[#allocation383_spill] sm:$0xff]  ;;  %v9486_v17 = vld [vmem:[#allocation120_spill] sm:$0xff]  ;;  %v9487_v49 = vld [vmem:[#allocation162_spill] sm:$0xff] }
 0x448   :  { %v2824_v26 = vsel %vm2806_vm11, %v2759_v37, %v2209_v23  ;;  %v2760_v9 = vsel %vm2741_vm10, %v2695_v31, %v2028_v27  ;;  %v9462_v37 = vld [vmem:[#allocation424_spill] sm:$0xff]  ;;  %v9463_v23 = vld [vmem:[#allocation113_spill] sm:$0xff]  ;;  %v9489_v34 = vld [vmem:[#allocation122_spill] sm:$0xff] }
 0x449   :  { %2083 = vrot.lane.b32.xlu1 %v9440_v42, %s4274_s1  ;;  %4121 = vmatmul.mubr.msk.f32.gmra.mrb[16].mxu0 %vm2871_vm12, %v2824_v26  ;;  %v2633_v27 = vsel %vm2611_vm8, %v2568_v15, %v9462_v37  ;;  %v9465_v26 = vld [vmem:[#allocation114_spill] sm:$0xff]  ;;  %v9468_v31 = vld [vmem:[#allocation225_spill] sm:$0xff]  ;;  %v9500_v40 = vld [vmem:[#allocation115_spill] sm:$0xff] }
 0x44a   :  { %2081 = vrot.lane.b32.xlu0 %v9442_v16, %s4274_s1  ;;  %v2698_v52 = vsel %vm2676_vm9, %v2633_v27, %v9464_v35  ;;  %v9466_v42 = vld [vmem:[#allocation174_spill] sm:$0xff]  ;;  %v9490_v15 = vld [vmem:[#allocation325_spill] sm:$0xff]  ;;  %v9502_v4 = vld [vmem:[#allocation375_spill] sm:$0xff] }
 0x44b   :  { %v2211_v11 = vpop.permute.xlu1 %2210  ;;  %v2030_v7 = vpop.permute.xlu0 %2029  ;;  %v2379_v32 = vsel %vm2357_vm5, %v9467_v24, %v9466_v42  ;;  %v9469_v16 = vld [vmem:[#allocation258_spill] sm:$0xff]  ;;  %v9493_v42 = vld [vmem:[#allocation228_spill] sm:$0xff] }
 0x44c   :  { %v2825_v18 = vsel %vm2806_vm11, %v2760_v9, %v2211_v11  ;;  %v2761_v59 = vsel %vm2741_vm10, %v2696_v60, %v2030_v7  ;;  %v2441_v38 = vsel %vm2419_vm4, %v2379_v32, %v9469_v16  ;;  %v9471_v9 = vld [vmem:[#allocation312_spill] sm:$0xff]  ;;  %v9501_v39 = vld [vmem:[#allocation314_spill] sm:$0xff] }
 0x44d   :  { %2266 = vrot.lane.b32.xlu1 %v9447_v14, %s4275_s4  ;;  %4123 = vmatprep.mubr.msk.f32.mxu0 %vm2871_vm12, %v2825_v18  ;;  %v2504_v11 = vsel %vm2481_vm6, %v2441_v38, %v9471_v9  ;;  %v9478_v60 = vld [vmem:[#allocation20_spill] sm:$0xff]  ;;  %v9496_v9 = vld [vmem:[#allocation177_spill] sm:$0xff] }
 0x44e   :  { %2264 = vrot.lane.b32.xlu0 %v9450_v53, %s4275_s4  ;;  %v2569_v18 = vsel %vm2546_vm7, %v2504_v11, %v9472_v30  ;;  %v9495_v32 = vld [vmem:[#allocation224_spill] sm:$0xff]  ;;  %v9497_v11 = vld [vmem:[#allocation41_spill] sm:$0xff] }
 0x44f   :  { %v2032_v29 = vpop.permute.xlu1 %2031  ;;  %v2213_v12 = vpop.permute.xlu0 %2212  ;;  %v2634_v14 = vsel %vm2611_vm8, %v2569_v18, %v9475_v41  ;;  %v9499_v30 = vld [vmem:[#allocation260_spill] sm:$0xff] }
 0x450   :  { %v2826_v56 = vsel %vm2806_vm11, %v2761_v59, %v2213_v12  ;;  %v2762_v1 = vsel %vm2741_vm10, %v2697_v58, %v2032_v29  ;;  %v2699_v53 = vsel %vm2676_vm9, %v2634_v14, %v9478_v60  ;;  %v2505_v59 = vsel %vm2481_vm6, %v2442_v33, %v9480_v25  ;;  %v9481_v29 = vld [vmem:[#allocation322_spill] sm:$0xff]  ;;  %v9503_v60 = vld [vmem:[#allocation176_spill] sm:$0xff] }
 0x451   :  { %1904 = vrot.lane.b32.xlu1 %v9456_v0, %s4273_s20  ;;  %4124 = vmatmul.mubr.msk.f32.gmra.mrb[18].mxu0 %vm2871_vm12, %v2826_v56  ;;  %v2514_v12 = vsel %vm2481_vm6, %v6847_v47, %v9481_v29  ;;  %v2570_v8 = vsel %vm2546_vm7, %v2505_v59, %v9482_v22  ;;  %v9505_v59 = vld [vmem:[#allocation189_spill] sm:$0xff]  ;;  %v9506_v29 = vld [vmem:[#allocation59_spill] sm:$0xff] }
 0x452   :  { %1902 = vrot.lane.b32.xlu0 %v9459_v28, %s4273_s20  ;;  %v2579_v48 = vsel %vm2546_vm7, %v2514_v12, %v9483_v36  ;;  %v2635_v55 = vsel %vm2611_vm8, %v2570_v8, %v9484_v20  ;;  %v2389_v12 = vsel %vm2357_vm5, %v9506_v29, %v9505_v59  ;;  %v9509_v22 = vld [vmem:[#allocation263_spill] sm:$0xff]  ;;  %v9510_v36 = vld [vmem:[#allocation268_spill] sm:$0xff] }
 0x453   :  { %v2215_v63 = vpop.permute.xlu1 %2214  ;;  %v2034_v57 = vpop.permute.xlu0 %2033  ;;  %v2644_v58 = vsel %vm2611_vm8, %v2579_v48, %v9485_v44  ;;  %v2451_v48 = vsel %vm2419_vm4, %v2389_v12, %v9510_v36  ;;  %v9513_v44 = vld [vmem:[#allocation317_spill] sm:$0xff] }
 0x454   :  { %v2827_v19 = vsel %vm2806_vm11, %v2762_v1, %v2215_v63  ;;  %v2763_v62 = vsel %vm2741_vm10, %v2698_v52, %v2034_v57  ;;  %v2700_v1 = vsel %vm2676_vm9, %v2635_v55, %v9487_v49  ;;  %v9488_v63 = vld [vmem:[#allocation170_spill] sm:$0xff] }
 0x455   :  { %2087 = vrot.lane.b32.xlu1 %v9463_v23, %s4274_s1  ;;  %4126 = vmatprep.mubr.msk.f32.mxu0 %vm2871_vm12, %v2827_v19  ;;  %v2709_v57 = vsel %vm2676_vm9, %v2644_v58, %v9488_v63  ;;  %v2515_v19 = vsel %vm2481_vm6, %v6847_v47, %v9490_v15  ;;  %v9491_v52 = vld [vmem:[#allocation386_spill] sm:$0xff]  ;;  %v9494_v47 = vld [vmem:[#allocation171_spill] sm:$0xff] }
 0x456   :  { %2085 = vrot.lane.b32.xlu0 %v9465_v26, %s4274_s1  ;;  %v2580_v26 = vsel %vm2546_vm7, %v2515_v19, %v9491_v52  ;;  %v9512_v55 = vld [vmem:[#allocation126_spill] sm:$0xff]  ;;  %v9516_v19 = vld [vmem:[#allocation385_spill] sm:$0xff]  ;;  %v9518_v52 = vld [vmem:[#allocation435_spill] sm:$0xff] }
 0x457   :  { %v2036_v10 = vpop.permute.xlu1 %2035  ;;  %v2217_v5 = vpop.permute.xlu0 %2216 }
 0x458   :  { %v2828_v13 = vsel %vm2806_vm11, %v2763_v62, %v2217_v5  ;;  %v2764_v54 = vsel %vm2741_vm10, %v2699_v53, %v2036_v10  ;;  %v9492_v5 = vld [vmem:[#allocation436_spill] sm:$0xff]  ;;  %v9504_v53 = vld [vmem:[#allocation42_spill] sm:$0xff] }
 0x459   :  { %2270 = vrot.lane.b32.xlu1 %v9468_v31, %s4275_s4  ;;  %4127 = vmatmul.mubr.msk.f32.gmra.mrb[20].mxu0 %vm2871_vm12, %v2828_v13  ;;  %v2645_v13 = vsel %vm2611_vm8, %v2580_v26, %v9492_v5  ;;  %v2382_v25 = vsel %vm2357_vm5, %v9504_v53, %v9503_v60  ;;  %v9521_v5 = vld [vmem:[#allocation56_spill] sm:$0xff]  ;;  %v9528_v60 = vld [vmem:[#allocation123_spill] sm:$0xff]  ;;  %v9530_v53 = vld [vmem:[#allocation121_spill] sm:$0xff] }
 0x45a   :  { %2268 = vrot.lane.b32.xlu0 %v9470_v3, %s4275_s4  ;;  %v2710_v24 = vsel %vm2676_vm9, %v2645_v13, %v9494_v47  ;;  %v2444_v8 = vsel %vm2419_vm4, %v2382_v25, %v9509_v22  ;;  %v9531_v25 = vld [vmem:[#allocation25_spill] sm:$0xff]  ;;  %v9533_v22 = vld [vmem:[#allocation180_spill] sm:$0xff] }
 0x45b   :  { %v2054_v7 = vpop.permute.xlu1 %2053  ;;  %v2038_v50 = vpop.permute.xlu0 %2037  ;;  %v2507_v58 = vsel %vm2481_vm6, %v2444_v8, %v9513_v44  ;;  %v9534_v8 = vld [vmem:[#allocation46_spill] sm:$0xff]  ;;  %v9537_v44 = vld [vmem:[#allocation316_spill] sm:$0xff] }
 0x45c   :  { %v2774_v37 = vsel %vm2741_vm10, %v2709_v57, %v2054_v7  ;;  %v2765_v27 = vsel %vm2741_vm10, %v2700_v1, %v2038_v50  ;;  %v2381_v7 = vsel %vm2357_vm5, %v9497_v11, %v9496_v9  ;;  %v9498_v50 = vld [vmem:[#allocation116_spill] sm:$0xff]  ;;  %v2383_v36 = vsel %vm2357_vm5, %v9534_v8, %v9533_v22  ;;  %v9561_v22 = vld [vmem:[#allocation166_spill] sm:$0xff] }
 0x45d   :  { %1908 = vrot.lane.b32.xlu1 %v9476_v6, %s4273_s20  ;;  %v2443_v18 = vsel %vm2419_vm4, %v2381_v7, %v9499_v30  ;;  %v9526_v30 = vld [vmem:[#allocation327_spill] sm:$0xff] }
 0x45e   :  { %1906 = vrot.lane.b32.xlu0 %v9479_v21, %s4273_s20  ;;  %v2506_v45 = vsel %vm2481_vm6, %v2443_v18, %v9501_v39 }
 0x45f   :  { %v2056_v46 = vpop.permute.xlu1 %2055  ;;  %v2219_v56 = vpop.permute.xlu0 %2218  ;;  %v2571_v33 = vsel %vm2546_vm7, %v2506_v45, %v9502_v4  ;;  %v9527_v4 = vld [vmem:[#allocation388_spill] sm:$0xff] }
 0x460   :  { %v2829_v51 = vsel %vm2806_vm11, %v2764_v54, %v2219_v56  ;;  %v2775_v31 = vsel %vm2741_vm10, %v2710_v24, %v2056_v46  ;;  %v9507_v54 = vld [vmem:[#allocation425_spill] sm:$0xff]  ;;  %v9523_v24 = vld [vmem:[#allocation30_spill] sm:$0xff] }
 0x461   :  { %2091 = vrot.lane.b32.xlu1 %v9486_v17, %s4274_s1  ;;  %4129 = vmatprep.mubr.msk.f32.mxu0 %vm2871_vm12, %v2829_v51  ;;  %v2636_v46 = vsel %vm2611_vm8, %v2571_v33, %v9507_v54  ;;  %v9508_v56 = vld [vmem:[#allocation125_spill] sm:$0xff]  ;;  %v9511_v51 = vld [vmem:[#allocation163_spill] sm:$0xff]  ;;  %v9514_v17 = vld [vmem:[#allocation324_spill] sm:$0xff] }
 0x462   :  { %2089 = vrot.lane.b32.xlu0 %v9489_v34, %s4274_s1  ;;  %v2701_v20 = vsel %vm2676_vm9, %v2636_v46, %v9511_v51  ;;  %v2516_v49 = vsel %vm2481_vm6, %v2451_v48, %v9514_v17  ;;  %v9515_v34 = vld [vmem:[#allocation378_spill] sm:$0xff]  ;;  %v9535_v48 = vld [vmem:[#allocation133_spill] sm:$0xff] }
 0x463   :  { %v2237_v23 = vpop.permute.xlu1 %2236  ;;  %v2221_v35 = vpop.permute.xlu0 %2220  ;;  %v2572_v15 = vsel %vm2546_vm7, %v2507_v58, %v9515_v34  ;;  %v9536_v51 = vld [vmem:[#allocation262_spill] sm:$0xff] }
 0x464   :  { %v2830_v62 = vsel %vm2806_vm11, %v2765_v27, %v2221_v35  ;;  %v2839_v10 = vsel %vm2806_vm11, %v2774_v37, %v2237_v23  ;;  %v2581_v37 = vsel %vm2546_vm7, %v2516_v49, %v9516_v19  ;;  %v9517_v23 = vld [vmem:[#allocation428_spill] sm:$0xff]  ;;  %v9538_v49 = vld [vmem:[#allocation191_spill] sm:$0xff] }
 0x465   :  { %2274 = vrot.lane.b32.xlu1 %v9493_v42, %s4275_s4  ;;  %4144 = vmatprep.mubr.msk.f32.mxu1 %vm2871_vm12, %v2839_v10  ;;  %v2637_v35 = vsel %vm2611_vm8, %v2572_v15, %v9517_v23  ;;  %v2646_v26 = vsel %vm2611_vm8, %v2581_v37, %v9518_v52  ;;  %v9520_v10 = vld [vmem:[#allocation188_spill] sm:$0xff]  ;;  %v9541_v15 = vld [vmem:[#allocation234_spill] sm:$0xff]  ;;  %v9542_v19 = vld [vmem:[#allocation179_spill] sm:$0xff] }
 0x466   :  { %2272 = vrot.lane.b32.xlu0 %v9495_v32, %s4275_s4  ;;  %4130 = vmatmul.mubr.msk.f32.gmra.mrb[22].mxu0 %vm2871_vm12, %v2830_v62  ;;  %v9519_v62 = vld [vmem:[#allocation231_spill] sm:$0xff]  ;;  %v2390_v13 = vsel %vm2357_vm5, %v9521_v5, %v9520_v10  ;;  %v9522_v42 = vld [vmem:[#allocation24_spill] sm:$0xff]  ;;  %v2711_v32 = vsel %vm2676_vm9, %v2646_v26, %v9523_v24  ;;  %v9544_v23 = vld [vmem:[#allocation118_spill] sm:$0xff] }
 0x467   :  { %v2040_v16 = vpop.permute.xlu1 %2039  ;;  %v2239_v38 = vpop.permute.xlu0 %2238  ;;  %v2702_v47 = vsel %vm2676_vm9, %v2637_v35, %v9522_v42  ;;  %v9543_v37 = vld [vmem:[#allocation47_spill] sm:$0xff]  ;;  %v9547_v10 = vld [vmem:[#allocation265_spill] sm:$0xff] }
 0x468   :  { %v2840_v3 = vsel %vm2806_vm11, %v2775_v31, %v2239_v38  ;;  %v2766_v1 = vsel %vm2741_vm10, %v2701_v20, %v2040_v16  ;;  %v9524_v31 = vld [vmem:[#allocation117_spill] sm:$0xff]  ;;  %v9525_v16 = vld [vmem:[#allocation270_spill] sm:$0xff]  ;;  %v2445_v20 = vsel %vm2419_vm4, %v2383_v36, %v9536_v51  ;;  %v9545_v52 = vld [vmem:[#allocation427_spill] sm:$0xff] }
 0x469   :  { %1912 = vrot.lane.b32.xlu1 %v9498_v50, %s4273_s20  ;;  %4145 = vmatmul.mubr.msk.f32.vlgmr.msra.gmra.mrb[0].mxu1 %vm2871_vm12, %v2840_v3  ;;  %v2452_v38 = vsel %vm2419_vm4, %v2390_v13, %v9525_v16  ;;  %v2508_v58 = vsel %vm2481_vm6, %v2445_v20, %v9537_v44  ;;  %v9548_v13 = vld [vmem:[#allocation326_spill] sm:$0xff] }
 0x46a   :  { %1910 = vrot.lane.b32.xlu0 %v9500_v40, %s4273_s20  ;;  %v2517_v18 = vsel %vm2481_vm6, %v2452_v38, %v9526_v30  ;;  %v9551_v38 = vld [vmem:[#allocation387_spill] sm:$0xff]  ;;  %v9562_v51 = vld [vmem:[#allocation330_spill] sm:$0xff] }
 0x46b   :  { %v2058_v41 = vpop.permute.xlu1 %2057  ;;  %v2042_v14 = vpop.permute.xlu0 %2041  ;;  %v2582_v33 = vsel %vm2546_vm7, %v2517_v18, %v9527_v4  ;;  %v9553_v18 = vld [vmem:[#allocation437_spill] sm:$0xff]  ;;  %v9554_v4 = vld [vmem:[#allocation127_spill] sm:$0xff] }
 0x46c   :  { %v2776_v3 = vsel %vm2741_vm10, %v2711_v32, %v2058_v41  ;;  %v2767_v9 = vsel %vm2741_vm10, %v2702_v47, %v2042_v14  ;;  %v9529_v41 = vld [vmem:[#allocation438_spill] sm:$0xff]  ;;  %v9549_v47 = vld [vmem:[#allocation21_spill] sm:$0xff] }
 0x46d   :  { %2095 = vrot.lane.b32.xlu1 %v9508_v56, %s4274_s1  ;;  %v2647_v14 = vsel %vm2611_vm8, %v2582_v33, %v9529_v41  ;;  %v9532_v56 = vld [vmem:[#allocation132_spill] sm:$0xff]  ;;  %v9555_v33 = vld [vmem:[#allocation57_spill] sm:$0xff]  ;;  %v9556_v41 = vld [vmem:[#allocation63_spill] sm:$0xff] }
 0x46e   :  { %2093 = vrot.lane.b32.xlu0 %v9512_v55, %s4274_s1  ;;  %v2712_v59 = vsel %vm2676_vm9, %v2647_v14, %v9531_v25  ;;  %v2392_v14 = vsel %vm2357_vm5, %v9556_v41, %v9555_v33  ;;  %v9557_v25 = vld [vmem:[#allocation430_spill] sm:$0xff]  ;;  %v9581_v33 = vld [vmem:[#allocation195_spill] sm:$0xff]  ;;  %v9582_v41 = vld [vmem:[#allocation69_spill] sm:$0xff] }
 0x46f   :  { %v2060_v63 = vpop.permute.xlu1 %2059  ;;  %v2223_v57 = vpop.permute.xlu0 %2222 }
 0x470   :  { %v2831_v27 = vsel %vm2806_vm11, %v2766_v1, %v2223_v57  ;;  %v2777_v12 = vsel %vm2741_vm10, %v2712_v59, %v2060_v63  ;;  %v9539_v1 = vld [vmem:[#allocation62_spill] sm:$0xff]  ;;  %v9540_v57 = vld [vmem:[#allocation377_spill] sm:$0xff] }
 0x471   :  { %2278 = vrot.lane.b32.xlu1 %v9519_v62, %s4275_s4  ;;  %4132 = vmatprep.mubr.msk.f32.mxu0 %vm2871_vm12, %v2831_v27  ;;  %v2391_v63 = vsel %vm2357_vm5, %v9539_v1, %v9538_v49  ;;  %v2573_v34 = vsel %vm2546_vm7, %v2508_v58, %v9540_v57  ;;  %v2384_v27 = vsel %vm2357_vm5, %v9543_v37, %v9542_v19  ;;  %v9546_v62 = vld [vmem:[#allocation230_spill] sm:$0xff]  ;;  %v9563_v1 = vld [vmem:[#allocation391_spill] sm:$0xff] }
 0x472   :  { %2276 = vrot.lane.b32.xlu0 %v9524_v31, %s4275_s4  ;;  %v2453_v35 = vsel %vm2419_vm4, %v2391_v63, %v9544_v23  ;;  %v2638_v26 = vsel %vm2611_vm8, %v2573_v34, %v9545_v52  ;;  %v2446_v5 = vsel %vm2419_vm4, %v2384_v27, %v9547_v10  ;;  %v9550_v31 = vld [vmem:[#allocation319_spill] sm:$0xff]  ;;  %v9564_v34 = vld [vmem:[#allocation138_spill] sm:$0xff] }
 0x473   :  { %v2241_v11 = vpop.permute.xlu1 %2240  ;;  %v2225_v7 = vpop.permute.xlu0 %2224  ;;  %v2518_v42 = vsel %vm2481_vm6, %v2453_v35, %v9548_v13  ;;  %v2703_v24 = vsel %vm2676_vm9, %v2638_v26, %v9549_v47  ;;  %v2509_v16 = vsel %vm2481_vm6, %v2446_v5, %v9550_v31  ;;  %v9566_v19 = vld [vmem:[#allocation139_spill] sm:$0xff]  ;;  %v9568_v26 = vld [vmem:[#allocation238_spill] sm:$0xff]  ;;  %v9571_v13 = vld [vmem:[#allocation128_spill] sm:$0xff] }
 0x474   :  { %v2841_v39 = vsel %vm2806_vm11, %v2776_v3, %v2241_v11  ;;  %v2832_v45 = vsel %vm2806_vm11, %v2767_v9, %v2225_v7  ;;  %v2583_v3 = vsel %vm2546_vm7, %v2518_v42, %v9551_v38  ;;  %v9552_v7 = vld [vmem:[#allocation380_spill] sm:$0xff]  ;;  %v9570_v10 = vld [vmem:[#allocation51_spill] sm:$0xff]  ;;  %v9572_v42 = vld [vmem:[#allocation182_spill] sm:$0xff] }
 0x475   :  { %1916 = vrot.lane.b32.xlu1 %v9528_v60, %s4273_s20  ;;  %4133 = vmatmul.mubr.msk.f32.gmra.mrb[24].mxu0 %vm2871_vm12, %v2832_v45  ;;  %v2574_v30 = vsel %vm2546_vm7, %v2509_v16, %v9552_v7  ;;  %v9573_v47 = vld [vmem:[#allocation52_spill] sm:$0xff]  ;;  %v9578_v7 = vld [vmem:[#allocation58_spill] sm:$0xff] }
 0x476   :  { %1914 = vrot.lane.b32.xlu0 %v9530_v53, %s4273_s20  ;;  %4147 = vmatprep.mubr.msk.f32.mxu1 %vm2871_vm12, %v2841_v39  ;;  %v2648_v39 = vsel %vm2611_vm8, %v2583_v3, %v9553_v18  ;;  %v2639_v59 = vsel %vm2611_vm8, %v2574_v30, %v9557_v25  ;;  %v9575_v31 = vld [vmem:[#allocation60_spill] sm:$0xff]  ;;  %v9579_v18 = vld [vmem:[#allocation194_spill] sm:$0xff] }
 0x477   :  { %v2044_v29 = vpop.permute.xlu1 %2043  ;;  %v2704_v8 = vsel %vm2676_vm9, %v2639_v59, %v9561_v22  ;;  %v9576_v38 = vld [vmem:[#allocation264_spill] sm:$0xff]  ;;  %v9583_v25 = vld [vmem:[#allocation318_spill] sm:$0xff] }
 0x478   :  { %v2243_v54 = vpop.permute.xlu0 %2242  ;;  %v2768_v9 = vsel %vm2741_vm10, %v2703_v24, %v2044_v29  ;;  %v9558_v29 = vld [vmem:[#allocation28_spill] sm:$0xff]  ;;  %v2386_v24 = vsel %vm2357_vm5, %v9573_v47, %v9572_v42  ;;  %v9600_v47 = vld [vmem:[#allocation321_spill] sm:$0xff] }
 0x479   :  { %v2842_v46 = vsel %vm2806_vm11, %v2777_v12, %v2243_v54  ;;  %2099 = vrot.lane.b32.xlu1 %v9532_v56, %s4274_s1  ;;  %v2713_v12 = vsel %vm2676_vm9, %v2648_v39, %v9558_v29  ;;  %v9559_v54 = vld [vmem:[#allocation129_spill] sm:$0xff]  ;;  %v9580_v39 = vld [vmem:[#allocation70_spill] sm:$0xff]  ;;  %v9586_v22 = vld [vmem:[#allocation232_spill] sm:$0xff] }
 0x47a   :  { %2097 = vrot.lane.b32.xlu0 %v9535_v48, %s4274_s1  ;;  %4148 = vmatmul.mubr.msk.f32.gmra.mrb[2].mxu1 %vm2871_vm12, %v2842_v46  ;;  %v9560_v46 = vld [vmem:[#allocation271_spill] sm:$0xff] }
 0x47b   :  { %v2062_v55 = vpop.permute.xlu1 %2061  ;;  %v2454_v56 = vsel %vm2419_vm4, %v2392_v14, %v9560_v46  ;;  %v2393_v14 = vsel %vm2357_vm5, %v9582_v41, %v9581_v33  ;;  %v9585_v46 = vld [vmem:[#allocation73_spill] sm:$0xff]  ;;  %v9605_v33 = vld [vmem:[#allocation140_spill] sm:$0xff] }
 0x47c   :  { %v2046_v17 = vpop.permute.xlu0 %2045  ;;  %v2778_v36 = vsel %vm2741_vm10, %v2713_v12, %v2062_v55  ;;  %v2519_v20 = vsel %vm2481_vm6, %v2454_v56, %v9562_v51  ;;  %v9565_v55 = vld [vmem:[#allocation440_spill] sm:$0xff]  ;;  %v9584_v12 = vld [vmem:[#allocation197_spill] sm:$0xff]  ;;  %v9589_v51 = vld [vmem:[#allocation134_spill] sm:$0xff] }
 0x47d   :  { %2282 = vrot.lane.b32.xlu1 %v9541_v15, %s4275_s4  ;;  %v2769_v44 = vsel %vm2741_vm10, %v2704_v8, %v2046_v17  ;;  %v2584_v63 = vsel %vm2546_vm7, %v2519_v20, %v9563_v1  ;;  %v9567_v17 = vld [vmem:[#allocation173_spill] sm:$0xff]  ;;  %v2395_v56 = vsel %vm2357_vm5, %v9585_v46, %v9584_v12  ;;  %v9587_v8 = vld [vmem:[#allocation135_spill] sm:$0xff] }
 0x47e   :  { %2280 = vrot.lane.b32.xlu0 %v9546_v62, %s4275_s4  ;;  %v2649_v15 = vsel %vm2611_vm8, %v2584_v63, %v9565_v55  ;;  %v9569_v62 = vld [vmem:[#allocation183_spill] sm:$0xff]  ;;  %v9606_v41 = vld [vmem:[#allocation297_spill] sm:$0xff] }
 0x47f   :  { %v2064_v32 = vpop.permute.xlu1 %2063  ;;  %v2714_v37 = vsel %vm2676_vm9, %v2649_v15, %v9567_v17  ;;  %v2385_v5 = vsel %vm2357_vm5, %v9570_v10, %v9569_v62  ;;  %v9592_v63 = vld [vmem:[#allocation267_spill] sm:$0xff]  ;;  %v9594_v15 = vld [vmem:[#allocation429_spill] sm:$0xff] }
 0x480   :  { %v2227_v11 = vpop.permute.xlu0 %2226  ;;  %v2779_v23 = vsel %vm2741_vm10, %v2714_v37, %v2064_v32  ;;  %v9574_v32 = vld [vmem:[#allocation185_spill] sm:$0xff]  ;;  %v2447_v3 = vsel %vm2419_vm4, %v2385_v5, %v9576_v38  ;;  %v9598_v62 = vld [vmem:[#allocation167_spill] sm:$0xff] }
 0x481   :  { %v2833_v45 = vsel %vm2806_vm11, %v2768_v9, %v2227_v11  ;;  %1920 = vrot.lane.b32.xlu1 %v9554_v4, %s4273_s20  ;;  %v2388_v16 = vsel %vm2357_vm5, %v9575_v31, %v9574_v32  ;;  %v9577_v11 = vld [vmem:[#allocation186_spill] sm:$0xff]  ;;  %v2510_v59 = vsel %vm2481_vm6, %v2447_v3, %v9583_v25  ;;  %v9595_v17 = vld [vmem:[#allocation269_spill] sm:$0xff]  ;;  %v9607_v25 = vld [vmem:[#allocation432_spill] sm:$0xff] }
 0x482   :  { %1918 = vrot.lane.b32.xlu0 %v9559_v54, %s4273_s20  ;;  %4135 = vmatprep.mubr.msk.f32.mxu0 %vm2871_vm12, %v2833_v45  ;;  %v2387_v30 = vsel %vm2357_vm5, %v9578_v7, %v9577_v11  ;;  %v2394_v45 = vsel %vm2357_vm5, %v9580_v39, %v9579_v18  ;;  %v2450_v37 = vsel %vm2419_vm4, %v2388_v16, %v9595_v17  ;;  %v9601_v32 = vld [vmem:[#allocation390_spill] sm:$0xff]  ;;  %v9604_v18 = vld [vmem:[#allocation439_spill] sm:$0xff]  ;;  %v9609_v46 = vld [vmem:[#allocation141_spill] sm:$0xff] }
 0x483   :  { %v2245_v48 = vpop.permute.xlu1 %2244  ;;  %v9602_v3 = vld [vmem:[#allocation294_spill] sm:$0xff]  ;;  %v9616_v17 = vld [vmem:[#allocation393_spill] sm:$0xff] }
 0x484   :  { %v2843_v58 = vsel %vm2806_vm11, %v2778_v36, %v2245_v48  ;;  %v2229_v49 = vpop.permute.xlu0 %2228  ;;  %v2418_v36 = vsel %vm2357_vm5, %v9587_v8, %v9586_v22  ;;  %v9588_v48 = vld [vmem:[#allocation233_spill] sm:$0xff]  ;;  %v9603_v7 = vld [vmem:[#allocation382_spill] sm:$0xff] }
 0x485   :  { %v2834_v57 = vsel %vm2806_vm11, %v2769_v44, %v2229_v49  ;;  %2103 = vrot.lane.b32.xlu1 %v9564_v34, %s4274_s1  ;;  %4150 = vmatprep.mubr.msk.f32.mxu1 %vm2871_vm12, %v2843_v58  ;;  %v2417_v20 = vsel %vm2357_vm5, %v9589_v51, %v9588_v48  ;;  %v9590_v44 = vld [vmem:[#allocation379_spill] sm:$0xff]  ;;  %v9591_v49 = vld [vmem:[#allocation266_spill] sm:$0xff] }
 0x486   :  { %2101 = vrot.lane.b32.xlu0 %v9566_v19, %s4274_s1  ;;  %4136 = vmatmul.mubr.msk.f32.gmra.mrb[26].mxu0 %vm2871_vm12, %v2834_v57  ;;  %v2575_v58 = vsel %vm2546_vm7, %v2510_v59, %v9590_v44  ;;  %v2449_v1 = vsel %vm2419_vm4, %v2387_v30, %v9591_v49  ;;  %v2448_v57 = vsel %vm2419_vm4, %v2386_v24, %v9592_v63  ;;  %v9593_v34 = vld [vmem:[#allocation130_spill] sm:$0xff]  ;;  %v9608_v59 = vld [vmem:[#allocation35_spill] sm:$0xff]  ;;  %v9614_v63 = vld [vmem:[#allocation332_spill] sm:$0xff] }
 0x487   :  { %v2048_v27 = vpop.permute.xlu1 %2047  ;;  %v2455_v55 = vsel %vm2419_vm4, %v2393_v14, %v9593_v34  ;;  %v2640_v19 = vsel %vm2611_vm8, %v2575_v58, %v9594_v15  ;;  %v2511_v24 = vsel %vm2481_vm6, %v2448_v57, %v9600_v47  ;;  %v2479_v11 = vsel %vm2419_vm4, %v2417_v20, %v9602_v3  ;;  %v9613_v58 = vld [vmem:[#allocation68_spill] sm:$0xff] }
 0x488   :  { %v2247_v35 = vpop.permute.xlu0 %2246  ;;  %v2705_v10 = vsel %vm2676_vm9, %v2640_v19, %v9598_v62  ;;  %v2576_v30 = vsel %vm2546_vm7, %v2511_v24, %v9603_v7  ;;  %v2480_v14 = vsel %vm2419_vm4, %v2418_v36, %v9606_v41  ;;  %v9615_v15 = vld [vmem:[#allocation352_spill] sm:$0xff]  ;;  %v9620_v62 = vld [vmem:[#allocation442_spill] sm:$0xff] }
 0x489   :  { %v2844_v52 = vsel %vm2806_vm11, %v2779_v23, %v2247_v35  ;;  %2286 = vrot.lane.b32.xlu1 %v9568_v26, %s4275_s4  ;;  %v9596_v23 = vld [vmem:[#allocation272_spill] sm:$0xff]  ;;  %v2770_v16 = vsel %vm2741_vm10, %v2705_v10, %v2048_v27  ;;  %v2641_v27 = vsel %vm2611_vm8, %v2576_v30, %v9607_v25  ;;  %v2544_v19 = vsel %vm2481_vm6, %v2479_v11, %v9615_v15  ;;  %v9629_v25 = vld [vmem:[#allocation154_spill] sm:$0xff] }
 0x48a   :  { %2284 = vrot.lane.b32.xlu0 %v9571_v13, %s4275_s4  ;;  %4151 = vmatmul.mubr.msk.f32.gmra.mrb[4].mxu1 %vm2871_vm12, %v2844_v52  ;;  %v2457_v35 = vsel %vm2419_vm4, %v2395_v56, %v9596_v23  ;;  %v9597_v52 = vld [vmem:[#allocation329_spill] sm:$0xff]  ;;  %v9610_v56 = vld [vmem:[#allocation320_spill] sm:$0xff] }
 0x48b   :  { %v2066_v9 = vpop.permute.xlu1 %2065  ;;  %v2520_v26 = vsel %vm2481_vm6, %v2455_v55, %v9597_v52  ;;  %v9599_v13 = vld [vmem:[#allocation273_spill] sm:$0xff]  ;;  %v2512_v22 = vsel %vm2481_vm6, %v2449_v1, %v9610_v56  ;;  %v2522_v49 = vsel %vm2481_vm6, %v2457_v35, %v9613_v58  ;;  %v9618_v35 = vld [vmem:[#allocation355_spill] sm:$0xff]  ;;  %v9623_v24 = vld [vmem:[#allocation192_spill] sm:$0xff] }
 0x48c   :  { %v2050_v29 = vpop.permute.xlu0 %2049  ;;  %v2456_v42 = vsel %vm2419_vm4, %v2394_v45, %v9599_v13  ;;  %v2585_v31 = vsel %vm2546_vm7, %v2520_v26, %v9601_v32  ;;  %v9617_v23 = vld [vmem:[#allocation241_spill] sm:$0xff]  ;;  %v2545_v52 = vsel %vm2481_vm6, %v2480_v14, %v9618_v35  ;;  %v2587_v32 = vsel %vm2546_vm7, %v2522_v49, %v9623_v24  ;;  %v9626_v7 = vld [vmem:[#allocation412_spill] sm:$0xff]  ;;  %v9631_v56 = vld [vmem:[#allocation303_spill] sm:$0xff] }
 0x48d   :  { %1924 = vrot.lane.b32.xlu1 %v9587_v8, %s4273_s20  ;;  %v2650_v39 = vsel %vm2611_vm8, %v2585_v31, %v9604_v18  ;;  %v9611_v8 = vld [vmem:[#allocation323_spill] sm:$0xff]  ;;  %v2521_v57 = vsel %vm2481_vm6, %v2456_v42, %v9614_v63  ;;  %v9621_v13 = vld [vmem:[#allocation237_spill] sm:$0xff]  ;;  %v9622_v42 = vld [vmem:[#allocation384_spill] sm:$0xff]  ;;  %v2610_v30 = vsel %vm2546_vm7, %v2545_v52, %v9626_v7 }
 0x48e   :  { %1922 = vrot.lane.b32.xlu0 %v9589_v51, %s4273_s20  ;;  %v2715_v12 = vsel %vm2676_vm9, %v2650_v39, %v9608_v59  ;;  %v2513_v48 = vsel %vm2481_vm6, %v2450_v37, %v9611_v8  ;;  %v9612_v51 = vld [vmem:[#allocation26_spill] sm:$0xff]  ;;  %v2586_v37 = vsel %vm2546_vm7, %v2521_v57, %v9616_v17  ;;  %v9627_v18 = vld [vmem:[#allocation431_spill] sm:$0xff]  ;;  %v9638_v52 = vld [vmem:[#allocation33_spill] sm:$0xff] }
 0x48f   :  { %v2068_v5 = vpop.permute.xlu1 %2067  ;;  %v2706_v36 = vsel %vm2676_vm9, %v2641_v27, %v9612_v51  ;;  %v2780_v20 = vsel %vm2741_vm10, %v2715_v12, %v2066_v9  ;;  %v2651_v10 = vsel %vm2611_vm8, %v2586_v37, %v9620_v62  ;;  %v2578_v47 = vsel %vm2546_vm7, %v2513_v48, %v9622_v42  ;;  %v9624_v31 = vld [vmem:[#allocation410_spill] sm:$0xff]  ;;  %v9630_v59 = vld [vmem:[#allocation19_spill] sm:$0xff]  ;;  %v9633_v48 = vld [vmem:[#allocation104_spill] sm:$0xff] }
 0x490   :  { %v2231_v38 = vpop.permute.xlu0 %2230  ;;  %v2771_v34 = vsel %vm2741_vm10, %v2706_v36, %v2050_v29  ;;  %v9619_v29 = vld [vmem:[#allocation381_spill] sm:$0xff]  ;;  %v2675_v12 = vsel %vm2611_vm8, %v2610_v30, %v9630_v59  ;;  %v9635_v37 = vld [vmem:[#allocation363_spill] sm:$0xff]  ;;  %v9645_v30 = vld [vmem:[#allocation414_spill] sm:$0xff] }
 0x491   :  { %v2835_v45 = vsel %vm2806_vm11, %v2770_v16, %v2231_v38  ;;  %2107 = vrot.lane.b32.xlu1 %v9605_v33, %s4274_s1  ;;  %v2577_v26 = vsel %vm2546_vm7, %v2512_v22, %v9619_v29  ;;  %v2609_v16 = vsel %vm2546_vm7, %v2544_v19, %v9624_v31  ;;  %v9625_v38 = vld [vmem:[#allocation29_spill] sm:$0xff]  ;;  %v9632_v22 = vld [vmem:[#allocation23_spill] sm:$0xff] }
 0x492   :  { %2105 = vrot.lane.b32.xlu0 %v9609_v46, %s4274_s1  ;;  %4138 = vmatprep.mubr.msk.f32.mxu0 %vm2871_vm12, %v2835_v45  ;;  %v2716_v3 = vsel %vm2676_vm9, %v2651_v10, %v9625_v38  ;;  %v2642_v39 = vsel %vm2611_vm8, %v2577_v26, %v9627_v18  ;;  %v9628_v45 = vld [vmem:[#allocation434_spill] sm:$0xff]  ;;  %v2674_v27 = vsel %vm2611_vm8, %v2609_v16, %v9629_v25  ;;  %v9634_v19 = vld [vmem:[#allocation441_spill] sm:$0xff]  ;;  %v9639_v26 = vld [vmem:[#allocation360_spill] sm:$0xff] }
 0x493   :  { %v2249_v44 = vpop.permute.xlu1 %2248  ;;  %v2643_v33 = vsel %vm2611_vm8, %v2578_v47, %v9628_v45  ;;  %v2781_v41 = vsel %vm2741_vm10, %v2716_v3, %v2068_v5  ;;  %v2707_v8 = vsel %vm2676_vm9, %v2642_v39, %v9632_v22  ;;  %v2739_v51 = vsel %vm2676_vm9, %v2674_v27, %v9632_v22  ;;  %v9640_v62 = vld [vmem:[#allocation275_spill] sm:$0xff]  ;;  %v9641_v47 = vld [vmem:[#allocation333_spill] sm:$0xff]  ;;  %v9646_v18 = vld [vmem:[#allocation274_spill] sm:$0xff] }
 0x494   :  { %v2845_v55 = vsel %vm2806_vm11, %v2780_v20, %v2249_v44  ;;  %v2233_v1 = vpop.permute.xlu0 %2232  ;;  %v2708_v5 = vsel %vm2676_vm9, %v2643_v33, %v9632_v22  ;;  %v2740_v36 = vsel %vm2676_vm9, %v2675_v12, %v9632_v22  ;;  %v2652_v17 = vsel %vm2611_vm8, %v2587_v32, %v9634_v19  ;;  %v9642_v16 = vld [vmem:[#allocation201_spill] sm:$0xff]  ;;  %v9647_v45 = vld [vmem:[#allocation444_spill] sm:$0xff]  ;;  %v9650_v27 = vld [vmem:[#allocation175_spill] sm:$0xff] }
 0x495   :  { %v2836_v9 = vsel %vm2806_vm11, %v2771_v34, %v2233_v1  ;;  %2290 = vrot.lane.b32.xlu1 %v9617_v23, %s4275_s4  ;;  %4153 = vmatprep.mubr.msk.f32.mxu1 %vm2871_vm12, %v2845_v55  ;;  %v9637_v23 = vld [vmem:[#allocation75_spill] sm:$0xff]  ;;  %v2717_v29 = vsel %vm2676_vm9, %v2652_v17, %v9638_v52  ;;  %v9643_v38 = vld [vmem:[#allocation81_spill] sm:$0xff]  ;;  %v9659_v52 = vld [vmem:[#allocation446_spill] sm:$0xff] }
 0x496   :  { %2288 = vrot.lane.b32.xlu0 %v9621_v13, %s4275_s4  ;;  %4139 = vmatmul.mubr.msk.f32.gmra.mrb[28].mxu0 %vm2871_vm12, %v2836_v9  ;;  %v9636_v9 = vld [vmem:[#allocation71_spill] sm:$0xff]  ;;  %v2397_v3 = vsel %vm2357_vm5, %v9643_v38, %v9642_v16  ;;  %v9664_v38 = vld [vmem:[#allocation84_spill] sm:$0xff] }
 0x497   :  { %v2052_v11 = vpop.permute.xlu1 %2051  ;;  %v2396_v35 = vsel %vm2357_vm5, %v9637_v23, %v9636_v9  ;;  %v2459_v39 = vsel %vm2419_vm4, %v2397_v3, %v9646_v18  ;;  %v9657_v19 = vld [vmem:[#allocation335_spill] sm:$0xff]  ;;  %v9658_v23 = vld [vmem:[#allocation394_spill] sm:$0xff] }
 0x498   :  { %v2251_v14 = vpop.permute.xlu0 %2250  ;;  %v2772_v44 = vsel %vm2741_vm10, %v2707_v8, %v2052_v11  ;;  %v2773_v58 = vsel %vm2741_vm10, %v2708_v5, %v2052_v11  ;;  %v2804_v49 = vsel %vm2741_vm10, %v2739_v51, %v2052_v11  ;;  %v2805_v63 = vsel %vm2741_vm10, %v2740_v36, %v2052_v11  ;;  %v9644_v11 = vld [vmem:[#allocation196_spill] sm:$0xff]  ;;  %v9663_v16 = vld [vmem:[#allocation203_spill] sm:$0xff] }
 0x499   :  { %v2846_v46 = vsel %vm2806_vm11, %v2781_v41, %v2251_v14  ;;  %1928 = vrot.lane.b32.xlu1 %v9631_v56, %s4273_s20  ;;  %v2458_v10 = vsel %vm2419_vm4, %v2396_v35, %v9640_v62  ;;  %v9648_v41 = vld [vmem:[#allocation413_spill] sm:$0xff]  ;;  %v9649_v14 = vld [vmem:[#allocation67_spill] sm:$0xff]  ;;  %v9653_v36 = vld [vmem:[#allocation200_spill] sm:$0xff]  ;;  %v2399_v3 = vsel %vm2357_vm5, %v9664_v38, %v9663_v16 }
 0x49a   :  { %1926 = vrot.lane.b32.xlu0 %v9633_v48, %s4273_s20  ;;  %4154 = vmatmul.mubr.msk.f32.gmra.mrb[6].mxu1 %vm2871_vm12, %v2846_v46  ;;  %v2523_v24 = vsel %vm2481_vm6, %v2458_v10, %v9641_v47  ;;  %v2524_v25 = vsel %vm2481_vm6, %v2459_v39, %v9649_v14  ;;  %v9651_v46 = vld [vmem:[#allocation64_spill] sm:$0xff]  ;;  %v9652_v48 = vld [vmem:[#allocation443_spill] sm:$0xff]  ;;  %v9667_v39 = vld [vmem:[#allocation337_spill] sm:$0xff] }
 0x49b   :  { %v2235_v20 = vpop.permute.xlu1 %2234  ;;  %v2588_v7 = vsel %vm2546_vm7, %v2523_v24, %v9644_v11  ;;  %v2589_v56 = vsel %vm2546_vm7, %v2524_v25, %v9651_v46  ;;  %v9661_v47 = vld [vmem:[#allocation80_spill] sm:$0xff]  ;;  %v9662_v24 = vld [vmem:[#allocation85_spill] sm:$0xff]  ;;  %v9665_v11 = vld [vmem:[#allocation279_spill] sm:$0xff] }
 0x49c   :  { %v2070_v57 = vpop.permute.xlu0 %2069  ;;  %v2837_v34 = vsel %vm2806_vm11, %v2772_v44, %v2235_v20  ;;  %v2838_v55 = vsel %vm2806_vm11, %v2773_v58, %v2235_v20  ;;  %v7667_v1 = vsel %vm2806_vm11, %v2804_v49, %v2235_v20  ;;  %v7670_v15 = vsel %vm2806_vm11, %v2805_v63, %v2235_v20  ;;  %v9654_v20 = vld [vmem:[#allocation79_spill] sm:$0xff]  ;;  %v9655_v58 = vld [vmem:[#allocation40_spill] sm:$0xff]  ;;  %v9656_v63 = vld [vmem:[#allocation277_spill] sm:$0xff] }
 0x49d   :  { %2111 = vrot.lane.b32.xlu1 %v9635_v37, %s4274_s1  ;;  %4141 = vmatprep.mubr.msk.f32.mxu0 %vm2871_vm12, %v2837_v34  ;;  %v2782_v13 = vsel %vm2741_vm10, %v2717_v29, %v2070_v57  ;;  %v2653_v33 = vsel %vm2611_vm8, %v2588_v7, %v9647_v45  ;;  %v2654_v5 = vsel %vm2611_vm8, %v2589_v56, %v9652_v48  ;;  %v9669_v25 = vld [vmem:[#allocation396_spill] sm:$0xff]  ;;  %v9683_v38 = vld [vmem:[#allocation395_spill] sm:$0xff] }
 0x49e   :  { %2109 = vrot.lane.b32.xlu0 %v9639_v26, %s4274_s1  ;;  %4142 = vmatmul.mubr.msk.f32.gmra.mrb[30].mxu0 %vm2871_vm12, %v2838_v55  ;;  %v2718_v59 = vsel %vm2676_vm9, %v2653_v33, %v9650_v27  ;;  %v2398_v44 = vsel %vm2357_vm5, %v9654_v20, %v9653_v36  ;;  %v2719_v49 = vsel %vm2676_vm9, %v2654_v5, %v9655_v58  ;;  %v9660_v26 = vld [vmem:[#allocation34_spill] sm:$0xff]  ;;  %v9671_v56 = vld [vmem:[#allocation448_spill] sm:$0xff] }
 0x49f   :  { %v2253_v42 = vpop.permute.xlu1 %2252  ;;  %v2460_v57 = vsel %vm2419_vm4, %v2398_v44, %v9656_v63 }
 0x4a0   :  { %v2847_v32 = vsel %vm2806_vm11, %v2782_v13, %v2253_v42  ;;  %v2072_v31 = vpop.permute.xlu0 %2071  ;;  %v2525_v17 = vsel %vm2481_vm6, %v2460_v57, %v9657_v19  ;;  %v9674_v19 = vld [vmem:[#allocation206_spill] sm:$0xff] }
 0x4a1   :  { %2294 = vrot.lane.b32.xlu1 %v9645_v30, %s4275_s4  ;;  %4156 = vmatprep.mubr.msk.f32.mxu1 %vm2871_vm12, %v2847_v32  ;;  %v2783_v22 = vsel %vm2741_vm10, %v2718_v59, %v2072_v31  ;;  %v2590_v35 = vsel %vm2546_vm7, %v2525_v17, %v9658_v23  ;;  %v2400_v32 = vsel %vm2357_vm5, %v9662_v24, %v9661_v47  ;;  %v9666_v30 = vld [vmem:[#allocation276_spill] sm:$0xff]  ;;  %v9677_v23 = vld [vmem:[#allocation87_spill] sm:$0xff] }
 0x4a2   :  { %2292 = vrot.lane.b32.xlu0 %v9648_v41, %s4275_s4  ;;  %v2655_v29 = vsel %vm2611_vm8, %v2590_v35, %v9659_v52  ;;  %v2462_v7 = vsel %vm2419_vm4, %v2400_v32, %v9665_v11  ;;  %v2461_v18 = vsel %vm2419_vm4, %v2399_v3, %v9666_v30  ;;  %v9668_v41 = vld [vmem:[#allocation334_spill] sm:$0xff]  ;;  %v9675_v17 = vld [vmem:[#allocation88_spill] sm:$0xff]  ;;  %v9678_v52 = vld [vmem:[#allocation281_spill] sm:$0xff] }
 0x4a3   :  { %v2074_v12 = vpop.permute.xlu1 %2073  ;;  %v2720_v62 = vsel %vm2676_vm9, %v2655_v29, %v9660_v26  ;;  %v2527_v45 = vsel %vm2481_vm6, %v2462_v7, %v9667_v39  ;;  %v2526_v14 = vsel %vm2481_vm6, %v2461_v18, %v9668_v41  ;;  %v9679_v26 = vld [vmem:[#allocation278_spill] sm:$0xff]  ;;  %v9681_v47 = vld [vmem:[#allocation336_spill] sm:$0xff]  ;;  %v9685_v30 = vld [vmem:[#allocation447_spill] sm:$0xff] }
 0x4a4   :  { %v2255_v8 = vpop.permute.xlu0 %2254  ;;  %v2784_v34 = vsel %vm2741_vm10, %v2719_v49, %v2074_v12  ;;  %v2592_v27 = vsel %vm2546_vm7, %v2527_v45, %v9669_v25  ;;  %v9670_v12 = vld [vmem:[#allocation199_spill] sm:$0xff]  ;;  %v9682_v32 = vld [vmem:[#allocation398_spill] sm:$0xff] }
 0x4a5   :  { %v2848_v51 = vsel %vm2806_vm11, %v2783_v22, %v2255_v8  ;;  %v2591_v46 = vsel %vm2546_vm7, %v2526_v14, %v9670_v12  ;;  %v2657_v22 = vsel %vm2611_vm8, %v2592_v27, %v9671_v56  ;;  %v9672_v8 = vld [vmem:[#allocation445_spill] sm:$0xff]  ;;  %v9684_v11 = vld [vmem:[#allocation450_spill] sm:$0xff] }
 0x4a6   :  { %4157 = vmatmul.mubr.msk.f32.gmra.mrb[8].mxu1 %vm2871_vm12, %v2848_v51  ;;  %v2656_v48 = vsel %vm2611_vm8, %v2591_v46, %v9672_v8  ;;  %v9673_v51 = vld [vmem:[#allocation178_spill] sm:$0xff]  ;;  %v9686_v56 = vld [vmem:[#allocation89_spill] sm:$0xff] }
 0x4a7   :  { %v2257_v55 = vpop.permute.xlu1 %2256  ;;  %v2721_v36 = vsel %vm2676_vm9, %v2656_v48, %v9673_v51  ;;  %v9687_v8 = vld [vmem:[#allocation209_spill] sm:$0xff]  ;;  %v9688_v48 = vld [vmem:[#allocation94_spill] sm:$0xff]  ;;  %v9689_v51 = vld [vmem:[#allocation283_spill] sm:$0xff] }
 0x4a8   :  { %v2849_v37 = vsel %vm2806_vm11, %v2784_v34, %v2257_v55  ;;  %v2076_v9 = vpop.permute.xlu0 %2075 }
 0x4a9   :  { %4159 = vmatprep.mubr.msk.f32.mxu1 %vm2871_vm12, %v2849_v37  ;;  %v2785_v13 = vsel %vm2741_vm10, %v2720_v62, %v2076_v9  ;;  %v2402_v37 = vsel %vm2357_vm5, %v9675_v17, %v9674_v19  ;;  %v9676_v9 = vld [vmem:[#allocation207_spill] sm:$0xff]  ;;  %v9694_v17 = vld [vmem:[#allocation397_spill] sm:$0xff] }
 0x4aa   :  { %v2401_v35 = vsel %vm2357_vm5, %v9677_v23, %v9676_v9  ;;  %v2464_v29 = vsel %vm2419_vm4, %v2402_v37, %v9678_v52  ;;  %v9695_v9 = vld [vmem:[#allocation452_spill] sm:$0xff] }
 0x4ab   :  { %v1897_v10 = vpop.permute.xlu1 %1896  ;;  %v2463_v62 = vsel %vm2419_vm4, %v2401_v35, %v9679_v26  ;;  %v9696_v35 = vld [vmem:[#allocation449_spill] sm:$0xff] }
 0x4ac   :  { %v2259_v42 = vpop.permute.xlu0 %2258  ;;  %v2722_v5 = vsel %vm2676_vm9, %v2657_v22, %v1897_v10  ;;  %v9680_v10 = vld [vmem:[#allocation339_spill] sm:$0xff]  ;;  %v2528_v24 = vsel %vm2481_vm6, %v2463_v62, %v9681_v47  ;;  %v2404_v22 = vsel %vm2357_vm5, %v9412_v2, %v9686_v56 }
 0x4ad   :  { %v2850_v31 = vsel %vm2806_vm11, %v2785_v13, %v2259_v42  ;;  %v2529_v13 = vsel %vm2481_vm6, %v2464_v29, %v9680_v10  ;;  %v2593_v3 = vsel %vm2546_vm7, %v2528_v24, %v9683_v38 }
 0x4ae   :  { %4160 = vmatmul.mubr.msk.f32.gmra.mrb[10].mxu1 %vm2871_vm12, %v2850_v31  ;;  %v2594_v31 = vsel %vm2546_vm7, %v2529_v13, %v9682_v32  ;;  %v2658_v18 = vsel %vm2611_vm8, %v2593_v3, %v9685_v30  ;;  %v9698_v3 = vld [vmem:[#allocation213_spill] sm:$0xff] }
 0x4af   :  { %v2080_v33 = vpop.permute.xlu1 %2079  ;;  %v2659_v7 = vsel %vm2611_vm8, %v2594_v31, %v9684_v11  ;;  %v2405_v11 = vsel %vm2357_vm5, %v9435_v43, %v9698_v3 }
 0x4b0   :  { %v2078_v59 = vpop.permute.xlu0 %2077  ;;  %v2787_v20 = vsel %vm2741_vm10, %v2722_v5, %v2080_v33  ;;  %v2403_v5 = vsel %vm2357_vm5, %v9688_v48, %v9687_v8 }
 0x4b1   :  { %v2786_v58 = vsel %vm2741_vm10, %v2721_v36, %v2078_v59  ;;  %v2466_v36 = vsel %vm2419_vm4, %v2404_v22, %v9689_v51  ;;  %v9706_v22 = vld [vmem:[#allocation451_spill] sm:$0xff] }
 0x4b3   :  { %v2263_v44 = vpop.permute.xlu1 %2262 }
 0x4b4   :  { %v2852_v49 = vsel %vm2806_vm11, %v2787_v20, %v2263_v44  ;;  %v2261_v63 = vpop.permute.xlu0 %2260  ;;  %v9690_v20 = vld [vmem:[#allocation280_spill] sm:$0xff] }
 0x4b5   :  { %v2851_v57 = vsel %vm2806_vm11, %v2786_v58, %v2261_v63  ;;  %v2465_v44 = vsel %vm2419_vm4, %v2403_v5, %v9690_v20  ;;  %v9691_v58 = vld [vmem:[#allocation341_spill] sm:$0xff] }
 0x4b6   :  { %4162 = vmatprep.mubr.msk.f32.mxu1 %vm2871_vm12, %v2851_v57  ;;  %v9692_v57 = vld [vmem:[#allocation338_spill] sm:$0xff] }
 0x4b7   :  { %4163 = vmatmul.mubr.msk.f32.gmra.mrb[12].mxu1 %vm2871_vm12, %v2852_v49  ;;  %v1901_v34 = vpop.permute.xlu1 %1900  ;;  %v2531_v49 = vsel %vm2481_vm6, %v2466_v36, %v9691_v58 }
 0x4b8   :  { %v1899_v55 = vpop.permute.xlu0 %1898  ;;  %v2724_v39 = vsel %vm2676_vm9, %v2659_v7, %v1901_v34  ;;  %v2530_v34 = vsel %vm2481_vm6, %v2465_v44, %v9692_v57  ;;  %v9699_v7 = vld [vmem:[#allocation285_spill] sm:$0xff] }
 0x4b9   :  { %v2723_v45 = vsel %vm2676_vm9, %v2658_v18, %v1899_v55  ;;  %v9693_v55 = vld [vmem:[#allocation400_spill] sm:$0xff]  ;;  %v2595_v37 = vsel %vm2546_vm7, %v2530_v34, %v9694_v17  ;;  %v9700_v18 = vld [vmem:[#allocation282_spill] sm:$0xff] }
 0x4ba   :  { %v2596_v2 = vsel %vm2546_vm7, %v2531_v49, %v9693_v55  ;;  %v2660_v52 = vsel %vm2611_vm8, %v2595_v37, %v9696_v35  ;;  %v9707_v55 = vld [vmem:[#allocation100_spill] sm:$0xff]  ;;  %v9709_v35 = vld [vmem:[#allocation287_spill] sm:$0xff] }
 0x4bb   :  { %v2084_v42 = vpop.permute.xlu1 %2083  ;;  %v2661_v23 = vsel %vm2611_vm8, %v2596_v2, %v9695_v9  ;;  %v2408_v2 = vsel %vm2357_vm5, %v9456_v0, %v9707_v55  ;;  %v9708_v9 = vld [vmem:[#allocation216_spill] sm:$0xff] }
 0x4bc   :  { %v2082_v16 = vpop.permute.xlu0 %2081  ;;  %v2789_v33 = vsel %vm2741_vm10, %v2724_v39, %v2084_v42  ;;  %v2467_v39 = vsel %vm2419_vm4, %v2405_v11, %v9700_v18  ;;  %v9714_v11 = vld [vmem:[#allocation211_spill] sm:$0xff] }
 0x4bd   :  { %v2788_v14 = vsel %vm2741_vm10, %v2723_v45, %v2082_v16  ;;  %v9697_v16 = vld [vmem:[#allocation212_spill] sm:$0xff]  ;;  %v9701_v45 = vld [vmem:[#allocation343_spill] sm:$0xff] }
 0x4be   :  { %v2406_v38 = vsel %vm2357_vm5, %v9433_v61, %v9697_v16 }
 0x4bf   :  { %v2267_v41 = vpop.permute.xlu1 %2266  ;;  %v2468_v30 = vsel %vm2419_vm4, %v2406_v38, %v9699_v7 }
 0x4c0   :  { %v2854_v25 = vsel %vm2806_vm11, %v2789_v33, %v2267_v41  ;;  %v2265_v27 = vpop.permute.xlu0 %2264  ;;  %v2533_v33 = vsel %vm2481_vm6, %v2468_v30, %v9701_v45  ;;  %v9715_v30 = vld [vmem:[#allocation456_spill] sm:$0xff]  ;;  %v9716_v45 = vld [vmem:[#allocation453_spill] sm:$0xff] }
 0x4c1   :  { %v2853_v59 = vsel %vm2806_vm11, %v2788_v14, %v2265_v27  ;;  %v9702_v14 = vld [vmem:[#allocation340_spill] sm:$0xff]  ;;  %v9703_v27 = vld [vmem:[#allocation401_spill] sm:$0xff] }
 0x4c2   :  { %4165 = vmatprep.mubr.msk.f32.mxu1 %vm2871_vm12, %v2853_v59  ;;  %v2598_v61 = vsel %vm2546_vm7, %v2533_v33, %v9703_v27 }
 0x4c3   :  { %4166 = vmatmul.mubr.msk.f32.gmra.mrb[14].mxu1 %vm2871_vm12, %v2854_v25  ;;  %v1905_v12 = vpop.permute.xlu1 %1904  ;;  %v2532_v25 = vsel %vm2481_vm6, %v2467_v39, %v9702_v14 }
 0x4c4   :  { %v1903_v46 = vpop.permute.xlu0 %1902  ;;  %v2726_v29 = vsel %vm2676_vm9, %v2661_v23, %v1905_v12  ;;  %v9704_v12 = vld [vmem:[#allocation399_spill] sm:$0xff]  ;;  %v2407_v23 = vsel %vm2357_vm5, %v9459_v28, %v9708_v9 }
 0x4c5   :  { %v2725_v26 = vsel %vm2676_vm9, %v2660_v52, %v1903_v46  ;;  %v2597_v43 = vsel %vm2546_vm7, %v2532_v25, %v9704_v12  ;;  %v9705_v46 = vld [vmem:[#allocation454_spill] sm:$0xff]  ;;  %v2470_v52 = vsel %vm2419_vm4, %v2408_v2, %v9709_v35 }
 0x4c6   :  { %v2663_v56 = vsel %vm2611_vm8, %v2598_v61, %v9705_v46  ;;  %v2662_v8 = vsel %vm2611_vm8, %v2597_v43, %v9706_v22  ;;  %v9719_v2 = vld [vmem:[#allocation286_spill] sm:$0xff] }
 0x4c7   :  { %v2088_v63 = vpop.permute.xlu1 %2087 }
 0x4c8   :  { %v2086_v19 = vpop.permute.xlu0 %2085  ;;  %v2791_v62 = vsel %vm2741_vm10, %v2726_v29, %v2088_v63 }
 0x4c9   :  { %v2790_v13 = vsel %vm2741_vm10, %v2725_v26, %v2086_v19 }
 0x4cb   :  { %v2271_v10 = vpop.permute.xlu1 %2270 }
 0x4cc   :  { %v2856_v42 = vsel %vm2806_vm11, %v2791_v62, %v2271_v10  ;;  %v2269_v47 = vpop.permute.xlu0 %2268  ;;  %v9710_v62 = vld [vmem:[#allocation284_spill] sm:$0xff] }
 0x4cd   :  { %v2855_v24 = vsel %vm2806_vm11, %v2790_v13, %v2269_v47  ;;  %v2469_v10 = vsel %vm2419_vm4, %v2407_v23, %v9710_v62  ;;  %v9711_v13 = vld [vmem:[#allocation345_spill] sm:$0xff]  ;;  %v9721_v23 = vld [vmem:[#allocation344_spill] sm:$0xff] }
 0x4ce   :  { %4168 = vmatprep.mubr.msk.f32.mxu1 %vm2871_vm12, %v2855_v24  ;;  %v2535_v0 = vsel %vm2481_vm6, %v2470_v52, %v9711_v13  ;;  %v9722_v52 = vld [vmem:[#allocation347_spill] sm:$0xff] }
 0x4cf   :  { %4169 = vmatmul.mubr.msk.f32.gmra.mrb[16].mxu1 %vm2871_vm12, %v2856_v42  ;;  %v1909_v32 = vpop.permute.xlu1 %1908 }
 0x4d0   :  { %v1907_v31 = vpop.permute.xlu0 %1906  ;;  %v2728_v48 = vsel %vm2676_vm9, %v2663_v56, %v1909_v32  ;;  %v9712_v32 = vld [vmem:[#allocation342_spill] sm:$0xff] }
 0x4d1   :  { %v2727_v5 = vsel %vm2676_vm9, %v2662_v8, %v1907_v31  ;;  %v2534_v28 = vsel %vm2481_vm6, %v2469_v10, %v9712_v32  ;;  %v9713_v31 = vld [vmem:[#allocation403_spill] sm:$0xff]  ;;  %v9724_v10 = vld [vmem:[#allocation405_spill] sm:$0xff]  ;;  %v9726_v32 = vld [vmem:[#allocation458_spill] sm:$0xff] }
 0x4d2   :  { %v2600_v16 = vsel %vm2546_vm7, %v2535_v0, %v9713_v31  ;;  %v2599_v7 = vsel %vm2546_vm7, %v2534_v28, %v9714_v11 }
 0x4d3   :  { %v2092_v41 = vpop.permute.xlu1 %2091  ;;  %v2665_v18 = vsel %vm2611_vm8, %v2600_v16, %v9715_v30  ;;  %v2664_v33 = vsel %vm2611_vm8, %v2599_v7, %v9716_v45 }
 0x4d4   :  { %v2090_v59 = vpop.permute.xlu0 %2089  ;;  %v2793_v51 = vsel %vm2741_vm10, %v2728_v48, %v2092_v41 }
 0x4d5   :  { %v2792_v20 = vsel %vm2741_vm10, %v2727_v5, %v2090_v59 }
 0x4d7   :  { %v2275_v36 = vpop.permute.xlu1 %2274 }
 0x4d8   :  { %v2858_v44 = vsel %vm2806_vm11, %v2793_v51, %v2275_v36  ;;  %v2273_v58 = vpop.permute.xlu0 %2272 }
 0x4d9   :  { %v2857_v49 = vsel %vm2806_vm11, %v2792_v20, %v2273_v58  ;;  %v9717_v58 = vld [vmem:[#allocation219_spill] sm:$0xff] }
 0x4da   :  { %4171 = vmatprep.mubr.msk.f32.mxu1 %vm2871_vm12, %v2857_v49  ;;  %v2410_v49 = vsel %vm2357_vm5, %v9476_v6, %v9717_v58 }
 0x4db   :  { %4172 = vmatmul.mubr.msk.f32.gmra.mrb[18].mxu1 %vm2871_vm12, %v2858_v44  ;;  %v1913_v63 = vpop.permute.xlu1 %1912 }
 0x4dc   :  { %v1911_v57 = vpop.permute.xlu0 %1910  ;;  %v4098_v34 = vpop.f32.mrb[0].mxu0  ;;  %v2730_v41 = vsel %vm2676_vm9, %v2665_v18, %v1913_v63  ;;  %v9718_v63 = vld [vmem:[#allocation220_spill] sm:$0xff] }
 0x4dd   :  { %v3592_v19 = vsel %vm2357_vm5, %v4098_v34, 0.0  ;;  %v3725_v17 = vmul.f32 %v4098_v34, %v4098_v34  ;;  %v3134_v37 = vpop.f32.mrb[1].mxu0  ;;  %v2729_v14 = vsel %vm2676_vm9, %v2664_v33, %v1911_v57  ;;  %v2409_v57 = vsel %vm2357_vm5, %v9479_v21, %v9718_v63  ;;  %v9723_v21 = vld [vmem:[#allocation402_spill] sm:$0xff] }
 0x4de   :  { %v3591_v29 = vsel %vm2357_vm5, %v3134_v37, 0.0  ;;  %v3724_v26 = vmul.f32 %v3134_v37, %v3134_v37  ;;  %3453 = vxpose.xlu0.b32.start [1/16] (narrow) %v3134_v37, 8 }
 0x4df   :  { %v3789_v42 = vsel %vm2357_vm5, %v3725_v17, 0.0  ;;  %v3593_v47 = vadd.f32 %v3592_v19, %v3591_v29  ;;  %v2096_v24 = vpop.permute.xlu1 %2095  ;;  %v2471_v19 = vsel %vm2419_vm4, %v2409_v57, %v9719_v2  ;;  %v9720_v17 = vld [vmem:[#allocation289_spill] sm:$0xff]  ;;  %v9730_v57 = vld [vmem:[#allocation288_spill] sm:$0xff] }
 0x4e0   :  { %v3788_v38 = vsel %vm2357_vm5, %v3724_v26, 0.0  ;;  %v2094_v3 = vpop.permute.xlu0 %2093  ;;  %v2795_v25 = vsel %vm2741_vm10, %v2730_v41, %v2096_v24  ;;  %v2472_v37 = vsel %vm2419_vm4, %v2410_v49, %v9720_v17  ;;  %v2536_v35 = vsel %vm2481_vm6, %v2471_v19, %v9721_v23  ;;  %v9732_v17 = vld [vmem:[#allocation346_spill] sm:$0xff] }
 0x4e1   :  { %v3790_v39 = vadd.f32 %v3789_v42, %v3788_v38  ;;  %v2794_v61 = vsel %vm2741_vm10, %v2729_v14, %v2094_v3  ;;  %v2537_v6 = vsel %vm2481_vm6, %v2472_v37, %v9722_v52  ;;  %v2601_v62 = vsel %vm2546_vm7, %v2536_v35, %v9723_v21  ;;  %v9733_v37 = vld [vmem:[#allocation407_spill] sm:$0xff] }
 0x4e2   :  { %3454 = vxpose.xlu0.b32.cont [2/16] (narrow) %v4098_v34, 8  ;;  %v2602_v13 = vsel %vm2546_vm7, %v2537_v6, %v9724_v10  ;;  %v9734_v6 = vld [vmem:[#allocation404_spill] sm:$0xff] }
 0x4e3   :  { %v2279_v27 = vpop.permute.xlu1 %2278  ;;  %v2667_v28 = vsel %vm2611_vm8, %v2602_v13, %v9726_v32  ;;  %v9736_v13 = vld [vmem:[#allocation457_spill] sm:$0xff] }
 0x4e4   :  { %v2860_v59 = vsel %vm2806_vm11, %v2795_v25, %v2279_v27  ;;  %v2277_v12 = vpop.permute.xlu0 %2276  ;;  %v4101_v43 = vpop.f32.mrb[2].mxu0 }
 0x4e5   :  { %v2859_v46 = vsel %vm2806_vm11, %v2794_v61, %v2277_v12  ;;  %v3144_v56 = vpop.f32.mrb[3].mxu0  ;;  %v3727_v22 = vmul.f32 %v4101_v43, %v4101_v43  ;;  %v3596_v36 = vsel %vm2357_vm5, %v4101_v43, 0.0 }
 0x4e6   :  { %v3594_v8 = vsel %vm2357_vm5, %v3144_v56, 0.0  ;;  %v3726_v48 = vmul.f32 %v3144_v56, %v3144_v56  ;;  %4174 = vmatprep.mubr.msk.f32.mxu1 %vm2871_vm12, %v2859_v46  ;;  %3455 = vxpose.xlu0.b32.cont [3/16] (narrow) %v3144_v56, 8 }
 0x4e7   :  { %v3595_v5 = vadd.f32 %v3594_v8, %v3593_v47  ;;  %4175 = vmatmul.mubr.msk.f32.gmra.mrb[20].mxu1 %vm2871_vm12, %v2860_v59  ;;  %v1917_v51 = vpop.permute.xlu1 %1916  ;;  %v3793_v9 = vsel %vm2357_vm5, %v3727_v22, 0.0  ;;  %v9725_v47 = vld [vmem:[#allocation455_spill] sm:$0xff]  ;;  %v9727_v8 = vld [vmem:[#allocation222_spill] sm:$0xff] }
 0x4e8   :  { %v3791_v20 = vsel %vm2357_vm5, %v3726_v48, 0.0  ;;  %v1915_v44 = vpop.permute.xlu0 %1914  ;;  %v2666_v24 = vsel %vm2611_vm8, %v2601_v62, %v9725_v47  ;;  %v2732_v16 = vsel %vm2676_vm9, %v2667_v28, %v1917_v51  ;;  %v2412_v48 = vsel %vm2357_vm5, %v9498_v50, %v9727_v8 }
 0x4e9   :  { %v3792_v34 = vadd.f32 %v3791_v20, %v3790_v39  ;;  %v3597_v55 = vadd.f32 %v3596_v36, %v3595_v5  ;;  %v2731_v7 = vsel %vm2676_vm9, %v2666_v24, %v1915_v44  ;;  %v9728_v5 = vld [vmem:[#allocation223_spill] sm:$0xff] }
 0x4ea   :  { %3456 = vxpose.xlu0.b32.cont [4/16] (narrow) %v4101_v43, 8  ;;  %v2411_v51 = vsel %vm2357_vm5, %v9500_v40, %v9728_v5  ;;  %v9729_v20 = vld [vmem:[#allocation291_spill] sm:$0xff] }
 0x4eb   :  { %v2100_v29 = vpop.permute.xlu1 %2099  ;;  %v3794_v26 = vadd.f32 %v3793_v9, %v3792_v34  ;;  %v2474_v44 = vsel %vm2419_vm4, %v2412_v48, %v9729_v20  ;;  %v2473_v34 = vsel %vm2419_vm4, %v2411_v51, %v9730_v57  ;;  %v9740_v48 = vld [vmem:[#allocation293_spill] sm:$0xff] }
 0x4ec   :  { %v2098_v0 = vpop.permute.xlu0 %2097  ;;  %v4104_v42 = vpop.f32.mrb[4].mxu0  ;;  %v2797_v30 = vsel %vm2741_vm10, %v2732_v16, %v2100_v29  ;;  %v2538_v40 = vsel %vm2481_vm6, %v2473_v34, %v9732_v17  ;;  %v9744_v57 = vld [vmem:[#allocation409_spill] sm:$0xff]  ;;  %v9746_v17 = vld [vmem:[#allocation155_spill] sm:$0xff] }
 0x4ed   :  { %v3154_v31 = vpop.f32.mrb[5].mxu0  ;;  %v3729_v38 = vmul.f32 %v4104_v42, %v4104_v42  ;;  %v2796_v45 = vsel %vm2741_vm10, %v2731_v7, %v2098_v0  ;;  %v3600_v33 = vsel %vm2357_vm5, %v4104_v42, 0.0  ;;  %v2603_v29 = vsel %vm2546_vm7, %v2538_v40, %v9734_v6 }
 0x4ee   :  { %v3598_v3 = vsel %vm2357_vm5, %v3154_v31, 0.0  ;;  %v3728_v11 = vmul.f32 %v3154_v31, %v3154_v31  ;;  %3457 = vxpose.xlu0.b32.cont [5/16] (narrow) %v3154_v31, 8  ;;  %v2668_v0 = vsel %vm2611_vm8, %v2603_v29, %v9736_v13 }
 0x4ef   :  { %v3599_v18 = vadd.f32 %v3598_v3, %v3597_v55  ;;  %v2283_v39 = vpop.permute.xlu1 %2282  ;;  %v3797_v12 = vsel %vm2357_vm5, %v3729_v38, 0.0  ;;  %v9731_v55 = vld [vmem:[#allocation349_spill] sm:$0xff] }
 0x4f0   :  { %v3795_v41 = vsel %vm2357_vm5, %v3728_v11, 0.0  ;;  %v2862_v14 = vsel %vm2806_vm11, %v2797_v30, %v2283_v39  ;;  %v2281_v25 = vpop.permute.xlu0 %2280  ;;  %v2539_v2 = vsel %vm2481_vm6, %v2474_v44, %v9731_v55  ;;  %v9742_v44 = vld [vmem:[#allocation351_spill] sm:$0xff] }
 0x4f1   :  { %v3796_v27 = vadd.f32 %v3795_v41, %v3794_v26  ;;  %v2861_v61 = vsel %vm2806_vm11, %v2796_v45, %v2281_v25  ;;  %v3601_v59 = vadd.f32 %v3600_v33, %v3599_v18  ;;  %v2604_v9 = vsel %vm2546_vm7, %v2539_v2, %v9733_v37  ;;  %v9735_v26 = vld [vmem:[#allocation460_spill] sm:$0xff] }
 0x4f2   :  { %4177 = vmatprep.mubr.msk.f32.mxu1 %vm2871_vm12, %v2861_v61  ;;  %3458 = vxpose.xlu0.b32.cont [6/16] (narrow) %v4104_v42, 8  ;;  %v2669_v21 = vsel %vm2611_vm8, %v2604_v9, %v9735_v26  ;;  %v9737_v61 = vld [vmem:[#allocation226_spill] sm:$0xff] }
 0x4f3   :  { %4178 = vmatmul.mubr.msk.f32.gmra.mrb[22].mxu1 %vm2871_vm12, %v2862_v14  ;;  %v1921_v43 = vpop.permute.xlu1 %1920  ;;  %v3798_v46 = vadd.f32 %v3797_v12, %v3796_v27  ;;  %v9738_v12 = vld [vmem:[#allocation227_spill] sm:$0xff] }
 0x4f4   :  { %v1919_v56 = vpop.permute.xlu0 %1918  ;;  %v4107_v22 = vpop.f32.mrb[6].mxu0  ;;  %v2734_v42 = vsel %vm2676_vm9, %v2669_v21, %v1921_v43  ;;  %v2413_v43 = vsel %vm2357_vm5, %v9530_v53, %v9738_v12  ;;  %v9743_v53 = vld [vmem:[#allocation406_spill] sm:$0xff] }
 0x4f5   :  { %v3164_v36 = vpop.f32.mrb[7].mxu0  ;;  %v3731_v58 = vmul.f32 %v4107_v22, %v4107_v22  ;;  %v3604_v23 = vsel %vm2357_vm5, %v4107_v22, 0.0  ;;  %v2733_v24 = vsel %vm2676_vm9, %v2668_v0, %v1919_v56 }
 0x4f6   :  { %v3602_v49 = vsel %vm2357_vm5, %v3164_v36, 0.0  ;;  %v3730_v63 = vmul.f32 %v3164_v36, %v3164_v36  ;;  %3459 = vxpose.xlu0.b32.cont [7/16] (narrow) %v3164_v36, 8  ;;  %v9741_v36 = vld [vmem:[#allocation348_spill] sm:$0xff] }
 0x4f7   :  { %v3603_v50 = vadd.f32 %v3602_v49, %v3601_v59  ;;  %v2104_v19 = vpop.permute.xlu1 %2103  ;;  %v3801_v47 = vsel %vm2357_vm5, %v3731_v58, 0.0  ;;  %v2414_v59 = vsel %vm2357_vm5, %v9528_v60, %v9737_v61 }
 0x4f8   :  { %v3799_v35 = vsel %vm2357_vm5, %v3730_v63, 0.0  ;;  %v2102_v52 = vpop.permute.xlu0 %2101  ;;  %v2799_v32 = vsel %vm2741_vm10, %v2734_v42, %v2104_v19  ;;  %v2476_v5 = vsel %vm2419_vm4, %v2414_v59, %v9740_v48  ;;  %v9751_v59 = vld [vmem:[#allocation353_spill] sm:$0xff] }
 0x4f9   :  { %v3800_v62 = vadd.f32 %v3799_v35, %v3798_v46  ;;  %v3605_v10 = vadd.f32 %v3604_v23, %v3603_v50  ;;  %v2798_v16 = vsel %vm2741_vm10, %v2733_v24, %v2102_v52  ;;  %v2541_v60 = vsel %vm2481_vm6, %v2476_v5, %v9742_v44  ;;  %v9745_v50 = vld [vmem:[#allocation459_spill] sm:$0xff] }
 0x4fa   :  { %3460 = vxpose.xlu0.b32.cont [8/16] (narrow) %v4107_v22, 8  ;;  %v9739_v22 = vld [vmem:[#allocation290_spill] sm:$0xff]  ;;  %v2606_v34 = vsel %vm2546_vm7, %v2541_v60, %v9744_v57 }
 0x4fb   :  { %v2287_v28 = vpop.permute.xlu1 %2286  ;;  %v3802_v31 = vadd.f32 %v3801_v47, %v3800_v62  ;;  %v2475_v8 = vsel %vm2419_vm4, %v2413_v43, %v9739_v22  ;;  %v2671_v40 = vsel %vm2611_vm8, %v2606_v34, %v9746_v17 }
 0x4fc   :  { %v2864_v38 = vsel %vm2806_vm11, %v2799_v32, %v2287_v28  ;;  %v2285_v3 = vpop.permute.xlu0 %2284  ;;  %v4110_v11 = vpop.f32.mrb[8].mxu0  ;;  %v2540_v20 = vsel %vm2481_vm6, %v2475_v8, %v9741_v36 }
 0x4fd   :  { %v2863_v7 = vsel %vm2806_vm11, %v2798_v16, %v2285_v3  ;;  %v3174_v30 = vpop.f32.mrb[9].mxu0  ;;  %v3733_v18 = vmul.f32 %v4110_v11, %v4110_v11  ;;  %v3608_v14 = vsel %vm2357_vm5, %v4110_v11, 0.0  ;;  %v2605_v63 = vsel %vm2546_vm7, %v2540_v20, %v9743_v53  ;;  %v9755_v20 = vld [vmem:[#allocation18_spill] sm:$0xff] }
 0x4fe   :  { %v3606_v39 = vsel %vm2357_vm5, %v3174_v30, 0.0  ;;  %v3732_v45 = vmul.f32 %v3174_v30, %v3174_v30  ;;  %4180 = vmatprep.mubr.msk.f32.mxu1 %vm2871_vm12, %v2863_v7  ;;  %3461 = vxpose.xlu0.b32.cont [9/16] (narrow) %v3174_v30, 8  ;;  %v2670_v19 = vsel %vm2611_vm8, %v2605_v63, %v9745_v50  ;;  %v9748_v30 = vld [vmem:[#allocation229_spill] sm:$0xff] }
 0x4ff   :  { %v3607_v33 = vadd.f32 %v3606_v39, %v3605_v10  ;;  %4181 = vmatmul.mubr.msk.f32.gmra.mrb[24].mxu1 %vm2871_vm12, %v2864_v38  ;;  %v1925_v41 = vpop.permute.xlu1 %1924  ;;  %v3805_v51 = vsel %vm2357_vm5, %v3733_v18, 0.0  ;;  %v2415_v18 = vsel %vm2357_vm5, %v9559_v54, %v9748_v30 }
 0x500   :  { %v3803_v25 = vsel %vm2357_vm5, %v3732_v45, 0.0  ;;  %v1923_v27 = vpop.permute.xlu0 %1922  ;;  %v2736_v9 = vsel %vm2676_vm9, %v2671_v40, %v1925_v41  ;;  %v9749_v45 = vld [vmem:[#allocation295_spill] sm:$0xff] }
 0x501   :  { %v3804_v46 = vadd.f32 %v3803_v25, %v3802_v31  ;;  %v3609_v56 = vadd.f32 %v3608_v14, %v3607_v33  ;;  %v2735_v6 = vsel %vm2676_vm9, %v2670_v19, %v1923_v27  ;;  %v9750_v27 = vld [vmem:[#allocation292_spill] sm:$0xff] }
 0x502   :  { %3462 = vxpose.xlu0.b32.cont [10/16] (narrow) %v4110_v11, 8  ;;  %v9747_v11 = vld [vmem:[#allocation124_spill] sm:$0xff]  ;;  %v2477_v61 = vsel %vm2419_vm4, %v2415_v18, %v9750_v27 }
 0x503   :  { %v2108_v58 = vpop.permute.xlu1 %2107  ;;  %v3806_v49 = vadd.f32 %v3805_v51, %v3804_v46  ;;  %v2416_v7 = vsel %vm2357_vm5, %v9554_v4, %v9747_v11  ;;  %v9752_v46 = vld [vmem:[#allocation350_spill] sm:$0xff]  ;;  %v9754_v51 = vld [vmem:[#allocation408_spill] sm:$0xff] }
 0x504   :  { %v2106_v55 = vpop.permute.xlu0 %2105  ;;  %v4113_v2 = vpop.f32.mrb[10].mxu0  ;;  %v2801_v29 = vsel %vm2741_vm10, %v2736_v9, %v2108_v58  ;;  %v2478_v33 = vsel %vm2419_vm4, %v2416_v7, %v9749_v45  ;;  %v2542_v54 = vsel %vm2481_vm6, %v2477_v61, %v9752_v46 }
 0x505   :  { %v3184_v37 = vpop.f32.mrb[11].mxu0  ;;  %v3735_v23 = vmul.f32 %v4113_v2, %v4113_v2  ;;  %v2800_v62 = vsel %vm2741_vm10, %v2735_v6, %v2106_v55  ;;  %v3612_v10 = vsel %vm2357_vm5, %v4113_v2, 0.0  ;;  %v2543_v12 = vsel %vm2481_vm6, %v2478_v33, %v9751_v59 }
 0x506   :  { %v3610_v35 = vsel %vm2357_vm5, %v3184_v37, 0.0  ;;  %v3734_v52 = vmul.f32 %v3184_v37, %v3184_v37  ;;  %3463 = vxpose.xlu0.b32.cont [11/16] (narrow) %v3184_v37, 8  ;;  %v2607_v36 = vsel %vm2546_vm7, %v2542_v54, %v9754_v51 }
 0x507   :  { %v3611_v26 = vadd.f32 %v3610_v35, %v3609_v56  ;;  %v2291_v21 = vpop.permute.xlu1 %2290  ;;  %v3809_v28 = vsel %vm2357_vm5, %v3735_v23, 0.0  ;;  %v9753_v56 = vld [vmem:[#allocation411_spill] sm:$0xff] }
 0x508   :  { %v3807_v13 = vsel %vm2357_vm5, %v3734_v52, 0.0  ;;  %v2866_v0 = vsel %vm2806_vm11, %v2801_v29, %v2291_v21  ;;  %v2289_v42 = vpop.permute.xlu0 %2288  ;;  %v2608_v22 = vsel %vm2546_vm7, %v2543_v12, %v9753_v56 }
 0x509   :  { %v3808_v47 = vadd.f32 %v3807_v13, %v3806_v49  ;;  %v2865_v24 = vsel %vm2806_vm11, %v2800_v62, %v2289_v42  ;;  %v3613_v32 = vadd.f32 %v3612_v10, %v3611_v26  ;;  %v2673_v44 = vsel %vm2611_vm8, %v2608_v22, %v9755_v20  ;;  %v9756_v49 = vld [vmem:[#allocation17_spill] sm:$0xff] }
 0x50a   :  { %4183 = vmatprep.mubr.msk.f32.mxu1 %vm2871_vm12, %v2865_v24  ;;  %3464 = vxpose.xlu0.b32.cont [12/16] (narrow) %v4113_v2, 8  ;;  %v2672_v53 = vsel %vm2611_vm8, %v2607_v36, %v9756_v49 }
 0x50b   :  { %4184 = vmatmul.mubr.msk.f32.gmra.mrb[26].mxu1 %vm2871_vm12, %v2866_v0  ;;  %v1929_v31 = vpop.permute.xlu1 %1928  ;;  %v3810_v16 = vadd.f32 %v3809_v28, %v3808_v47 }
 0x50c   :  { %v1927_v38 = vpop.permute.xlu0 %1926  ;;  %v4116_v3 = vpop.f32.mrb[12].mxu0  ;;  %v2738_v63 = vsel %vm2676_vm9, %v2673_v44, %v1929_v31 }
 0x50d   :  { %v3194_v39 = vpop.f32.mrb[13].mxu0  ;;  %v3737_v41 = vmul.f32 %v4116_v3, %v4116_v3  ;;  %v3616_v8 = vsel %vm2357_vm5, %v4116_v3, 0.0  ;;  %v2737_v34 = vsel %vm2676_vm9, %v2672_v53, %v1927_v38 }
 0x50e   :  { %v3614_v14 = vsel %vm2357_vm5, %v3194_v39, 0.0  ;;  %v3736_v25 = vmul.f32 %v3194_v39, %v3194_v39  ;;  %3465 = vxpose.xlu0.b32.cont [13/16] (narrow) %v3194_v39, 8 }
 0x50f   :  { %v3615_v4 = vadd.f32 %v3614_v14, %v3613_v32  ;;  %v2112_v43 = vpop.permute.xlu1 %2111  ;;  %v3813_v57 = vsel %vm2357_vm5, %v3737_v41, 0.0 }
 0x510   :  { %v3811_v48 = vsel %vm2357_vm5, %v3736_v25, 0.0  ;;  %v2110_v5 = vpop.permute.xlu0 %2109  ;;  %v2803_v55 = vsel %vm2741_vm10, %v2738_v63, %v2112_v43 }
 0x511   :  { %v3812_v60 = vadd.f32 %v3811_v48, %v3810_v16  ;;  %v3617_v58 = vadd.f32 %v3616_v8, %v3615_v4  ;;  %v2802_v19 = vsel %vm2741_vm10, %v2737_v34, %v2110_v5 }
 0x512   :  { %3466 = vxpose.xlu0.b32.cont [14/16] (narrow) %v4116_v3, 8 }
 0x513   :  { %v2295_v2 = vpop.permute.xlu1 %2294  ;;  %v3814_v50 = vadd.f32 %v3813_v57, %v3812_v60 }
 0x514   :  { %v2868_v17 = vsel %vm2806_vm11, %v2803_v55, %v2295_v2  ;;  %v2293_v40 = vpop.permute.xlu0 %2292  ;;  %v4119_v37 = vpop.f32.mrb[14].mxu0 }
 0x515   :  { %v2867_v9 = vsel %vm2806_vm11, %v2802_v19, %v2293_v40  ;;  %v3204_v23 = vpop.f32.mrb[15].mxu0  ;;  %v3739_v35 = vmul.f32 %v4119_v37, %v4119_v37  ;;  %v3620_v26 = vsel %vm2357_vm5, %v4119_v37, 0.0 }
 0x516   :  { %v3618_v52 = vsel %vm2357_vm5, %v3204_v23, 0.0  ;;  %v3738_v6 = vmul.f32 %v3204_v23, %v3204_v23  ;;  %4186 = vmatprep.mubr.msk.f32.mxu1 %vm2871_vm12, %v2867_v9  ;;  %3467 = vxpose.xlu0.b32.cont [15/16] (narrow) %v3204_v23, 8 }
 0x517   :  { %v3619_v29 = vadd.f32 %v3618_v52, %v3617_v58  ;;  %4187 = vmatmul.mubr.msk.f32.gmra.mrb[28].mxu1 %vm2871_vm12, %v2868_v17  ;;  %v3817_v13 = vsel %vm2357_vm5, %v3739_v35, 0.0 }
 0x518   :  { %v3815_v21 = vsel %vm2357_vm5, %v3738_v6, 0.0  ;;  %4189 = vmatprep.mubr.msk.f32.mxu1 %vm2871_vm12, %v7667_v1 }
 0x519   :  { %v3816_v62 = vadd.f32 %v3815_v21, %v3814_v50  ;;  %v3621_v10 = vadd.f32 %v3620_v26, %v3619_v29 }
 0x51a   :  { %3468 = vxpose.xlu0.b32.end [16/16] (narrow) %v4119_v37, 8 }
 0x51b   :  { %4190 = vmatmul.mubr.msk.f32.gmra.mrb[30].mxu1 %vm2871_vm12, %v7670_v15  ;;  %v3818_v0 = vadd.f32 %v3817_v13, %v3816_v62 }
 0x51c   :  { %v4122_v42 = vpop.f32.mrb[16].mxu0 }
 0x51d   :  { %v3214_v47 = vpop.f32.mrb[17].mxu0  ;;  %v3741_v24 = vmul.f32 %v4122_v42, %v4122_v42  ;;  %v3624_v16 = vsel %vm2357_vm5, %v4122_v42, 0.0 }
 0x51e   :  { %v3622_v32 = vsel %vm2357_vm5, %v3214_v47, 0.0  ;;  %v3740_v28 = vmul.f32 %v3214_v47, %v3214_v47  ;;  %3485 = vxpose.xlu1.b32.start [1/16] (narrow) %v3214_v47, 8 }
 0x51f   :  { %v3623_v31 = vadd.f32 %v3622_v32, %v3621_v10  ;;  %v3821_v11 = vsel %vm2357_vm5, %v3741_v24, 0.0 }
 0x520   :  { %v3819_v1 = vsel %vm2357_vm5, %v3740_v28, 0.0 }
 0x521   :  { %v3820_v38 = vadd.f32 %v3819_v1, %v3818_v0  ;;  %v3625_v3 = vadd.f32 %v3624_v16, %v3623_v31 }
 0x522   :  { %3486 = vxpose.xlu1.b32.cont [2/16] (narrow) %v4122_v42, 8 }
 0x523   :  { %v3822_v7 = vadd.f32 %v3821_v11, %v3820_v38 }
 0x524   :  { %v4125_v15 = vpop.f32.mrb[18].mxu0 }
 0x525   :  { %v3224_v30 = vpop.f32.mrb[19].mxu0  ;;  %v3743_v18 = vmul.f32 %v4125_v15, %v4125_v15  ;;  %v3628_v41 = vsel %vm2357_vm5, %v4125_v15, 0.0 }
 0x526   :  { %v3626_v39 = vsel %vm2357_vm5, %v3224_v30, 0.0  ;;  %v3742_v45 = vmul.f32 %v3224_v30, %v3224_v30  ;;  %3487 = vxpose.xlu1.b32.cont [3/16] (narrow) %v3224_v30, 8 }
 0x527   :  { %v3627_v33 = vadd.f32 %v3626_v39, %v3625_v3  ;;  %v3825_v61 = vsel %vm2357_vm5, %v3743_v18, 0.0 }
 0x528   :  { %v3823_v14 = vsel %vm2357_vm5, %v3742_v45, 0.0 }
 0x529   :  { %v3824_v25 = vadd.f32 %v3823_v14, %v3822_v7  ;;  %v3629_v27 = vadd.f32 %v3628_v41, %v3627_v33 }
 0x52a   :  { %3488 = vxpose.xlu1.b32.cont [4/16] (narrow) %v4125_v15, 8 }
 0x52b   :  { %v3826_v59 = vadd.f32 %v3825_v61, %v3824_v25 }
 0x52c   :  { %v4128_v12 = vpop.f32.mrb[20].mxu0 }
 0x52d   :  { %v3234_v4 = vpop.f32.mrb[21].mxu0  ;;  %v3745_v43 = vmul.f32 %v4128_v12, %v4128_v12  ;;  %v3632_v22 = vsel %vm2357_vm5, %v4128_v12, 0.0 }
 0x52e   :  { %v3630_v46 = vsel %vm2357_vm5, %v3234_v4, 0.0  ;;  %v3744_v54 = vmul.f32 %v3234_v4, %v3234_v4  ;;  %3489 = vxpose.xlu1.b32.cont [5/16] (narrow) %v3234_v4, 8 }
 0x52f   :  { %v3631_v56 = vadd.f32 %v3630_v46, %v3629_v27  ;;  %v3829_v51 = vsel %vm2357_vm5, %v3745_v43, 0.0 }
 0x530   :  { %v3827_v8 = vsel %vm2357_vm5, %v3744_v54, 0.0 }
 0x531   :  { %v3828_v48 = vadd.f32 %v3827_v8, %v3826_v59  ;;  %v3633_v5 = vadd.f32 %v3632_v22, %v3631_v56 }
 0x532   :  { %3490 = vxpose.xlu1.b32.cont [6/16] (narrow) %v4128_v12, 8 }
 0x533   :  { %v3830_v36 = vadd.f32 %v3829_v51, %v3828_v48 }
 0x539   :  { %v4131_v20 = vpop.f32.mrb[22].mxu0 }
 0x53a   :  { %v3244_v44 = vpop.f32.mrb[23].mxu0  ;;  %v3747_v60 = vmul.f32 %v4131_v20, %v4131_v20  ;;  %v3636_v57 = vsel %vm2357_vm5, %v4131_v20, 0.0 }
 0x53b   :  { %v3634_v58 = vsel %vm2357_vm5, %v3244_v44, 0.0  ;;  %v3746_v49 = vmul.f32 %v3244_v44, %v3244_v44  ;;  %3491 = vxpose.xlu1.b32.cont [7/16] (narrow) %v3244_v44, 8 }
 0x53c   :  { %v3635_v53 = vadd.f32 %v3634_v58, %v3633_v5  ;;  %v8057_v63 = vpop.f32.mrb[0].mxu1  ;;  %v3833_v19 = vsel %vm2357_vm5, %v3747_v60, 0.0 }
 0x53d   :  { %v3831_v34 = vsel %vm2357_vm5, %v3746_v49, 0.0  ;;  %v8061_v55 = vpop.f32.mrb[1].mxu1  ;;  %v3757_v58 = vmul.f32 %v8057_v63, %v8057_v63 }
 0x53e   :  { %v3832_v2 = vadd.f32 %v3831_v34, %v3830_v36  ;;  %3517 = vxpose.xlu0.b32.start [1/16] (narrow) %v8061_v55, 8  ;;  %v3637_v50 = vadd.f32 %v3636_v57, %v3635_v53  ;;  %v3756_v51 = vmul.f32 %v8061_v55, %v8061_v55  ;;  %v3654_v49 = vsel %vm2357_vm5, %v8061_v55, 0.0 }
 0x53f   :  { %3492 = vxpose.xlu1.b32.cont [8/16] (narrow) %v4131_v20, 8 }
 0x540   :  { %v3834_v17 = vadd.f32 %v3833_v19, %v3832_v2  ;;  %v3656_v2 = vsel %vm2357_vm5, %v8057_v63, 0.0 }
 0x542   :  { %3518 = vxpose.xlu0.b32.cont [2/16] (narrow) %v8057_v63, 8 }
 0x548   :  { %v4134_v40 = vpop.f32.mrb[24].mxu0 }
 0x549   :  { %v3254_v37 = vpop.f32.mrb[25].mxu0  ;;  %v3749_v9 = vmul.f32 %v4134_v40, %v4134_v40  ;;  %v3640_v6 = vsel %vm2357_vm5, %v4134_v40, 0.0 }
 0x54a   :  { %v3638_v23 = vsel %vm2357_vm5, %v3254_v37, 0.0  ;;  %v3748_v35 = vmul.f32 %v3254_v37, %v3254_v37  ;;  %3493 = vxpose.xlu1.b32.cont [9/16] (narrow) %v3254_v37, 8 }
 0x54b   :  { %v3639_v52 = vadd.f32 %v3638_v23, %v3637_v50  ;;  %v3837_v10 = vsel %vm2357_vm5, %v3749_v9, 0.0  ;;  %v3851_v50 = vsel %vm2357_vm5, %v3756_v51, 0.0  ;;  %v3853_v23 = vsel %vm2357_vm5, %v3757_v58, 0.0 }
 0x54c   :  { %v3835_v29 = vsel %vm2357_vm5, %v3748_v35, 0.0 }
 0x54d   :  { %v3836_v26 = vadd.f32 %v3835_v29, %v3834_v17  ;;  %v8069_v21 = vpop.f32.mrb[2].mxu1  ;;  %v3641_v62 = vadd.f32 %v3640_v6, %v3639_v52 }
 0x54e   :  { %v8072_v13 = vpop.f32.mrb[3].mxu1  ;;  %3494 = vxpose.xlu1.b32.cont [10/16] (narrow) %v4134_v40, 8  ;;  %v3759_v55 = vmul.f32 %v8069_v21, %v8069_v21  ;;  %v3660_v6 = vsel %vm2357_vm5, %v8069_v21, 0.0 }
 0x54f   :  { %3519 = vxpose.xlu0.b32.cont [3/16] (narrow) %v8072_v13, 8  ;;  %v3838_v0 = vadd.f32 %v3837_v10, %v3836_v26  ;;  %v3758_v19 = vmul.f32 %v8072_v13, %v8072_v13  ;;  %v3658_v35 = vsel %vm2357_vm5, %v8072_v13, 0.0 }
 0x551   :  { %v3855_v29 = vsel %vm2357_vm5, %v3758_v19, 0.0 }
 0x553   :  { %3520 = vxpose.xlu0.b32.cont [4/16] (narrow) %v8069_v21, 8 }
 0x559   :  { %v4137_v42 = vpop.f32.mrb[26].mxu0 }
 0x55a   :  { %v3264_v47 = vpop.f32.mrb[27].mxu0  ;;  %v3751_v24 = vmul.f32 %v4137_v42, %v4137_v42  ;;  %v3644_v16 = vsel %vm2357_vm5, %v4137_v42, 0.0 }
 0x55b   :  { %v3642_v32 = vsel %vm2357_vm5, %v3264_v47, 0.0  ;;  %v3750_v28 = vmul.f32 %v3264_v47, %v3264_v47  ;;  %3495 = vxpose.xlu1.b32.cont [11/16] (narrow) %v3264_v47, 8 }
 0x55c   :  { %v3643_v31 = vadd.f32 %v3642_v32, %v3641_v62  ;;  %v3841_v15 = vsel %vm2357_vm5, %v3751_v24, 0.0 }
 0x55d   :  { %v3839_v1 = vsel %vm2357_vm5, %v3750_v28, 0.0  ;;  %v8079_v38 = vpop.f32.mrb[4].mxu1 }
 0x55e   :  { %v3840_v3 = vadd.f32 %v3839_v1, %v3838_v0  ;;  %v8081_v11 = vpop.f32.mrb[5].mxu1  ;;  %v3645_v7 = vadd.f32 %v3644_v16, %v3643_v31  ;;  %v3857_v0 = vsel %vm2357_vm5, %v3759_v55, 0.0  ;;  %v3664_v21 = vsel %vm2357_vm5, %v8079_v38, 0.0 }
 0x55f   :  { %3496 = vxpose.xlu1.b32.cont [12/16] (narrow) %v4137_v42, 8  ;;  %3521 = vxpose.xlu0.b32.cont [5/16] (narrow) %v8081_v11, 8  ;;  %v3760_v26 = vmul.f32 %v8081_v11, %v8081_v11  ;;  %v3761_v42 = vmul.f32 %v8079_v38, %v8079_v38  ;;  %v3662_v13 = vsel %vm2357_vm5, %v8081_v11, 0.0 }
 0x560   :  { %v3842_v30 = vadd.f32 %v3841_v15, %v3840_v3 }
 0x561   :  { %v3859_v32 = vsel %vm2357_vm5, %v3760_v26, 0.0 }
 0x563   :  { %3522 = vxpose.xlu0.b32.cont [6/16] (narrow) %v8079_v38, 8 }
 0x569   :  { %v4140_v18 = vpop.f32.mrb[28].mxu0 }
 0x56a   :  { %v3274_v39 = vpop.f32.mrb[29].mxu0  ;;  %v3753_v45 = vmul.f32 %v4140_v18, %v4140_v18  ;;  %v3648_v25 = vsel %vm2357_vm5, %v4140_v18, 0.0 }
 0x56b   :  { %v3646_v33 = vsel %vm2357_vm5, %v3274_v39, 0.0  ;;  %v3752_v41 = vmul.f32 %v3274_v39, %v3274_v39  ;;  %3497 = vxpose.xlu1.b32.cont [13/16] (narrow) %v3274_v39, 8 }
 0x56c   :  { %v3647_v14 = vadd.f32 %v3646_v33, %v3645_v7  ;;  %v3845_v43 = vsel %vm2357_vm5, %v3753_v45, 0.0  ;;  %v3861_v7 = vsel %vm2357_vm5, %v3761_v42, 0.0 }
 0x56d   :  { %v3843_v27 = vsel %vm2357_vm5, %v3752_v41, 0.0  ;;  %v8089_v61 = vpop.f32.mrb[6].mxu1 }
 0x56e   :  { %v3844_v59 = vadd.f32 %v3843_v27, %v3842_v30  ;;  %v3324_v12 = vpop.f32.mrb[7].mxu1  ;;  %v3649_v4 = vadd.f32 %v3648_v25, %v3647_v14  ;;  %v3763_v15 = vmul.f32 %v8089_v61, %v8089_v61  ;;  %v3668_v38 = vsel %vm2357_vm5, %v8089_v61, 0.0 }
 0x56f   :  { %3498 = vxpose.xlu1.b32.cont [14/16] (narrow) %v4140_v18, 8  ;;  %3523 = vxpose.xlu0.b32.cont [7/16] (narrow) %v3324_v12, 8  ;;  %v3762_v28 = vmul.f32 %v3324_v12, %v3324_v12  ;;  %v3666_v11 = vsel %vm2357_vm5, %v3324_v12, 0.0 }
 0x570   :  { %v3846_v46 = vadd.f32 %v3845_v43, %v3844_v59  ;;  %v3865_v14 = vsel %vm2357_vm5, %v3763_v15, 0.0 }
 0x571   :  { %v4143_v54 = vpop.f32.mrb[30].mxu0  ;;  %v3863_v39 = vsel %vm2357_vm5, %v3762_v28, 0.0 }
 0x572   :  { %v3284_v56 = vpop.f32.mrb[31].mxu0  ;;  %v3755_v22 = vmul.f32 %v4143_v54, %v4143_v54  ;;  %v3652_v36 = vsel %vm2357_vm5, %v4143_v54, 0.0 }
 0x573   :  { %v3650_v8 = vsel %vm2357_vm5, %v3284_v56, 0.0  ;;  %v3754_v48 = vmul.f32 %v3284_v56, %v3284_v56  ;;  %3524 = vxpose.xlu0.b32.cont [8/16] (narrow) %v8089_v61, 8  ;;  %3499 = vxpose.xlu1.b32.cont [15/16] (narrow) %v3284_v56, 8 }
 0x574   :  { %v3651_v5 = vadd.f32 %v3650_v8, %v3649_v4  ;;  %v3849_v53 = vsel %vm2357_vm5, %v3755_v22, 0.0 }
 0x575   :  { %v3847_v20 = vsel %vm2357_vm5, %v3754_v48, 0.0 }
 0x576   :  { %v3653_v44 = vadd.f32 %v3652_v36, %v3651_v5  ;;  %v3848_v60 = vadd.f32 %v3847_v20, %v3846_v46 }
 0x577   :  { %3500 = vxpose.xlu1.b32.end [16/16] (narrow) %v4143_v54, 8 }
 0x578   :  { %v3655_v57 = vadd.f32 %v3654_v49, %v3653_v44  ;;  %v3850_v34 = vadd.f32 %v3849_v53, %v3848_v60 }
 0x579   :  { %v4158_v17 = vpop.f32.mrb[8].mxu1 }
 0x57a   :  { %v3657_v40 = vadd.f32 %v3656_v2, %v3655_v57  ;;  %v3852_v37 = vadd.f32 %v3851_v50, %v3850_v34  ;;  %v3334_v9 = vpop.f32.mrb[9].mxu1  ;;  %v3765_v25 = vmul.f32 %v4158_v17, %v4158_v17  ;;  %v3672_v12 = vsel %vm2357_vm5, %v4158_v17, 0.0 }
 0x57b   :  { %3525 = vxpose.xlu0.b32.cont [9/16] (narrow) %v3334_v9, 8  ;;  %v3764_v45 = vmul.f32 %v3334_v9, %v3334_v9  ;;  %v3670_v27 = vsel %vm2357_vm5, %v3334_v9, 0.0 }
 0x57c   :  { %v3659_v52 = vadd.f32 %v3658_v35, %v3657_v40  ;;  %v3854_v63 = vadd.f32 %v3853_v23, %v3852_v37  ;;  %v3869_v22 = vsel %vm2357_vm5, %v3765_v25, 0.0 }
 0x57d   :  { %v3867_v43 = vsel %vm2357_vm5, %v3764_v45, 0.0 }
 0x57e   :  { %v3661_v62 = vadd.f32 %v3660_v6, %v3659_v52  ;;  %v3856_v10 = vadd.f32 %v3855_v29, %v3854_v63 }
 0x57f   :  { %3526 = vxpose.xlu0.b32.cont [10/16] (narrow) %v4158_v17, 8 }
 0x580   :  { %v3858_v47 = vadd.f32 %v3857_v0, %v3856_v10  ;;  %v3663_v24 = vadd.f32 %v3662_v13, %v3661_v62 }
 0x581   :  { %v4161_v31 = vpop.f32.mrb[10].mxu1 }
 0x582   :  { %v3665_v16 = vadd.f32 %v3664_v21, %v3663_v24  ;;  %v3860_v1 = vadd.f32 %v3859_v32, %v3858_v47  ;;  %v3344_v3 = vpop.f32.mrb[11].mxu1  ;;  %v3767_v8 = vmul.f32 %v4161_v31, %v4161_v31  ;;  %v3676_v20 = vsel %vm2357_vm5, %v4161_v31, 0.0 }
 0x583   :  { %3527 = vxpose.xlu0.b32.cont [11/16] (narrow) %v3344_v3, 8  ;;  %v3766_v46 = vmul.f32 %v3344_v3, %v3344_v3  ;;  %v3674_v48 = vsel %vm2357_vm5, %v3344_v3, 0.0 }
 0x584   :  { %v3667_v30 = vadd.f32 %v3666_v11, %v3665_v16  ;;  %v3862_v18 = vadd.f32 %v3861_v7, %v3860_v1  ;;  %v3873_v53 = vsel %vm2357_vm5, %v3767_v8, 0.0 }
 0x585   :  { %v3871_v44 = vsel %vm2357_vm5, %v3766_v46, 0.0 }
 0x586   :  { %v3669_v33 = vadd.f32 %v3668_v38, %v3667_v30  ;;  %v3864_v41 = vadd.f32 %v3863_v39, %v3862_v18 }
 0x587   :  { %3528 = vxpose.xlu0.b32.cont [12/16] (narrow) %v4161_v31, 8 }
 0x588   :  { %v3671_v59 = vadd.f32 %v3670_v27, %v3669_v33  ;;  %v3866_v4 = vadd.f32 %v3865_v14, %v3864_v41 }
 0x58a   :  { %v3868_v54 = vadd.f32 %v3867_v43, %v3866_v4  ;;  %v3673_v61 = vadd.f32 %v3672_v12, %v3671_v59  ;;  %v4164_v56 = vpop.f32.mrb[12].mxu1  ;;  %v3469_v12 = vpop.trf.xlu0 }
 0x58b   :  { %v3354_v5 = vpop.f32.mrb[13].mxu1  ;;  %v3769_v57 = vmul.f32 %v4164_v56, %v4164_v56  ;;  %v3680_v19 = vsel %vm2357_vm5, %v4164_v56, 0.0 }
 0x58c   :  { %v3675_v51 = vadd.f32 %v3674_v48, %v3673_v61  ;;  %v3870_v36 = vadd.f32 %v3869_v22, %v3868_v54  ;;  %3529 = vxpose.xlu0.b32.cont [13/16] (narrow) %v3354_v5, 8  ;;  %v3768_v60 = vmul.f32 %v3354_v5, %v3354_v5  ;;  %v3678_v34 = vsel %vm2357_vm5, %v3354_v5, 0.0 }
 0x58d   :  { %v3877_v9 = vsel %vm2357_vm5, %v3769_v57, 0.0 }
 0x58e   :  { %v3872_v58 = vadd.f32 %v3871_v44, %v3870_v36  ;;  %v3677_v49 = vadd.f32 %v3676_v20, %v3675_v51  ;;  %v3875_v17 = vsel %vm2357_vm5, %v3768_v60, 0.0 }
 0x590   :  { %v3679_v2 = vadd.f32 %v3678_v34, %v3677_v49  ;;  %v3874_v50 = vadd.f32 %v3873_v53, %v3872_v58  ;;  %3530 = vxpose.xlu0.b32.cont [14/16] (narrow) %v4164_v56, 8 }
 0x592   :  { %v3876_v40 = vadd.f32 %v3875_v17, %v3874_v50  ;;  %v3681_v37 = vadd.f32 %v3680_v19, %v3679_v2 }
 0x594   :  { %v3878_v23 = vadd.f32 %v3877_v9, %v3876_v40 }
 0x596   :  { %v4167_v55 = vpop.f32.mrb[14].mxu1 }
 0x597   :  { %v3364_v35 = vpop.f32.mrb[15].mxu1  ;;  %v3771_v52 = vmul.f32 %v4167_v55, %v4167_v55  ;;  %v3684_v26 = vsel %vm2357_vm5, %v4167_v55, 0.0 }
 0x598   :  { %v3682_v63 = vsel %vm2357_vm5, %v3364_v35, 0.0  ;;  %v3770_v6 = vmul.f32 %v3364_v35, %v3364_v35  ;;  %3531 = vxpose.xlu0.b32.cont [15/16] (narrow) %v3364_v35, 8 }
 0x599   :  { %v3683_v29 = vadd.f32 %v3682_v63, %v3681_v37  ;;  %v3881_v42 = vsel %vm2357_vm5, %v3771_v52, 0.0 }
 0x59a   :  { %v3879_v62 = vsel %vm2357_vm5, %v3770_v6, 0.0 }
 0x59b   :  { %v3880_v10 = vadd.f32 %v3879_v62, %v3878_v23  ;;  %v3685_v0 = vadd.f32 %v3684_v26, %v3683_v29 }
 0x59c   :  { %3532 = vxpose.xlu0.b32.end [16/16] (narrow) %v4167_v55, 8 }
 0x59d   :  { %v3882_v13 = vadd.f32 %v3881_v42, %v3880_v10 }
 0x5a2   :  { %v4170_v47 = vpop.f32.mrb[16].mxu1 }
 0x5a3   :  { %v3374_v24 = vpop.f32.mrb[17].mxu1  ;;  %v3773_v21 = vmul.f32 %v4170_v47, %v4170_v47  ;;  %v3688_v16 = vsel %vm2357_vm5, %v4170_v47, 0.0 }
 0x5a4   :  { %v3686_v32 = vsel %vm2357_vm5, %v3374_v24, 0.0  ;;  %v3772_v28 = vmul.f32 %v3374_v24, %v3374_v24  ;;  %3549 = vxpose.xlu1.b32.start [1/16] (narrow) %v3374_v24, 8 }
 0x5a5   :  { %v3687_v31 = vadd.f32 %v3686_v32, %v3685_v0  ;;  %v3885_v15 = vsel %vm2357_vm5, %v3773_v21, 0.0 }
 0x5a6   :  { %v3883_v1 = vsel %vm2357_vm5, %v3772_v28, 0.0 }
 0x5a7   :  { %v3884_v3 = vadd.f32 %v3883_v1, %v3882_v13  ;;  %v3689_v7 = vadd.f32 %v3688_v16, %v3687_v31 }
 0x5a8   :  { %3550 = vxpose.xlu1.b32.cont [2/16] (narrow) %v4170_v47, 8 }
 0x5a9   :  { %v3886_v11 = vadd.f32 %v3885_v15, %v3884_v3 }
 0x5ae   :  { %v4173_v30 = vpop.f32.mrb[18].mxu1 }
 0x5af   :  { %v3384_v18 = vpop.f32.mrb[19].mxu1  ;;  %v3775_v38 = vmul.f32 %v4173_v30, %v4173_v30  ;;  %v3692_v41 = vsel %vm2357_vm5, %v4173_v30, 0.0 }
 0x5b0   :  { %v3690_v39 = vsel %vm2357_vm5, %v3384_v18, 0.0  ;;  %v3774_v45 = vmul.f32 %v3384_v18, %v3384_v18  ;;  %3551 = vxpose.xlu1.b32.cont [3/16] (narrow) %v3384_v18, 8 }
 0x5b1   :  { %v3691_v33 = vadd.f32 %v3690_v39, %v3689_v7  ;;  %v3889_v59 = vsel %vm2357_vm5, %v3775_v38, 0.0 }
 0x5b2   :  { %v3887_v14 = vsel %vm2357_vm5, %v3774_v45, 0.0 }
 0x5b3   :  { %v3888_v25 = vadd.f32 %v3887_v14, %v3886_v11  ;;  %v3693_v27 = vadd.f32 %v3692_v41, %v3691_v33 }
 0x5b4   :  { %3552 = vxpose.xlu1.b32.cont [4/16] (narrow) %v4173_v30, 8 }
 0x5b5   :  { %v3890_v4 = vadd.f32 %v3889_v59, %v3888_v25 }
 0x5ba   :  { %v4176_v43 = vpop.f32.mrb[20].mxu1 }
 0x5bb   :  { %v3394_v46 = vpop.f32.mrb[21].mxu1  ;;  %v3501_v54 = vpop.trf.xlu1  ;;  %v3777_v61 = vmul.f32 %v4176_v43, %v4176_v43  ;;  %v3696_v5 = vsel %vm2357_vm5, %v4176_v43, 0.0 }
 0x5bc   :  { %v3694_v56 = vsel %vm2357_vm5, %v3394_v46, 0.0  ;;  %v3776_v22 = vmul.f32 %v3394_v46, %v3394_v46  ;;  %3553 = vxpose.xlu1.b32.cont [5/16] (narrow) %v3394_v46, 8  ;;  %v3585_v8 = vcombine.low %v3469_v12, %v3501_v54 }
 0x5bd   :  { %v3695_v48 = vadd.f32 %v3694_v56, %v3693_v27  ;;  %v3893_v44 = vsel %vm2357_vm5, %v3777_v61, 0.0 }
 0x5be   :  { %v3891_v51 = vsel %vm2357_vm5, %v3776_v22, 0.0  ;;  %3589 = vst [vmem:[#allocation2] sm:$0xff] %v3585_v8 }
 0x5bf   :  { %v3892_v36 = vadd.f32 %v3891_v51, %v3890_v4  ;;  %v3697_v20 = vadd.f32 %v3696_v5, %v3695_v48 }
 0x5c0   :  { %3554 = vxpose.xlu1.b32.cont [6/16] (narrow) %v4176_v43, 8 }
 0x5c1   :  { %v3894_v60 = vadd.f32 %v3893_v44, %v3892_v36 }
 0x5c6   :  { %v4179_v58 = vpop.f32.mrb[22].mxu1 }
 0x5c7   :  { %v3404_v49 = vpop.f32.mrb[23].mxu1  ;;  %v3779_v53 = vmul.f32 %v4179_v58, %v4179_v58  ;;  %v3700_v50 = vsel %vm2357_vm5, %v4179_v58, 0.0 }
 0x5c8   :  { %v3698_v57 = vsel %vm2357_vm5, %v3404_v49, 0.0  ;;  %v3778_v34 = vmul.f32 %v3404_v49, %v3404_v49  ;;  %3555 = vxpose.xlu1.b32.cont [7/16] (narrow) %v3404_v49, 8 }
 0x5c9   :  { %v3699_v2 = vadd.f32 %v3698_v57, %v3697_v20  ;;  %v3897_v37 = vsel %vm2357_vm5, %v3779_v53, 0.0 }
 0x5ca   :  { %v3895_v19 = vsel %vm2357_vm5, %v3778_v34, 0.0 }
 0x5cb   :  { %v3896_v17 = vadd.f32 %v3895_v19, %v3894_v60  ;;  %v3701_v40 = vadd.f32 %v3700_v50, %v3699_v2 }
 0x5cc   :  { %3556 = vxpose.xlu1.b32.cont [8/16] (narrow) %v4179_v58, 8 }
 0x5cd   :  { %v3898_v9 = vadd.f32 %v3897_v37, %v3896_v17 }
 0x5d2   :  { %v4182_v23 = vpop.f32.mrb[24].mxu1 }
 0x5d3   :  { %v3414_v55 = vpop.f32.mrb[25].mxu1  ;;  %v3781_v35 = vmul.f32 %v4182_v23, %v4182_v23  ;;  %v3704_v29 = vsel %vm2357_vm5, %v4182_v23, 0.0 }
 0x5d4   :  { %v3702_v52 = vsel %vm2357_vm5, %v3414_v55, 0.0  ;;  %v3780_v63 = vmul.f32 %v3414_v55, %v3414_v55  ;;  %3557 = vxpose.xlu1.b32.cont [9/16] (narrow) %v3414_v55, 8 }
 0x5d5   :  { %v3703_v6 = vadd.f32 %v3702_v52, %v3701_v40  ;;  %v3901_v0 = vsel %vm2357_vm5, %v3781_v35, 0.0 }
 0x5d6   :  { %v3899_v26 = vsel %vm2357_vm5, %v3780_v63, 0.0 }
 0x5d7   :  { %v3900_v62 = vadd.f32 %v3899_v26, %v3898_v9  ;;  %v3705_v10 = vadd.f32 %v3704_v29, %v3703_v6 }
 0x5d8   :  { %3558 = vxpose.xlu1.b32.cont [10/16] (narrow) %v4182_v23, 8 }
 0x5d9   :  { %v3902_v42 = vadd.f32 %v3901_v0, %v3900_v62 }
 0x5de   :  { %v4185_v13 = vpop.f32.mrb[26].mxu1 }
 0x5df   :  { %v3424_v47 = vpop.f32.mrb[27].mxu1  ;;  %v3783_v24 = vmul.f32 %v4185_v13, %v4185_v13  ;;  %v3708_v31 = vsel %vm2357_vm5, %v4185_v13, 0.0 }
 0x5e0   :  { %v3706_v21 = vsel %vm2357_vm5, %v3424_v47, 0.0  ;;  %v3782_v32 = vmul.f32 %v3424_v47, %v3424_v47  ;;  %3559 = vxpose.xlu1.b32.cont [11/16] (narrow) %v3424_v47, 8 }
 0x5e1   :  { %v3707_v28 = vadd.f32 %v3706_v21, %v3705_v10  ;;  %v3905_v7 = vsel %vm2357_vm5, %v3783_v24, 0.0 }
 0x5e2   :  { %v3903_v16 = vsel %vm2357_vm5, %v3782_v32, 0.0 }
 0x5e3   :  { %v3904_v1 = vadd.f32 %v3903_v16, %v3902_v42  ;;  %v3709_v3 = vadd.f32 %v3708_v31, %v3707_v28 }
 0x5e4   :  { %3560 = vxpose.xlu1.b32.cont [12/16] (narrow) %v4185_v13, 8 }
 0x5e5   :  { %v3906_v15 = vadd.f32 %v3905_v7, %v3904_v1 }
 0x5ea   :  { %v4188_v11 = vpop.f32.mrb[28].mxu1 }
 0x5eb   :  { %v3434_v30 = vpop.f32.mrb[29].mxu1  ;;  %v3785_v18 = vmul.f32 %v4188_v11, %v4188_v11  ;;  %v3712_v33 = vsel %vm2357_vm5, %v4188_v11, 0.0 }
 0x5ec   :  { %v3710_v38 = vsel %vm2357_vm5, %v3434_v30, 0.0  ;;  %v3784_v39 = vmul.f32 %v3434_v30, %v3434_v30  ;;  %3561 = vxpose.xlu1.b32.cont [13/16] (narrow) %v3434_v30, 8 }
 0x5ed   :  { %v3711_v45 = vadd.f32 %v3710_v38, %v3709_v3  ;;  %v3909_v4 = vsel %vm2357_vm5, %v3785_v18, 0.0 }
 0x5ee   :  { %v3907_v41 = vsel %vm2357_vm5, %v3784_v39, 0.0  ;;  %v4191_v14 = vpop.f32.mrb[30].mxu1 }
 0x5ef   :  { %v3908_v25 = vadd.f32 %v3907_v41, %v3906_v15  ;;  %v3444_v27 = vpop.f32.mrb[31].mxu1  ;;  %v3713_v59 = vadd.f32 %v3712_v33, %v3711_v45  ;;  %v3787_v12 = vmul.f32 %v4191_v14, %v4191_v14  ;;  %v3716_v56 = vsel %vm2357_vm5, %v4191_v14, 0.0 }
 0x5f0   :  { %v3714_v43 = vsel %vm2357_vm5, %v3444_v27, 0.0  ;;  %v3786_v46 = vmul.f32 %v3444_v27, %v3444_v27  ;;  %3562 = vxpose.xlu1.b32.cont [14/16] (narrow) %v4188_v11, 8 }
 0x5f1   :  { %v3715_v54 = vadd.f32 %v3714_v43, %v3713_v59  ;;  %v3910_v61 = vadd.f32 %v3909_v4, %v3908_v25  ;;  %v3913_v5 = vsel %vm2357_vm5, %v3787_v12, 0.0 }
 0x5f2   :  { %v3911_v22 = vsel %vm2357_vm5, %v3786_v46, 0.0 }
 0x5f3   :  { %v3717_v8 = vadd.f32 %v3716_v56, %v3715_v54  ;;  %v3912_v48 = vadd.f32 %v3911_v22, %v3910_v61 }
 0x5f4   :  { %3563 = vxpose.xlu1.b32.cont [15/16] (narrow) %v3444_v27, 8 }
 0x5f5   :  { %v3718_v51 = vrot.slane %v3717_v8, 4  ;;  %v3914_v36 = vadd.f32 %v3913_v5, %v3912_v48 }
 0x5f7   :  { %v3719_v20 = vadd.f32 %v3718_v51, %v3717_v8  ;;  %v3915_v44 = vrot.slane %v3914_v36, 4 }
 0x5f8   :  { %3564 = vxpose.xlu1.b32.end [16/16] (narrow) %v4191_v14, 8 }
 0x5f9   :  { %v3720_v60 = vrot.slane %v3719_v20, 2  ;;  %v3916_v58 = vadd.f32 %v3915_v44, %v3914_v36 }
 0x5fb   :  { %v3721_v49 = vadd.f32 %v3720_v60, %v3719_v20  ;;  %v3917_v53 = vrot.slane %v3916_v58, 2 }
 0x5fd   :  { %v3722_v57 = vrot.slane %v3721_v49, 1  ;;  %v3918_v34 = vadd.f32 %v3917_v53, %v3916_v58 }
 0x5ff   :  { %v3919_v2 = vrot.slane %v3918_v34, 1  ;;  %v3723_v50 = vadd.f32 %v3722_v57, %v3721_v49 }
 0x601   :  { %v3920_v19 = vadd.f32 %v3919_v2, %v3918_v34 }
 0x603   :  { %v3921_v17 = vsel %vm215_vm0, %v3723_v50, %v3920_v19 }
 0x604   :  { %3923 = vst.msk [vmem:[#allocation4] sm:$0x3] %vm3922_vm13, %v3921_v17 }
 0x605   :  { %4230 = shalt.err (!%p4227_p4)
}
 0x606   :  { %s4231_s10 = scalar_lea.hbm %s8210_s3, 32 }
 0x607   :  { %p4232_p5 = scmp.ne.s32.totalorder %s8210_s3, %s4231_s10  ;;  %p4235_p6 = scmp.lt.u32.totalorder %s4231_s10, %s8210_s3 }
 0x609   :  { %p4237_p7 = pnand %p4235_p6, %p4232_p5 }
 0x60b   :  { %4240 = shalt.err (!%p4237_p7)
}
 0x60c   :  { %3943 = dma.vmem_to_hbm [thread:$0]  %s3941_s6, 32, %s8210_s3, [#allocation5]   ;;  %v3533_v40 = vpop.trf.xlu0 }
 0x60d   :  { %s4277_s16 = smov [#allocation2]  }
 0x60e   :  { %s3930_s17 = sshll.u32 %s4277_s16, 4  ;;  %s3931_s17 = int_to_ptr.vmem [resolvable:$true] %s3930_s17 }
 0x60f   :  { %s4241_s18 = scalar_lea.vmem %s3931_s17, 256  ;;  %p4246_p9 = scmp.lt.s32.totalorder %s3931_s17, %s3931_s17 }
 0x610   :  { %p4242_p8 = scmp.ne.s32.totalorder %s3931_s17, %s4241_s18  ;;  %p4247_p10 = scmp.lt.s32.totalorder %s4241_s18, %s4241_s18 }
 0x612   :  { %p4248_p11 = por %p4247_p10, %p4246_p9 }
 0x614   :  { %p4249_p12 = pnand %p4248_p11, %p4242_p8 }
 0x63c   :  { %v3565_v37 = vpop.trf.xlu1 }
 0x63d   :  { %v3586_v9 = vcombine.low %v3533_v40, %v3565_v37 }
 0x63f   :  { %3590 = vst [vmem:[#allocation2 + $0x8] sm:$0xff] %v3586_v9 }
 0x640   :  { %4252 = shalt.err (!%p4249_p12)
}
 0x641   :  { %s4253_s21 = scalar_lea.hbm %s8209_s2, 256 }
 0x642   :  { %p4254_p13 = scmp.ne.s32.totalorder %s8209_s2, %s4253_s21  ;;  %p4257_p0 = scmp.lt.u32.totalorder %s4253_s21, %s8209_s2 }
 0x644   :  { %p4259_p1 = pnand %p4257_p0, %p4254_p13 }
 0x646   :  { %4262 = shalt.err (!%p4259_p1)
}
 0x647   :  { %3933 = dma.vmem_to_hbm [thread:$0]  %s3931_s17, 256, %s8209_s2, [#allocation3]  }
 0x648   :  { %4263 = dma.done.wait [#allocation3], 256  }
 0x649   :  { %4264 = vsyncadd [#allocation3], 4294967040 }
 0x64a   :  { %4265 = dma.done.wait [#allocation5], 32  }
 0x64b   :  { %4266 = vsyncadd [#allocation5], 4294967264 }
 0x64c   :  { %3950 = vsyncpa [#allocation3], 1 }
 0x64d   :  { %3951 = vsyncpa [#allocation5], 1 }

</bundles_post_ra>
